<compile_context>
chip_gen: v7x
topology: tpu7x:2x2x1
jax: 0.10.0
libtpu: 0.0.40
codegen_flags: <defaults>
</compile_context>

<pallas_src>
import functools

import jax
import jax.numpy as jnp
from jax.experimental import pallas as pl
from jax.experimental.pallas import tpu as pltpu


# ------------------------------ Pallas kernel ------------------------------ #

def _layer_norm(x, gamma, beta, eps=1e-5):
    mu = jnp.mean(x, axis=-1, keepdims=True)
    var = jnp.mean((x - mu) ** 2, axis=-1, keepdims=True)
    return (x - mu) * jax.lax.rsqrt(var + eps) * gamma + beta


def fused_encoder_kernel(x_ref, kbias_ref, wqkv_ref, wo_ref, mk_ref, mv_ref,
                         w1_ref, w2_ref, bqkv_ref, bmisc_ref, b1_ref,
                         out_ref, x_scr, *, num_head, d_k, bb, seq):
    """One encoder layer for one block of BB batch rows (grid = (batch_block, layer))."""
    f32, b16 = jnp.float32, jnp.bfloat16
    H, dk, BB, S = num_head, d_k, bb, seq
    N, D = x_scr.shape
    M = mk_ref.shape[-1]
    l = pl.program_id(1)

    # Carry the running activation across the (sequential) layer axis.
    @pl.when(l == 0)
    def _():
        x_scr[...] = x_ref[...]

    x = x_scr[...]                                               # (N, D) f32

    # ---- fused q|k|v projection: ONE (N, D) @ (D, 3D) MXU matmul (bf16 in, f32 acc) ----
    qkv = jnp.dot(x.astype(b16), wqkv_ref[...],
                  preferred_element_type=f32) + bqkv_ref[...]    # (N, 3D)
    q = qkv[:, :D]                                               # 1/sqrt(dk) folded in
    k = qkv[:, D:2 * D]
    v = qkv[:, 2 * D:]

    kbias = kbias_ref[...][:, None, :]                           # (BB, 1, S) key-pad bias

    # ---- per-head attention over (real keys ++ learned memory slots), per batch row ----
    ctx_heads = []
    for h in range(H):                                           # static unroll (H small)
        qh = q[:, h * dk:(h + 1) * dk].astype(b16)               # (N, dk)
        kh = k[:, h * dk:(h + 1) * dk].astype(b16)
        vh = v[:, h * dk:(h + 1) * dk].astype(b16)

        # real-key logits, per batch row (BB, S, S); memory logits shared across rows
        s_r = jnp.einsum('bqd,bkd->bqk',
                         qh.reshape(BB, S, dk), kh.reshape(BB, S, dk),
                         preferred_element_type=f32) + kbias     # (BB, S, S)
        s_m = jnp.dot(qh, mk_ref[h],
                      preferred_element_type=f32).reshape(BB, S, M)   # (BB, S, M)

        # joint softmax over (real keys ++ memory slots) without concatenation
        m = jnp.maximum(s_r.max(-1, keepdims=True), s_m.max(-1, keepdims=True))
        p_r = jnp.exp(s_r - m)
        p_m = jnp.exp(s_m - m)
        denom = p_r.sum(-1, keepdims=True) + p_m.sum(-1, keepdims=True)

        ctx = jnp.einsum('bqk,bkd->bqd', p_r.astype(b16), vh.reshape(BB, S, dk),
                         preferred_element_type=f32)
        ctx = ctx + jnp.dot(p_m.reshape(N, M).astype(b16), mv_ref[h],
                            preferred_element_type=f32).reshape(BB, S, dk)
        ctx = ctx * pl.reciprocal(denom, approx=True)            # (BB, S, dk)
        ctx_heads.append(ctx.reshape(N, dk))

    # ---- lane-dense head concat + single (N, D) @ (D, D) output projection ----
    bm = bmisc_ref[...]                                          # (6, D) f32
    o = jnp.concatenate(ctx_heads, axis=-1)                      # (N, D)
    o = jnp.dot(o.astype(b16), wo_ref[...], preferred_element_type=f32) + bm[0:1]

    h1 = _layer_norm(x + o, bm[1:2], bm[2:3])                    # residual + LN

    # ---- position-wise feed-forward (ReLU) + residual + LN ----
    f1 = jnp.maximum(
        jnp.dot(h1.astype(b16), w1_ref[...], preferred_element_type=f32) + b1_ref[...],
        0.0)
    f2 = jnp.dot(f1.astype(b16), w2_ref[...], preferred_element_type=f32) + bm[3:4]
    x_new = _layer_norm(h1 + f2, bm[4:5], bm[5:6])

    x_scr[...] = x_new
    out_ref[...] = x_new.reshape(BB, S, D)                       # final (B, L, S, D) layout


# ------------------------------ JAX wrapper ------------------------------ #

def _pack_params(layer_params, num_head, num_memory):
    """Stack per-layer params, fold softmax/memory scaling, fuse q|k|v, cast matmul weights."""
    L = len(layer_params)
    D = layer_params[0]['wq'].shape[0]
    H, M = num_head, num_memory
    dk = D // H
    f32, b16 = jnp.float32, jnp.bfloat16
    qscale = float(dk) ** -0.5

    def stack(name):
        return jnp.stack([p[name] for p in layer_params]).astype(f32)

    # fused q|k|v projection weights; 1/sqrt(dk) folded into the query projection
    wqkv = jnp.concatenate([stack('wq') * qscale, stack('wk'), stack('wv')],
                           axis=-1).astype(b16)                              # (L, D, 3D)
    wo = stack('wo').astype(b16)                                             # (L, D, D)

    # memory keys pre-scaled by sqrt(dk), laid out (H, dk, M) so q_h @ mk_h is a plain dot;
    # memory values pre-scaled by sqrt(M), laid out (H, M, dk)
    mk = (stack('m_k') * (float(dk) ** 0.5)).reshape(L, M, H, dk)
    mk = mk.transpose(0, 2, 3, 1).astype(b16)                                # (L, H, dk, M)
    mv = (stack('m_v') * (float(M) ** 0.5)).reshape(L, M, H, dk)
    mv = mv.transpose(0, 2, 1, 3).astype(b16)                                # (L, H, M, dk)

    w1 = stack('w1').astype(b16)                                             # (L, D, DF)
    w2 = stack('w2').astype(b16)                                             # (L, DF, D)

    bqkv = jnp.concatenate([stack('bq') * qscale, stack('bk'), stack('bv')],
                           axis=-1)[:, None, :]                              # (L, 1, 3D)
    bmisc = jnp.stack([stack('bo'), stack('ln1_g'), stack('ln1_b'),
                       stack('b2'), stack('ln2_g'), stack('ln2_b')], axis=1)  # (L, 6, D)
    b1 = stack('b1')[:, None, :]                                             # (L, 1, DF)
    return wqkv, wo, mk, mv, w1, w2, bqkv, bmisc, b1


@functools.partial(jax.jit, static_argnames=('num_head', 'num_memory', 'batch_block'))
def memory_augmented_encoder_forward(att_feats, att_masks, layer_params, *,
                                     num_head, num_memory, batch_block=None):
    """Mirrors MemoryAugmentedEncoder.forward (mode None/'v', ATT_FEATS branch, eval)."""
    B, S, D = att_feats.shape
    L = len(layer_params)
    H, M = num_head, num_memory
    dk = D // H
    DF = layer_params[0]['w1'].shape[1]

    # keep >= 2 "parallel" grid steps when possible so v7x's two TensorCores both work
    if batch_block is None:
        batch_block = B // 2 if (B % 2 == 0 and B >= 2) else B
    BB = batch_block
    assert B % BB == 0, "batch_block must divide the batch size"
    G = B // BB
    N = BB * S

    attention_mask = att_masks == 0                      # (B, S) bool, True -> padding
    # additive key-padding bias per batch row; memory slots are never masked
    key_bias = jnp.where(attention_mask, jnp.float32(-1e30),
                         jnp.float32(0.0)).reshape(G, BB, S)

    wqkv, wo, mk, mv, w1, w2, bqkv, bmisc, b1 = _pack_params(layer_params, H, M)
    x2d = att_feats.reshape(B * S, D).astype(jnp.float32)

    kernel = functools.partial(fused_encoder_kernel,
                               num_head=H, d_k=dk, bb=BB, seq=S)

    flops = 2 * L * B * S * (3 * D * D + D * D + 2 * D * DF) \
        + 4 * L * B * H * S * (S + M) * dk
    transc = L * B * H * S * (S + M)
    bytes_acc = (x2d.size * 4 + L * B * S * D * 4
                 + (wqkv.size + wo.size + mk.size + mv.size + w1.size + w2.size) * 2
                 + (bqkv.size + bmisc.size + b1.size) * 4)

    out = pl.pallas_call(
        kernel,
        out_shape=jax.ShapeDtypeStruct((B, L, S, D), jnp.float32),
        grid=(G, L),
        in_specs=[
            pl.BlockSpec((N, D), lambda g, l: (g, 0)),                 # activations (BB rows)
            pl.BlockSpec((None, BB, S), lambda g, l: (g, 0, 0)),       # key-padding bias
            pl.BlockSpec((None, D, 3 * D), lambda g, l: (l, 0, 0)),    # fused Wq|Wk|Wv
            pl.BlockSpec((None, D, D), lambda g, l: (l, 0, 0)),        # Wo
            pl.BlockSpec((None, H, dk, M), lambda g, l: (l, 0, 0, 0)), # memory keys
            pl.BlockSpec((None, H, M, dk), lambda g, l: (l, 0, 0, 0)), # memory values
            pl.BlockSpec((None, D, DF), lambda g, l: (l, 0, 0)),       # W1
            pl.BlockSpec((None, DF, D), lambda g, l: (l, 0, 0)),       # W2
            pl.BlockSpec((None, 1, 3 * D), lambda g, l: (l, 0, 0)),    # fused qkv bias
            pl.BlockSpec((None, 6, D), lambda g, l: (l, 0, 0)),        # bo / LN / b2 pack
            pl.BlockSpec((None, 1, DF), lambda g, l: (l, 0, 0)),       # b1
        ],
        out_specs=pl.BlockSpec((BB, None, S, D), lambda g, l: (g, l, 0, 0)),
        scratch_shapes=[pltpu.VMEM((N, D), jnp.float32)],              # layer-carry x
        compiler_params=pltpu.CompilerParams(
            dimension_semantics=("parallel", "arbitrary"),
            vmem_limit_bytes=48 * 1024 * 1024),
        cost_estimate=pl.CostEstimate(flops=int(flops), transcendentals=int(transc),
                                      bytes_accessed=int(bytes_acc)),
    )(x2d, key_bias, wqkv, wo, mk, mv, w1, w2, bqkv, bmisc, b1)

    return {'ATT_FEATS': out, 'ATT_MASKS': attention_mask}


# ------------------------------ params & reference ------------------------------ #

def init_layer_params(key, d_model, num_head, num_memory, d_ff):
    dk = d_model // num_head
    ks = jax.random.split(key, 16)
    lin = lambda k, fi, fo: jax.random.normal(k, (fi, fo), jnp.float32) * 0.02
    vec = lambda k, n, s=0.02: jax.random.normal(k, (n,), jnp.float32) * s
    return {
        'wq': lin(ks[0], d_model, d_model), 'bq': vec(ks[8], d_model),
        'wk': lin(ks[1], d_model, d_model), 'bk': vec(ks[9], d_model),
        'wv': lin(ks[2], d_model, d_model), 'bv': vec(ks[10], d_model),
        'm_k': jax.random.normal(ks[3], (num_memory, d_model), jnp.float32) / dk,
        'm_v': jax.random.normal(ks[4], (num_memory, d_model), jnp.float32) / num_memory,
        'wo': lin(ks[5], d_model, d_model), 'bo': vec(ks[11], d_model),
        'ln1_g': 1.0 + vec(ks[12], d_model, 0.05), 'ln1_b': vec(ks[13], d_model),
        'w1': lin(ks[6], d_model, d_ff), 'b1': vec(ks[14], d_ff),
        'w2': lin(ks[7], d_ff, d_model), 'b2': vec(ks[15], d_model),
        'ln2_g': 1.0 + vec(ks[12], d_model, 0.05), 'ln2_b': vec(ks[13], d_model),
    }


def _ref_forward(att_feats, att_masks, layer_params, *, num_head, num_memory):
    """Pure-JAX reference of the stacked EncoderLayers (same bf16 matmul precision)."""
    B, S, D = att_feats.shape
    H, M = num_head, num_memory
    dk = D // H
    b16, f32 = jnp.bfloat16, jnp.float32
    pad = att_masks == 0

    def mm(a, w):
        return jnp.dot(a.astype(b16), w.astype(b16), preferred_element_type=f32)

    def ln(z, g, b):
        mu = z.mean(-1, keepdims=True)
        var = ((z - mu) ** 2).mean(-1, keepdims=True)
        return (z - mu) / jnp.sqrt(var + 1e-5) * g + b

    x = att_feats
    outs = []
    for p in layer_params:
        q = mm(x, p['wq']) + p['bq']
        k = mm(x, p['wk']) + p['bk']
        v = mm(x, p['wv']) + p['bv']
        mk = jnp.sqrt(jnp.float32(dk)) * p['m_k']
        mv = jnp.sqrt(jnp.float32(M)) * p['m_v']
        k_all = jnp.concatenate([k, jnp.broadcast_to(mk, (B, M, D))], axis=1)
        v_all = jnp.concatenate([v, jnp.broadcast_to(mv, (B, M, D))], axis=1)
        qh = q.reshape(B, S, H, dk).transpose(0, 2, 1, 3)
        kh = k_all.reshape(B, S + M, H, dk).transpose(0, 2, 1, 3)
        vh = v_all.reshape(B, S + M, H, dk).transpose(0, 2, 1, 3)
        att = jnp.einsum('bhqd,bhkd->bhqk', qh.astype(b16), kh.astype(b16),
                         preferred_element_type=f32) / jnp.sqrt(jnp.float32(dk))
        mask = jnp.concatenate([pad, jnp.zeros((B, M), bool)], axis=1)[:, None, None, :]
        att = jnp.where(mask, jnp.float32(-1e30), att)
        pr = jax.nn.softmax(att, axis=-1)
        o = jnp.einsum('bhqk,bhkd->bhqd', pr.astype(b16), vh.astype(b16),
                       preferred_element_type=f32)
        o = o.transpose(0, 2, 1, 3).reshape(B, S, D)
        o = mm(o, p['wo']) + p['bo']
        h = ln(x + o, p['ln1_g'], p['ln1_b'])
        f1 = jax.nn.relu(mm(h, p['w1']) + p['b1'])
        f2 = mm(f1, p['w2']) + p['b2']
        x = ln(h + f2, p['ln2_g'], p['ln2_b'])
        outs.append(x[:, None])
    return jnp.concatenate(outs, axis=1)                 # (B, L, S, D)


# ------------------------------ main ------------------------------ #

if __name__ == "__main__":
    # scaled-down config consistent with the module (d_model, heads, memory, d_ff, layers)
    B, S = 8, 8
    D_MODEL, NUM_HEAD, NUM_MEMORY, D_FF, NUM_LAYER = 128, 4, 8, 256, 3

    key = jax.random.PRNGKey(0)
    k_feat, k_params = jax.random.split(key)
    att_feats = jax.random.normal(k_feat, (B, S, D_MODEL), jnp.float32)
    # att_masks: 1 = valid token, 0 = padding
    att_masks = jnp.ones((B, S), jnp.float32)
    att_masks = att_masks.at[1, S - 3:].set(0.0).at[5, S - 1:].set(0.0)

    layer_keys = jax.random.split(k_params, NUM_LAYER)
    layer_params = [init_layer_params(k, D_MODEL, NUM_HEAD, NUM_MEMORY, D_FF)
                    for k in layer_keys]

    ret = memory_augmented_encoder_forward(
        att_feats, att_masks, layer_params,
        num_head=NUM_HEAD, num_memory=NUM_MEMORY, batch_block=4)
    outs = jax.block_until_ready(ret['ATT_FEATS'])       # (B, NUM_LAYER, S, D_MODEL)

    ref = _ref_forward(att_feats, att_masks, layer_params,
                       num_head=NUM_HEAD, num_memory=NUM_MEMORY)

    assert outs.shape == (B, NUM_LAYER, S, D_MODEL)
    assert ret['ATT_MASKS'].shape == (B, S)
    err = float(jnp.max(jnp.abs(outs - ref)))
    assert err < 2e-2, f"mismatch vs reference: max abs err = {err}"
    print("KERNEL_OK")
</pallas_src>

<mosaic_0001>
module attributes {stable_mosaic.version = 11 : i64} {
  func.func @fused_encoder_kernel(%arg0: i32, %arg1: i32, %arg2: memref<32x128xf32, #tpu.memory_space<vmem>>, %arg3: memref<1x4x8xf32, #tpu.memory_space<vmem>>, %arg4: memref<1x128x384xbf16, #tpu.memory_space<vmem>>, %arg5: memref<1x128x128xbf16, #tpu.memory_space<vmem>>, %arg6: memref<1x4x32x8xbf16, #tpu.memory_space<vmem>>, %arg7: memref<1x4x8x32xbf16, #tpu.memory_space<vmem>>, %arg8: memref<1x128x256xbf16, #tpu.memory_space<vmem>>, %arg9: memref<1x256x128xbf16, #tpu.memory_space<vmem>>, %arg10: memref<1x1x384xf32, #tpu.memory_space<vmem>>, %arg11: memref<1x6x128xf32, #tpu.memory_space<vmem>>, %arg12: memref<1x1x256xf32, #tpu.memory_space<vmem>>, %arg13: memref<4x1x8x128xf32, #tpu.memory_space<vmem>>, %arg14: memref<32x128xf32, #tpu.memory_space<vmem>>) attributes {dimension_semantics = [#tpu.dimension_semantics<parallel>, #tpu.dimension_semantics<arbitrary>], iteration_bounds = array<i64: 2, 3>, scalar_prefetch = 0 : i64, scratch_operands = 1 : i64, tpu.core_type = #tpu.core_type<tc>, window_params = [{transform_indices = @transform_0, window_bounds = array<i64: 32, 128>}, {transform_indices = @transform_1, window_bounds = array<i64: 1, 4, 8>}, {transform_indices = @transform_2, window_bounds = array<i64: 1, 128, 384>}, {transform_indices = @transform_3, window_bounds = array<i64: 1, 128, 128>}, {transform_indices = @transform_4, window_bounds = array<i64: 1, 4, 32, 8>}, {transform_indices = @transform_5, window_bounds = array<i64: 1, 4, 8, 32>}, {transform_indices = @transform_6, window_bounds = array<i64: 1, 128, 256>}, {transform_indices = @transform_7, window_bounds = array<i64: 1, 256, 128>}, {transform_indices = @transform_8, window_bounds = array<i64: 1, 1, 384>}, {transform_indices = @transform_9, window_bounds = array<i64: 1, 6, 128>}, {transform_indices = @transform_10, window_bounds = array<i64: 1, 1, 256>}, {transform_indices = @transform_11, window_bounds = array<i64: 4, 1, 8, 128>}]} {
    %c0_i32 = arith.constant 0 : i32
    %0 = arith.cmpi eq, %arg1, %c0_i32 : i32
    %1 = arith.extui %0 : i1 to i32
    %c0_i32_0 = arith.constant 0 : i32
    %2 = arith.cmpi ne, %1, %c0_i32_0 : i32
    scf.if %2 {
      %c0_107 = arith.constant 0 : index
      %c0_108 = arith.constant 0 : index
      %280 = vector.load %arg2[%c0_107, %c0_108] : memref<32x128xf32, #tpu.memory_space<vmem>>, vector<32x128xf32>
      %c0_109 = arith.constant 0 : index
      %c0_110 = arith.constant 0 : index
      %281 = vector.load %arg14[%c0_109, %c0_110] : memref<32x128xf32, #tpu.memory_space<vmem>>, vector<32x128xf32>
      tpu.vector_store %arg14[%c0_109, %c0_110], %280 {strides = array<i32>} : memref<32x128xf32, #tpu.memory_space<vmem>>, vector<32x128xf32>,
    } else {
    }
    %c0 = arith.constant 0 : index
    %c0_1 = arith.constant 0 : index
    %3 = vector.load %arg14[%c0, %c0_1] : memref<32x128xf32, #tpu.memory_space<vmem>>, vector<32x128xf32>
    %4 = arith.truncf %3 : vector<32x128xf32> to vector<32x128xbf16>
    %c0_2 = arith.constant 0 : index
    %c0_3 = arith.constant 0 : index
    %c0_4 = arith.constant 0 : index
    %5 = vector.load %arg4[%c0_2, %c0_3, %c0_4] : memref<1x128x384xbf16, #tpu.memory_space<vmem>>, vector<1x128x384xbf16>
    %6 = vector.shape_cast %5 : vector<1x128x384xbf16> to vector<128x384xbf16>
    %cst = arith.constant dense<0.000000e+00> : vector<32x384xf32>
    %7 = tpu.matmul %4, %6, %cst {dimension_numbers = #tpu.dot_dimension_numbers<[1], [0], [0], [1], [0, 0, 1, 1], [], []>} : vector<32x128xbf16>, vector<128x384xbf16>, vector<32x384xf32> -> vector<32x384xf32>
    %c0_5 = arith.constant 0 : index
    %c0_6 = arith.constant 0 : index
    %c0_7 = arith.constant 0 : index
    %8 = vector.load %arg10[%c0_5, %c0_6, %c0_7] : memref<1x1x384xf32, #tpu.memory_space<vmem>>, vector<1x1x384xf32>
    %9 = vector.shape_cast %8 : vector<1x1x384xf32> to vector<1x384xf32>
    %10 = vector.broadcast %9 : vector<1x384xf32> to vector<32x384xf32>
    %11 = arith.addf %7, %10 : vector<32x384xf32>
    %12 = vector.extract_strided_slice %11 {offsets = [0, 0], sizes = [32, 128], strides = [1, 1]} : vector<32x384xf32> to vector<32x128xf32>
    %13 = vector.extract_strided_slice %11 {offsets = [0, 128], sizes = [32, 128], strides = [1, 1]} : vector<32x384xf32> to vector<32x128xf32>
    %14 = vector.extract_strided_slice %11 {offsets = [0, 256], sizes = [32, 128], strides = [1, 1]} : vector<32x384xf32> to vector<32x128xf32>
    %c0_8 = arith.constant 0 : index
    %c0_9 = arith.constant 0 : index
    %c0_10 = arith.constant 0 : index
    %15 = vector.load %arg3[%c0_8, %c0_9, %c0_10] : memref<1x4x8xf32, #tpu.memory_space<vmem>>, vector<1x4x8xf32>
    %16 = vector.shape_cast %15 : vector<1x4x8xf32> to vector<4x8xf32>
    %17 = vector.shape_cast %16 : vector<4x8xf32> to vector<4x1x8xf32>
    %18 = vector.extract_strided_slice %12 {offsets = [0, 0], sizes = [32, 32], strides = [1, 1]} : vector<32x128xf32> to vector<32x32xf32>
    %19 = arith.truncf %18 : vector<32x32xf32> to vector<32x32xbf16>
    %20 = vector.extract_strided_slice %13 {offsets = [0, 0], sizes = [32, 32], strides = [1, 1]} : vector<32x128xf32> to vector<32x32xf32>
    %21 = arith.truncf %20 : vector<32x32xf32> to vector<32x32xbf16>
    %22 = vector.extract_strided_slice %14 {offsets = [0, 0], sizes = [32, 32], strides = [1, 1]} : vector<32x128xf32> to vector<32x32xf32>
    %23 = arith.truncf %22 : vector<32x32xf32> to vector<32x32xbf16>
    %24 = vector.shape_cast %19 : vector<32x32xbf16> to vector<4x8x32xbf16>
    %25 = vector.shape_cast %21 : vector<32x32xbf16> to vector<4x8x32xbf16>
    "tpu.trace_start"() <{level = 10 : i32, message = "bqd,bkd->bqk"}> : () -> ()
    %cst_11 = arith.constant dense<0.000000e+00> : vector<4x8x8xf32>
    %26 = tpu.matmul %24, %25, %cst_11 {dimension_numbers = #tpu.dot_dimension_numbers<[2], [2], [1], [1], [0, 0, 0, 1, 1, 1], [0], [0]>} : vector<4x8x32xbf16>, vector<4x8x32xbf16>, vector<4x8x8xf32> -> vector<4x8x8xf32>
    "tpu.trace_stop"() : () -> ()
    %27 = vector.broadcast %17 : vector<4x1x8xf32> to vector<4x8x8xf32>
    %28 = arith.addf %26, %27 : vector<4x8x8xf32>
    %c0_12 = arith.constant 0 : index
    %c0_13 = arith.constant 0 : index
    %c0_14 = arith.constant 0 : index
    %c0_15 = arith.constant 0 : index
    %29 = vector.load %arg6[%c0_12, %c0_13, %c0_14, %c0_15] : memref<1x4x32x8xbf16, #tpu.memory_space<vmem>>, vector<1x1x32x8xbf16>
    %30 = vector.shape_cast %29 : vector<1x1x32x8xbf16> to vector<32x8xbf16>
    %cst_16 = arith.constant dense<0.000000e+00> : vector<32x8xf32>
    %31 = tpu.matmul %19, %30, %cst_16 {dimension_numbers = #tpu.dot_dimension_numbers<[1], [0], [0], [1], [0, 0, 1, 1], [], []>} : vector<32x32xbf16>, vector<32x8xbf16>, vector<32x8xf32> -> vector<32x8xf32>
    %32 = vector.shape_cast %31 : vector<32x8xf32> to vector<4x8x8xf32>
    %cst_17 = arith.constant dense<0xFF800000> : vector<4x8xf32>
    %33 = vector.multi_reduction <maximumf>, %28, %cst_17 [2] : vector<4x8x8xf32> to vector<4x8xf32>
    %34 = vector.shape_cast %33 : vector<4x8xf32> to vector<4x8x1xf32>
    %cst_18 = arith.constant dense<0xFF800000> : vector<4x8xf32>
    %35 = vector.multi_reduction <maximumf>, %32, %cst_18 [2] : vector<4x8x8xf32> to vector<4x8xf32>
    %36 = vector.shape_cast %35 : vector<4x8xf32> to vector<4x8x1xf32>
    %37 = arith.maximumf %34, %36 : vector<4x8x1xf32>
    %38 = vector.broadcast %37 : vector<4x8x1xf32> to vector<4x8x8xf32>
    %39 = arith.subf %28, %38 : vector<4x8x8xf32>
    %40 = math.exp %39 : vector<4x8x8xf32>
    %41 = vector.broadcast %37 : vector<4x8x1xf32> to vector<4x8x8xf32>
    %42 = arith.subf %32, %41 : vector<4x8x8xf32>
    %43 = math.exp %42 : vector<4x8x8xf32>
    %cst_19 = arith.constant dense<0.000000e+00> : vector<4x8xf32>
    %44 = vector.multi_reduction <add>, %40, %cst_19 [2] : vector<4x8x8xf32> to vector<4x8xf32>
    %45 = vector.shape_cast %44 : vector<4x8xf32> to vector<4x8x1xf32>
    %cst_20 = arith.constant dense<0.000000e+00> : vector<4x8xf32>
    %46 = vector.multi_reduction <add>, %43, %cst_20 [2] : vector<4x8x8xf32> to vector<4x8xf32>
    %47 = vector.shape_cast %46 : vector<4x8xf32> to vector<4x8x1xf32>
    %48 = arith.addf %45, %47 : vector<4x8x1xf32>
    %49 = arith.truncf %40 : vector<4x8x8xf32> to vector<4x8x8xbf16>
    %50 = vector.shape_cast %23 : vector<32x32xbf16> to vector<4x8x32xbf16>
    "tpu.trace_start"() <{level = 10 : i32, message = "bqk,bkd->bqd"}> : () -> ()
    %cst_21 = arith.constant dense<0.000000e+00> : vector<4x8x32xf32>
    %51 = tpu.matmul %49, %50, %cst_21 {dimension_numbers = #tpu.dot_dimension_numbers<[2], [1], [1], [2], [0, 0, 0, 1, 1, 2], [0], [0]>} : vector<4x8x8xbf16>, vector<4x8x32xbf16>, vector<4x8x32xf32> -> vector<4x8x32xf32>
    "tpu.trace_stop"() : () -> ()
    %52 = vector.shape_cast %43 : vector<4x8x8xf32> to vector<32x8xf32>
    %53 = arith.truncf %52 : vector<32x8xf32> to vector<32x8xbf16>
    %c0_22 = arith.constant 0 : index
    %c0_23 = arith.constant 0 : index
    %c0_24 = arith.constant 0 : index
    %c0_25 = arith.constant 0 : index
    %54 = vector.load %arg7[%c0_22, %c0_23, %c0_24, %c0_25] : memref<1x4x8x32xbf16, #tpu.memory_space<vmem>>, vector<1x1x8x32xbf16>
    %55 = vector.shape_cast %54 : vector<1x1x8x32xbf16> to vector<8x32xbf16>
    %cst_26 = arith.constant dense<0.000000e+00> : vector<32x32xf32>
    %56 = tpu.matmul %53, %55, %cst_26 {dimension_numbers = #tpu.dot_dimension_numbers<[1], [0], [0], [1], [0, 0, 1, 1], [], []>} : vector<32x8xbf16>, vector<8x32xbf16>, vector<32x32xf32> -> vector<32x32xf32>
    %57 = vector.shape_cast %56 : vector<32x32xf32> to vector<4x8x32xf32>
    %58 = arith.addf %51, %57 : vector<4x8x32xf32>
    %59 = tpu.reciprocal %48 {approx = true} : vector<4x8x1xf32> -> vector<4x8x1xf32>
    %60 = vector.broadcast %59 : vector<4x8x1xf32> to vector<4x8x32xf32>
    %61 = arith.mulf %58, %60 : vector<4x8x32xf32>
    %62 = vector.shape_cast %61 : vector<4x8x32xf32> to vector<32x32xf32>
    %63 = vector.extract_strided_slice %12 {offsets = [0, 32], sizes = [32, 32], strides = [1, 1]} : vector<32x128xf32> to vector<32x32xf32>
    %64 = arith.truncf %63 : vector<32x32xf32> to vector<32x32xbf16>
    %65 = vector.extract_strided_slice %13 {offsets = [0, 32], sizes = [32, 32], strides = [1, 1]} : vector<32x128xf32> to vector<32x32xf32>
    %66 = arith.truncf %65 : vector<32x32xf32> to vector<32x32xbf16>
    %67 = vector.extract_strided_slice %14 {offsets = [0, 32], sizes = [32, 32], strides = [1, 1]} : vector<32x128xf32> to vector<32x32xf32>
    %68 = arith.truncf %67 : vector<32x32xf32> to vector<32x32xbf16>
    %69 = vector.shape_cast %64 : vector<32x32xbf16> to vector<4x8x32xbf16>
    %70 = vector.shape_cast %66 : vector<32x32xbf16> to vector<4x8x32xbf16>
    "tpu.trace_start"() <{level = 10 : i32, message = "bqd,bkd->bqk"}> : () -> ()
    %cst_27 = arith.constant dense<0.000000e+00> : vector<4x8x8xf32>
    %71 = tpu.matmul %69, %70, %cst_27 {dimension_numbers = #tpu.dot_dimension_numbers<[2], [2], [1], [1], [0, 0, 0, 1, 1, 1], [0], [0]>} : vector<4x8x32xbf16>, vector<4x8x32xbf16>, vector<4x8x8xf32> -> vector<4x8x8xf32>
    "tpu.trace_stop"() : () -> ()
    %72 = vector.broadcast %17 : vector<4x1x8xf32> to vector<4x8x8xf32>
    %73 = arith.addf %71, %72 : vector<4x8x8xf32>
    %c0_28 = arith.constant 0 : index
    %c1 = arith.constant 1 : index
    %c0_29 = arith.constant 0 : index
    %c0_30 = arith.constant 0 : index
    %74 = vector.load %arg6[%c0_28, %c1, %c0_29, %c0_30] : memref<1x4x32x8xbf16, #tpu.memory_space<vmem>>, vector<1x1x32x8xbf16>
    %75 = vector.shape_cast %74 : vector<1x1x32x8xbf16> to vector<32x8xbf16>
    %cst_31 = arith.constant dense<0.000000e+00> : vector<32x8xf32>
    %76 = tpu.matmul %64, %75, %cst_31 {dimension_numbers = #tpu.dot_dimension_numbers<[1], [0], [0], [1], [0, 0, 1, 1], [], []>} : vector<32x32xbf16>, vector<32x8xbf16>, vector<32x8xf32> -> vector<32x8xf32>
    %77 = vector.shape_cast %76 : vector<32x8xf32> to vector<4x8x8xf32>
    %cst_32 = arith.constant dense<0xFF800000> : vector<4x8xf32>
    %78 = vector.multi_reduction <maximumf>, %73, %cst_32 [2] : vector<4x8x8xf32> to vector<4x8xf32>
    %79 = vector.shape_cast %78 : vector<4x8xf32> to vector<4x8x1xf32>
    %cst_33 = arith.constant dense<0xFF800000> : vector<4x8xf32>
    %80 = vector.multi_reduction <maximumf>, %77, %cst_33 [2] : vector<4x8x8xf32> to vector<4x8xf32>
    %81 = vector.shape_cast %80 : vector<4x8xf32> to vector<4x8x1xf32>
    %82 = arith.maximumf %79, %81 : vector<4x8x1xf32>
    %83 = vector.broadcast %82 : vector<4x8x1xf32> to vector<4x8x8xf32>
    %84 = arith.subf %73, %83 : vector<4x8x8xf32>
    %85 = math.exp %84 : vector<4x8x8xf32>
    %86 = vector.broadcast %82 : vector<4x8x1xf32> to vector<4x8x8xf32>
    %87 = arith.subf %77, %86 : vector<4x8x8xf32>
    %88 = math.exp %87 : vector<4x8x8xf32>
    %cst_34 = arith.constant dense<0.000000e+00> : vector<4x8xf32>
    %89 = vector.multi_reduction <add>, %85, %cst_34 [2] : vector<4x8x8xf32> to vector<4x8xf32>
    %90 = vector.shape_cast %89 : vector<4x8xf32> to vector<4x8x1xf32>
    %cst_35 = arith.constant dense<0.000000e+00> : vector<4x8xf32>
    %91 = vector.multi_reduction <add>, %88, %cst_35 [2] : vector<4x8x8xf32> to vector<4x8xf32>
    %92 = vector.shape_cast %91 : vector<4x8xf32> to vector<4x8x1xf32>
    %93 = arith.addf %90, %92 : vector<4x8x1xf32>
    %94 = arith.truncf %85 : vector<4x8x8xf32> to vector<4x8x8xbf16>
    %95 = vector.shape_cast %68 : vector<32x32xbf16> to vector<4x8x32xbf16>
    "tpu.trace_start"() <{level = 10 : i32, message = "bqk,bkd->bqd"}> : () -> ()
    %cst_36 = arith.constant dense<0.000000e+00> : vector<4x8x32xf32>
    %96 = tpu.matmul %94, %95, %cst_36 {dimension_numbers = #tpu.dot_dimension_numbers<[2], [1], [1], [2], [0, 0, 0, 1, 1, 2], [0], [0]>} : vector<4x8x8xbf16>, vector<4x8x32xbf16>, vector<4x8x32xf32> -> vector<4x8x32xf32>
    "tpu.trace_stop"() : () -> ()
    %97 = vector.shape_cast %88 : vector<4x8x8xf32> to vector<32x8xf32>
    %98 = arith.truncf %97 : vector<32x8xf32> to vector<32x8xbf16>
    %c0_37 = arith.constant 0 : index
    %c1_38 = arith.constant 1 : index
    %c0_39 = arith.constant 0 : index
    %c0_40 = arith.constant 0 : index
    %99 = vector.load %arg7[%c0_37, %c1_38, %c0_39, %c0_40] : memref<1x4x8x32xbf16, #tpu.memory_space<vmem>>, vector<1x1x8x32xbf16>
    %100 = vector.shape_cast %99 : vector<1x1x8x32xbf16> to vector<8x32xbf16>
    %cst_41 = arith.constant dense<0.000000e+00> : vector<32x32xf32>
    %101 = tpu.matmul %98, %100, %cst_41 {dimension_numbers = #tpu.dot_dimension_numbers<[1], [0], [0], [1], [0, 0, 1, 1], [], []>} : vector<32x8xbf16>, vector<8x32xbf16>, vector<32x32xf32> -> vector<32x32xf32>
    %102 = vector.shape_cast %101 : vector<32x32xf32> to vector<4x8x32xf32>
    %103 = arith.addf %96, %102 : vector<4x8x32xf32>
    %104 = tpu.reciprocal %93 {approx = true} : vector<4x8x1xf32> -> vector<4x8x1xf32>
    %105 = vector.broadcast %104 : vector<4x8x1xf32> to vector<4x8x32xf32>
    %106 = arith.mulf %103, %105 : vector<4x8x32xf32>
    %107 = vector.shape_cast %106 : vector<4x8x32xf32> to vector<32x32xf32>
    %108 = vector.extract_strided_slice %12 {offsets = [0, 64], sizes = [32, 32], strides = [1, 1]} : vector<32x128xf32> to vector<32x32xf32>
    %109 = arith.truncf %108 : vector<32x32xf32> to vector<32x32xbf16>
    %110 = vector.extract_strided_slice %13 {offsets = [0, 64], sizes = [32, 32], strides = [1, 1]} : vector<32x128xf32> to vector<32x32xf32>
    %111 = arith.truncf %110 : vector<32x32xf32> to vector<32x32xbf16>
    %112 = vector.extract_strided_slice %14 {offsets = [0, 64], sizes = [32, 32], strides = [1, 1]} : vector<32x128xf32> to vector<32x32xf32>
    %113 = arith.truncf %112 : vector<32x32xf32> to vector<32x32xbf16>
    %114 = vector.shape_cast %109 : vector<32x32xbf16> to vector<4x8x32xbf16>
    %115 = vector.shape_cast %111 : vector<32x32xbf16> to vector<4x8x32xbf16>
    "tpu.trace_start"() <{level = 10 : i32, message = "bqd,bkd->bqk"}> : () -> ()
    %cst_42 = arith.constant dense<0.000000e+00> : vector<4x8x8xf32>
    %116 = tpu.matmul %114, %115, %cst_42 {dimension_numbers = #tpu.dot_dimension_numbers<[2], [2], [1], [1], [0, 0, 0, 1, 1, 1], [0], [0]>} : vector<4x8x32xbf16>, vector<4x8x32xbf16>, vector<4x8x8xf32> -> vector<4x8x8xf32>
    "tpu.trace_stop"() : () -> ()
    %117 = vector.broadcast %17 : vector<4x1x8xf32> to vector<4x8x8xf32>
    %118 = arith.addf %116, %117 : vector<4x8x8xf32>
    %c0_43 = arith.constant 0 : index
    %c2 = arith.constant 2 : index
    %c0_44 = arith.constant 0 : index
    %c0_45 = arith.constant 0 : index
    %119 = vector.load %arg6[%c0_43, %c2, %c0_44, %c0_45] : memref<1x4x32x8xbf16, #tpu.memory_space<vmem>>, vector<1x1x32x8xbf16>
    %120 = vector.shape_cast %119 : vector<1x1x32x8xbf16> to vector<32x8xbf16>
    %cst_46 = arith.constant dense<0.000000e+00> : vector<32x8xf32>
    %121 = tpu.matmul %109, %120, %cst_46 {dimension_numbers = #tpu.dot_dimension_numbers<[1], [0], [0], [1], [0, 0, 1, 1], [], []>} : vector<32x32xbf16>, vector<32x8xbf16>, vector<32x8xf32> -> vector<32x8xf32>
    %122 = vector.shape_cast %121 : vector<32x8xf32> to vector<4x8x8xf32>
    %cst_47 = arith.constant dense<0xFF800000> : vector<4x8xf32>
    %123 = vector.multi_reduction <maximumf>, %118, %cst_47 [2] : vector<4x8x8xf32> to vector<4x8xf32>
    %124 = vector.shape_cast %123 : vector<4x8xf32> to vector<4x8x1xf32>
    %cst_48 = arith.constant dense<0xFF800000> : vector<4x8xf32>
    %125 = vector.multi_reduction <maximumf>, %122, %cst_48 [2] : vector<4x8x8xf32> to vector<4x8xf32>
    %126 = vector.shape_cast %125 : vector<4x8xf32> to vector<4x8x1xf32>
    %127 = arith.maximumf %124, %126 : vector<4x8x1xf32>
    %128 = vector.broadcast %127 : vector<4x8x1xf32> to vector<4x8x8xf32>
    %129 = arith.subf %118, %128 : vector<4x8x8xf32>
    %130 = math.exp %129 : vector<4x8x8xf32>
    %131 = vector.broadcast %127 : vector<4x8x1xf32> to vector<4x8x8xf32>
    %132 = arith.subf %122, %131 : vector<4x8x8xf32>
    %133 = math.exp %132 : vector<4x8x8xf32>
    %cst_49 = arith.constant dense<0.000000e+00> : vector<4x8xf32>
    %134 = vector.multi_reduction <add>, %130, %cst_49 [2] : vector<4x8x8xf32> to vector<4x8xf32>
    %135 = vector.shape_cast %134 : vector<4x8xf32> to vector<4x8x1xf32>
    %cst_50 = arith.constant dense<0.000000e+00> : vector<4x8xf32>
    %136 = vector.multi_reduction <add>, %133, %cst_50 [2] : vector<4x8x8xf32> to vector<4x8xf32>
    %137 = vector.shape_cast %136 : vector<4x8xf32> to vector<4x8x1xf32>
    %138 = arith.addf %135, %137 : vector<4x8x1xf32>
    %139 = arith.truncf %130 : vector<4x8x8xf32> to vector<4x8x8xbf16>
    %140 = vector.shape_cast %113 : vector<32x32xbf16> to vector<4x8x32xbf16>
    "tpu.trace_start"() <{level = 10 : i32, message = "bqk,bkd->bqd"}> : () -> ()
    %cst_51 = arith.constant dense<0.000000e+00> : vector<4x8x32xf32>
    %141 = tpu.matmul %139, %140, %cst_51 {dimension_numbers = #tpu.dot_dimension_numbers<[2], [1], [1], [2], [0, 0, 0, 1, 1, 2], [0], [0]>} : vector<4x8x8xbf16>, vector<4x8x32xbf16>, vector<4x8x32xf32> -> vector<4x8x32xf32>
    "tpu.trace_stop"() : () -> ()
    %142 = vector.shape_cast %133 : vector<4x8x8xf32> to vector<32x8xf32>
    %143 = arith.truncf %142 : vector<32x8xf32> to vector<32x8xbf16>
    %c0_52 = arith.constant 0 : index
    %c2_53 = arith.constant 2 : index
    %c0_54 = arith.constant 0 : index
    %c0_55 = arith.constant 0 : index
    %144 = vector.load %arg7[%c0_52, %c2_53, %c0_54, %c0_55] : memref<1x4x8x32xbf16, #tpu.memory_space<vmem>>, vector<1x1x8x32xbf16>
    %145 = vector.shape_cast %144 : vector<1x1x8x32xbf16> to vector<8x32xbf16>
    %cst_56 = arith.constant dense<0.000000e+00> : vector<32x32xf32>
    %146 = tpu.matmul %143, %145, %cst_56 {dimension_numbers = #tpu.dot_dimension_numbers<[1], [0], [0], [1], [0, 0, 1, 1], [], []>} : vector<32x8xbf16>, vector<8x32xbf16>, vector<32x32xf32> -> vector<32x32xf32>
    %147 = vector.shape_cast %146 : vector<32x32xf32> to vector<4x8x32xf32>
    %148 = arith.addf %141, %147 : vector<4x8x32xf32>
    %149 = tpu.reciprocal %138 {approx = true} : vector<4x8x1xf32> -> vector<4x8x1xf32>
    %150 = vector.broadcast %149 : vector<4x8x1xf32> to vector<4x8x32xf32>
    %151 = arith.mulf %148, %150 : vector<4x8x32xf32>
    %152 = vector.shape_cast %151 : vector<4x8x32xf32> to vector<32x32xf32>
    %153 = vector.extract_strided_slice %12 {offsets = [0, 96], sizes = [32, 32], strides = [1, 1]} : vector<32x128xf32> to vector<32x32xf32>
    %154 = arith.truncf %153 : vector<32x32xf32> to vector<32x32xbf16>
    %155 = vector.extract_strided_slice %13 {offsets = [0, 96], sizes = [32, 32], strides = [1, 1]} : vector<32x128xf32> to vector<32x32xf32>
    %156 = arith.truncf %155 : vector<32x32xf32> to vector<32x32xbf16>
    %157 = vector.extract_strided_slice %14 {offsets = [0, 96], sizes = [32, 32], strides = [1, 1]} : vector<32x128xf32> to vector<32x32xf32>
    %158 = arith.truncf %157 : vector<32x32xf32> to vector<32x32xbf16>
    %159 = vector.shape_cast %154 : vector<32x32xbf16> to vector<4x8x32xbf16>
    %160 = vector.shape_cast %156 : vector<32x32xbf16> to vector<4x8x32xbf16>
    "tpu.trace_start"() <{level = 10 : i32, message = "bqd,bkd->bqk"}> : () -> ()
    %cst_57 = arith.constant dense<0.000000e+00> : vector<4x8x8xf32>
    %161 = tpu.matmul %159, %160, %cst_57 {dimension_numbers = #tpu.dot_dimension_numbers<[2], [2], [1], [1], [0, 0, 0, 1, 1, 1], [0], [0]>} : vector<4x8x32xbf16>, vector<4x8x32xbf16>, vector<4x8x8xf32> -> vector<4x8x8xf32>
    "tpu.trace_stop"() : () -> ()
    %162 = vector.broadcast %17 : vector<4x1x8xf32> to vector<4x8x8xf32>
    %163 = arith.addf %161, %162 : vector<4x8x8xf32>
    %c0_58 = arith.constant 0 : index
    %c3 = arith.constant 3 : index
    %c0_59 = arith.constant 0 : index
    %c0_60 = arith.constant 0 : index
    %164 = vector.load %arg6[%c0_58, %c3, %c0_59, %c0_60] : memref<1x4x32x8xbf16, #tpu.memory_space<vmem>>, vector<1x1x32x8xbf16>
    %165 = vector.shape_cast %164 : vector<1x1x32x8xbf16> to vector<32x8xbf16>
    %cst_61 = arith.constant dense<0.000000e+00> : vector<32x8xf32>
    %166 = tpu.matmul %154, %165, %cst_61 {dimension_numbers = #tpu.dot_dimension_numbers<[1], [0], [0], [1], [0, 0, 1, 1], [], []>} : vector<32x32xbf16>, vector<32x8xbf16>, vector<32x8xf32> -> vector<32x8xf32>
    %167 = vector.shape_cast %166 : vector<32x8xf32> to vector<4x8x8xf32>
    %cst_62 = arith.constant dense<0xFF800000> : vector<4x8xf32>
    %168 = vector.multi_reduction <maximumf>, %163, %cst_62 [2] : vector<4x8x8xf32> to vector<4x8xf32>
    %169 = vector.shape_cast %168 : vector<4x8xf32> to vector<4x8x1xf32>
    %cst_63 = arith.constant dense<0xFF800000> : vector<4x8xf32>
    %170 = vector.multi_reduction <maximumf>, %167, %cst_63 [2] : vector<4x8x8xf32> to vector<4x8xf32>
    %171 = vector.shape_cast %170 : vector<4x8xf32> to vector<4x8x1xf32>
    %172 = arith.maximumf %169, %171 : vector<4x8x1xf32>
    %173 = vector.broadcast %172 : vector<4x8x1xf32> to vector<4x8x8xf32>
    %174 = arith.subf %163, %173 : vector<4x8x8xf32>
    %175 = math.exp %174 : vector<4x8x8xf32>
    %176 = vector.broadcast %172 : vector<4x8x1xf32> to vector<4x8x8xf32>
    %177 = arith.subf %167, %176 : vector<4x8x8xf32>
    %178 = math.exp %177 : vector<4x8x8xf32>
    %cst_64 = arith.constant dense<0.000000e+00> : vector<4x8xf32>
    %179 = vector.multi_reduction <add>, %175, %cst_64 [2] : vector<4x8x8xf32> to vector<4x8xf32>
    %180 = vector.shape_cast %179 : vector<4x8xf32> to vector<4x8x1xf32>
    %cst_65 = arith.constant dense<0.000000e+00> : vector<4x8xf32>
    %181 = vector.multi_reduction <add>, %178, %cst_65 [2] : vector<4x8x8xf32> to vector<4x8xf32>
    %182 = vector.shape_cast %181 : vector<4x8xf32> to vector<4x8x1xf32>
    %183 = arith.addf %180, %182 : vector<4x8x1xf32>
    %184 = arith.truncf %175 : vector<4x8x8xf32> to vector<4x8x8xbf16>
    %185 = vector.shape_cast %158 : vector<32x32xbf16> to vector<4x8x32xbf16>
    "tpu.trace_start"() <{level = 10 : i32, message = "bqk,bkd->bqd"}> : () -> ()
    %cst_66 = arith.constant dense<0.000000e+00> : vector<4x8x32xf32>
    %186 = tpu.matmul %184, %185, %cst_66 {dimension_numbers = #tpu.dot_dimension_numbers<[2], [1], [1], [2], [0, 0, 0, 1, 1, 2], [0], [0]>} : vector<4x8x8xbf16>, vector<4x8x32xbf16>, vector<4x8x32xf32> -> vector<4x8x32xf32>
    "tpu.trace_stop"() : () -> ()
    %187 = vector.shape_cast %178 : vector<4x8x8xf32> to vector<32x8xf32>
    %188 = arith.truncf %187 : vector<32x8xf32> to vector<32x8xbf16>
    %c0_67 = arith.constant 0 : index
    %c3_68 = arith.constant 3 : index
    %c0_69 = arith.constant 0 : index
    %c0_70 = arith.constant 0 : index
    %189 = vector.load %arg7[%c0_67, %c3_68, %c0_69, %c0_70] : memref<1x4x8x32xbf16, #tpu.memory_space<vmem>>, vector<1x1x8x32xbf16>
    %190 = vector.shape_cast %189 : vector<1x1x8x32xbf16> to vector<8x32xbf16>
    %cst_71 = arith.constant dense<0.000000e+00> : vector<32x32xf32>
    %191 = tpu.matmul %188, %190, %cst_71 {dimension_numbers = #tpu.dot_dimension_numbers<[1], [0], [0], [1], [0, 0, 1, 1], [], []>} : vector<32x8xbf16>, vector<8x32xbf16>, vector<32x32xf32> -> vector<32x32xf32>
    %192 = vector.shape_cast %191 : vector<32x32xf32> to vector<4x8x32xf32>
    %193 = arith.addf %186, %192 : vector<4x8x32xf32>
    %194 = tpu.reciprocal %183 {approx = true} : vector<4x8x1xf32> -> vector<4x8x1xf32>
    %195 = vector.broadcast %194 : vector<4x8x1xf32> to vector<4x8x32xf32>
    %196 = arith.mulf %193, %195 : vector<4x8x32xf32>
    %197 = vector.shape_cast %196 : vector<4x8x32xf32> to vector<32x32xf32>
    %c0_72 = arith.constant 0 : index
    %c0_73 = arith.constant 0 : index
    %c0_74 = arith.constant 0 : index
    %198 = vector.load %arg11[%c0_72, %c0_73, %c0_74] : memref<1x6x128xf32, #tpu.memory_space<vmem>>, vector<1x6x128xf32>
    %199 = vector.shape_cast %198 : vector<1x6x128xf32> to vector<6x128xf32>
    %200 = tpu.concatenate %62, %107, %152, %197 in 1 : vector<32x32xf32>, vector<32x32xf32>, vector<32x32xf32>, vector<32x32xf32> -> vector<32x128xf32>
    %201 = arith.truncf %200 : vector<32x128xf32> to vector<32x128xbf16>
    %c0_75 = arith.constant 0 : index
    %c0_76 = arith.constant 0 : index
    %c0_77 = arith.constant 0 : index
    %202 = vector.load %arg5[%c0_75, %c0_76, %c0_77] : memref<1x128x128xbf16, #tpu.memory_space<vmem>>, vector<1x128x128xbf16>
    %203 = vector.shape_cast %202 : vector<1x128x128xbf16> to vector<128x128xbf16>
    %cst_78 = arith.constant dense<0.000000e+00> : vector<32x128xf32>
    %204 = tpu.matmul %201, %203, %cst_78 {dimension_numbers = #tpu.dot_dimension_numbers<[1], [0], [0], [1], [0, 0, 1, 1], [], []>} : vector<32x128xbf16>, vector<128x128xbf16>, vector<32x128xf32> -> vector<32x128xf32>
    %205 = vector.extract_strided_slice %199 {offsets = [0, 0], sizes = [1, 128], strides = [1, 1]} : vector<6x128xf32> to vector<1x128xf32>
    %206 = vector.broadcast %205 : vector<1x128xf32> to vector<32x128xf32>
    %207 = arith.addf %204, %206 : vector<32x128xf32>
    %208 = arith.addf %3, %207 : vector<32x128xf32>
    %209 = vector.extract_strided_slice %199 {offsets = [1, 0], sizes = [1, 128], strides = [1, 1]} : vector<6x128xf32> to vector<1x128xf32>
    %210 = vector.extract_strided_slice %199 {offsets = [2, 0], sizes = [1, 128], strides = [1, 1]} : vector<6x128xf32> to vector<1x128xf32>
    %cst_79 = arith.constant dense<0.000000e+00> : vector<32xf32>
    %211 = vector.multi_reduction <add>, %208, %cst_79 [1] : vector<32x128xf32> to vector<32xf32>
    %212 = vector.shape_cast %211 : vector<32xf32> to vector<32x1xf32>
    %cst_80 = arith.constant 1.280000e+02 : f32
    %213 = vector.broadcast %cst_80 : f32 to vector<32x1xf32>
    %214 = arith.divf %212, %213 : vector<32x1xf32>
    %215 = vector.broadcast %214 : vector<32x1xf32> to vector<32x128xf32>
    %216 = arith.subf %208, %215 : vector<32x128xf32>
    %217 = arith.mulf %216, %216 : vector<32x128xf32>
    %cst_81 = arith.constant dense<0.000000e+00> : vector<32xf32>
    %218 = vector.multi_reduction <add>, %217, %cst_81 [1] : vector<32x128xf32> to vector<32xf32>
    %219 = vector.shape_cast %218 : vector<32xf32> to vector<32x1xf32>
    %cst_82 = arith.constant 1.280000e+02 : f32
    %220 = vector.broadcast %cst_82 : f32 to vector<32x1xf32>
    %221 = arith.divf %219, %220 : vector<32x1xf32>
    %222 = vector.broadcast %214 : vector<32x1xf32> to vector<32x128xf32>
    %223 = arith.subf %208, %222 : vector<32x128xf32>
    %cst_83 = arith.constant 9.99999974E-6 : f32
    %224 = vector.broadcast %cst_83 : f32 to vector<32x1xf32>
    %225 = arith.addf %221, %224 : vector<32x1xf32>
    %226 = math.rsqrt %225 : vector<32x1xf32>
    %227 = vector.broadcast %226 : vector<32x1xf32> to vector<32x128xf32>
    %228 = arith.mulf %223, %227 : vector<32x128xf32>
    %229 = vector.broadcast %209 : vector<1x128xf32> to vector<32x128xf32>
    %230 = arith.mulf %228, %229 : vector<32x128xf32>
    %231 = vector.broadcast %210 : vector<1x128xf32> to vector<32x128xf32>
    %232 = arith.addf %230, %231 : vector<32x128xf32>
    %233 = arith.truncf %232 : vector<32x128xf32> to vector<32x128xbf16>
    %c0_84 = arith.constant 0 : index
    %c0_85 = arith.constant 0 : index
    %c0_86 = arith.constant 0 : index
    %234 = vector.load %arg8[%c0_84, %c0_85, %c0_86] : memref<1x128x256xbf16, #tpu.memory_space<vmem>>, vector<1x128x256xbf16>
    %235 = vector.shape_cast %234 : vector<1x128x256xbf16> to vector<128x256xbf16>
    %cst_87 = arith.constant dense<0.000000e+00> : vector<32x256xf32>
    %236 = tpu.matmul %233, %235, %cst_87 {dimension_numbers = #tpu.dot_dimension_numbers<[1], [0], [0], [1], [0, 0, 1, 1], [], []>} : vector<32x128xbf16>, vector<128x256xbf16>, vector<32x256xf32> -> vector<32x256xf32>
    %c0_88 = arith.constant 0 : index
    %c0_89 = arith.constant 0 : index
    %c0_90 = arith.constant 0 : index
    %237 = vector.load %arg12[%c0_88, %c0_89, %c0_90] : memref<1x1x256xf32, #tpu.memory_space<vmem>>, vector<1x1x256xf32>
    %238 = vector.shape_cast %237 : vector<1x1x256xf32> to vector<1x256xf32>
    %239 = vector.broadcast %238 : vector<1x256xf32> to vector<32x256xf32>
    %240 = arith.addf %236, %239 : vector<32x256xf32>
    %cst_91 = arith.constant 0.000000e+00 : f32
    %241 = vector.broadcast %cst_91 : f32 to vector<32x256xf32>
    %242 = arith.maximumf %240, %241 : vector<32x256xf32>
    %243 = arith.truncf %242 : vector<32x256xf32> to vector<32x256xbf16>
    %c0_92 = arith.constant 0 : index
    %c0_93 = arith.constant 0 : index
    %c0_94 = arith.constant 0 : index
    %244 = vector.load %arg9[%c0_92, %c0_93, %c0_94] : memref<1x256x128xbf16, #tpu.memory_space<vmem>>, vector<1x256x128xbf16>
    %245 = vector.shape_cast %244 : vector<1x256x128xbf16> to vector<256x128xbf16>
    %cst_95 = arith.constant dense<0.000000e+00> : vector<32x128xf32>
    %246 = tpu.matmul %243, %245, %cst_95 {dimension_numbers = #tpu.dot_dimension_numbers<[1], [0], [0], [1], [0, 0, 1, 1], [], []>} : vector<32x256xbf16>, vector<256x128xbf16>, vector<32x128xf32> -> vector<32x128xf32>
    %247 = vector.extract_strided_slice %199 {offsets = [3, 0], sizes = [1, 128], strides = [1, 1]} : vector<6x128xf32> to vector<1x128xf32>
    %248 = vector.broadcast %247 : vector<1x128xf32> to vector<32x128xf32>
    %249 = arith.addf %246, %248 : vector<32x128xf32>
    %250 = arith.addf %232, %249 : vector<32x128xf32>
    %251 = vector.extract_strided_slice %199 {offsets = [4, 0], sizes = [1, 128], strides = [1, 1]} : vector<6x128xf32> to vector<1x128xf32>
    %252 = vector.extract_strided_slice %199 {offsets = [5, 0], sizes = [1, 128], strides = [1, 1]} : vector<6x128xf32> to vector<1x128xf32>
    %cst_96 = arith.constant dense<0.000000e+00> : vector<32xf32>
    %253 = vector.multi_reduction <add>, %250, %cst_96 [1] : vector<32x128xf32> to vector<32xf32>
    %254 = vector.shape_cast %253 : vector<32xf32> to vector<32x1xf32>
    %cst_97 = arith.constant 1.280000e+02 : f32
    %255 = vector.broadcast %cst_97 : f32 to vector<32x1xf32>
    %256 = arith.divf %254, %255 : vector<32x1xf32>
    %257 = vector.broadcast %256 : vector<32x1xf32> to vector<32x128xf32>
    %258 = arith.subf %250, %257 : vector<32x128xf32>
    %259 = arith.mulf %258, %258 : vector<32x128xf32>
    %cst_98 = arith.constant dense<0.000000e+00> : vector<32xf32>
    %260 = vector.multi_reduction <add>, %259, %cst_98 [1] : vector<32x128xf32> to vector<32xf32>
    %261 = vector.shape_cast %260 : vector<32xf32> to vector<32x1xf32>
    %cst_99 = arith.constant 1.280000e+02 : f32
    %262 = vector.broadcast %cst_99 : f32 to vector<32x1xf32>
    %263 = arith.divf %261, %262 : vector<32x1xf32>
    %264 = vector.broadcast %256 : vector<32x1xf32> to vector<32x128xf32>
    %265 = arith.subf %250, %264 : vector<32x128xf32>
    %cst_100 = arith.constant 9.99999974E-6 : f32
    %266 = vector.broadcast %cst_100 : f32 to vector<32x1xf32>
    %267 = arith.addf %263, %266 : vector<32x1xf32>
    %268 = math.rsqrt %267 : vector<32x1xf32>
    %269 = vector.broadcast %268 : vector<32x1xf32> to vector<32x128xf32>
    %270 = arith.mulf %265, %269 : vector<32x128xf32>
    %271 = vector.broadcast %251 : vector<1x128xf32> to vector<32x128xf32>
    %272 = arith.mulf %270, %271 : vector<32x128xf32>
    %273 = vector.broadcast %252 : vector<1x128xf32> to vector<32x128xf32>
    %274 = arith.addf %272, %273 : vector<32x128xf32>
    %c0_101 = arith.constant 0 : index
    %c0_102 = arith.constant 0 : index
    %275 = vector.load %arg14[%c0_101, %c0_102] : memref<32x128xf32, #tpu.memory_space<vmem>>, vector<32x128xf32>
    tpu.vector_store %arg14[%c0_101, %c0_102], %274 {strides = array<i32>} : memref<32x128xf32, #tpu.memory_space<vmem>>, vector<32x128xf32>,
    %276 = vector.shape_cast %274 : vector<32x128xf32> to vector<4x8x128xf32>
    %c0_103 = arith.constant 0 : index
    %c0_104 = arith.constant 0 : index
    %c0_105 = arith.constant 0 : index
    %c0_106 = arith.constant 0 : index
    %277 = vector.load %arg13[%c0_103, %c0_104, %c0_105, %c0_106] : memref<4x1x8x128xf32, #tpu.memory_space<vmem>>, vector<4x1x8x128xf32>
    %278 = vector.shape_cast %277 : vector<4x1x8x128xf32> to vector<4x8x128xf32>
    %279 = vector.shape_cast %276 : vector<4x8x128xf32> to vector<4x1x8x128xf32>
    tpu.vector_store %arg13[%c0_103, %c0_104, %c0_105, %c0_106], %279 {strides = array<i32>} : memref<4x1x8x128xf32, #tpu.memory_space<vmem>>, vector<4x1x8x128xf32>,
    return
  }
  func.func @transform_0(%arg0: i32, %arg1: i32) -> (i32, i32) {
    %c0_i32 = arith.constant 0 : i32
    %c0_i32_0 = arith.constant 0 : i32
    return %arg0, %c0_i32 : i32, i32
  }
  func.func @transform_1(%arg0: i32, %arg1: i32) -> (i32, i32, i32) {
    %c0_i32 = arith.constant 0 : i32
    %c0_i32_0 = arith.constant 0 : i32
    %c0_i32_1 = arith.constant 0 : i32
    return %arg0, %c0_i32, %c0_i32_0 : i32, i32, i32
  }
  func.func @transform_2(%arg0: i32, %arg1: i32) -> (i32, i32, i32) {
    %c0_i32 = arith.constant 0 : i32
    %c0_i32_0 = arith.constant 0 : i32
    %c0_i32_1 = arith.constant 0 : i32
    return %arg1, %c0_i32, %c0_i32_0 : i32, i32, i32
  }
  func.func @transform_3(%arg0: i32, %arg1: i32) -> (i32, i32, i32) {
    %c0_i32 = arith.constant 0 : i32
    %c0_i32_0 = arith.constant 0 : i32
    %c0_i32_1 = arith.constant 0 : i32
    return %arg1, %c0_i32, %c0_i32_0 : i32, i32, i32
  }
  func.func @transform_4(%arg0: i32, %arg1: i32) -> (i32, i32, i32, i32) {
    %c0_i32 = arith.constant 0 : i32
    %c0_i32_0 = arith.constant 0 : i32
    %c0_i32_1 = arith.constant 0 : i32
    %c0_i32_2 = arith.constant 0 : i32
    return %arg1, %c0_i32, %c0_i32_0, %c0_i32_1 : i32, i32, i32, i32
  }
  func.func @transform_5(%arg0: i32, %arg1: i32) -> (i32, i32, i32, i32) {
    %c0_i32 = arith.constant 0 : i32
    %c0_i32_0 = arith.constant 0 : i32
    %c0_i32_1 = arith.constant 0 : i32
    %c0_i32_2 = arith.constant 0 : i32
    return %arg1, %c0_i32, %c0_i32_0, %c0_i32_1 : i32, i32, i32, i32
  }
  func.func @transform_6(%arg0: i32, %arg1: i32) -> (i32, i32, i32) {
    %c0_i32 = arith.constant 0 : i32
    %c0_i32_0 = arith.constant 0 : i32
    %c0_i32_1 = arith.constant 0 : i32
    return %arg1, %c0_i32, %c0_i32_0 : i32, i32, i32
  }
  func.func @transform_7(%arg0: i32, %arg1: i32) -> (i32, i32, i32) {
    %c0_i32 = arith.constant 0 : i32
    %c0_i32_0 = arith.constant 0 : i32
    %c0_i32_1 = arith.constant 0 : i32
    return %arg1, %c0_i32, %c0_i32_0 : i32, i32, i32
  }
  func.func @transform_8(%arg0: i32, %arg1: i32) -> (i32, i32, i32) {
    %c0_i32 = arith.constant 0 : i32
    %c0_i32_0 = arith.constant 0 : i32
    %c0_i32_1 = arith.constant 0 : i32
    return %arg1, %c0_i32, %c0_i32_0 : i32, i32, i32
  }
  func.func @transform_9(%arg0: i32, %arg1: i32) -> (i32, i32, i32) {
    %c0_i32 = arith.constant 0 : i32
    %c0_i32_0 = arith.constant 0 : i32
    %c0_i32_1 = arith.constant 0 : i32
    return %arg1, %c0_i32, %c0_i32_0 : i32, i32, i32
  }
  func.func @transform_10(%arg0: i32, %arg1: i32) -> (i32, i32, i32) {
    %c0_i32 = arith.constant 0 : i32
    %c0_i32_0 = arith.constant 0 : i32
    %c0_i32_1 = arith.constant 0 : i32
    return %arg1, %c0_i32, %c0_i32_0 : i32, i32, i32
  }
  func.func @transform_11(%arg0: i32, %arg1: i32) -> (i32, i32, i32, i32) {
    %c0_i32 = arith.constant 0 : i32
    %c0_i32_0 = arith.constant 0 : i32
    %c0_i32_1 = arith.constant 0 : i32
    return %arg0, %arg1, %c0_i32, %c0_i32_0 : i32, i32, i32, i32
  }
}

</mosaic_0001>

<bundles_post_ra>
// kernel: memory_augmented_encoder_forward.1
= control target key start
LH: loop header
LB: loop body
LE: loop exit
PB: predicated region body
PF: predicated region fallthrough
CT: control target
= control target key end

     0   :  { %s6462_s0 = inlined_call_operand.vmem [shape: f32[64,128], index: 0, kind: input, shape index: {}]   ;;  %s6463_s1 = inlined_call_operand.vmem [shape: f32[2,4,8], index: 1, kind: input, shape index: {}]   ;;  %s6464_s2 = inlined_call_operand.vmem [shape: bf16[3,128,384], index: 2, kind: input, shape index: {}]   ;;  %s6465_s3 = inlined_call_operand.vmem [shape: bf16[3,128,128], index: 3, kind: input, shape index: {}]   ;;  %s6466_s4 = inlined_call_operand.vmem [shape: bf16[3,4,32,8], index: 4, kind: input, shape index: {}]   ;;  %s6467_s5 = inlined_call_operand.vmem [shape: bf16[3,4,8,32], index: 5, kind: input, shape index: {}]   ;;  %s6468_s6 = inlined_call_operand.vmem [shape: bf16[3,128,256], index: 6, kind: input, shape index: {}]   ;;  %s6469_s7 = inlined_call_operand.vmem [shape: bf16[3,256,128], index: 7, kind: input, shape index: {}]   ;;  %s6470_s8 = inlined_call_operand.vmem [shape: f32[3,1,384], index: 8, kind: input, shape index: {}]   ;;  %s6471_s9 = inlined_call_operand.vmem [shape: f32[3,6,128], index: 9, kind: input, shape index: {}]   ;;  %s6472_s10 = inlined_call_operand.vmem [shape: f32[3,1,256], index: 10, kind: input, shape index: {}]   ;;  %s6473_s11 = inlined_call_operand.hbm [shape: f32[8,3,8,128], index: 11, kind: output, shape index: {}]  }
   0x1   :  { %6492 = sst [smem:[#allocation18_spill]] %s6462_s0 }
   0x2   :  { %6493 = sst [smem:[#allocation19_spill]] %s6463_s1 }
   0x3   :  { %6494 = sst [smem:[#allocation20_spill]] %s6464_s2 }
   0x4   :  { %6495 = sst [smem:[#allocation21_spill]] %s6465_s3 }
   0x5   :  { %6496 = sst [smem:[#allocation22_spill]] %s6466_s4 }
   0x6   :  { %6497 = sst [smem:[#allocation23_spill]] %s6467_s5 }
   0x7   :  { %6498 = sst [smem:[#allocation24_spill]] %s6473_s11 }
   0x8   :  { %16 = vsyncpa [#allocation4], 0 }
   0x9   :  { %18 = vsyncpa [#allocation4 + $0x1], 0  ;;  %s5428_s17 = smov 0   ;;  %s5430_s18 = smov 0  }
   0xa   :  { %s5432_s19 = smov 0   ;;  %s5434_s20 = smov 0  }
   0xb   :  { %s5436_s21 = smov 0   ;;  %s5438_s22 = smov 0  }
   0xc   :  { %s5440_s23 = smov 0   ;;  %s5442_s24 = smov 0  }
   0xd LB: > { %6499 = sst [smem:[#allocation6_spill]] %s5327_s17  ;;  %s4317_s25 = sadd.s32 4294967295, %s5355_s24   ;;  %s5355_s24 = sphi %s5442_s24, %s24_s24   ;;  %s5351_s23 = sphi %s5440_s23, %s6535_s23   ;;  %s5347_s22 = sphi %s5438_s22, %s6534_s22   ;;  %s5343_s21 = sphi %s5436_s21, %s6533_s21   ;;  %s5339_s20 = sphi %s5434_s20, %s6532_s20   ;;  %s5335_s19 = sphi %s5432_s19, %s6531_s19   ;;  %s5331_s18 = sphi %s5430_s18, %s6530_s18   ;;  %s5327_s17 = sphi %s5428_s17, %s6529_s17  }
   0xe   : > { %6500 = sst [smem:[#allocation7_spill]] %s5331_s18  ;;  %s4318_s26 = sadd.s32 4294967294, %s5355_s24  }
   0xf   : > { %6501 = sst [smem:[#allocation8_spill]] %s5335_s19  ;;  %s33_s27 = sadd.s32 1, %s5347_s22 }
  0x10   : > { %6502 = sst [smem:[#allocation9_spill]] %s5343_s21  ;;  %p34_p0 = scmp.ge.s32.totalorder %s33_s27, 3 }
  0x11   : > { %6503 = sst [smem:[#allocation10_spill]] %s5347_s22  ;;  %s36_s28 = sadd.s32 1, %s5351_s23 }
  0x12   : > { %6504 = sst [smem:[#allocation11_spill]] %s5351_s23  ;;  %p341_p1 = scmp.ne.s32.totalorder %s5335_s19, %s5331_s18 }
  0x13   : > { %6505 = sst [smem:[#allocation12_spill]] %s5355_s24  ;;  %p342_p2 = scmp.eq.s32.totalorder %s4317_s25, 5 }
  0x14   : > { %s6537_s27 = smov (%p34_p0, %s33_s27), 0  ;;  %s6539_s28 = smov (!%p34_p0, %s36_s28), %s5351_s23 }
  0x15   : > { %6506 = sst [smem:[#allocation13_spill]] %s6537_s27  ;;  %s327_s29 = ssub.s32 %s5347_s22, %s6537_s27 }
  0x16   : > { %p5479_p3 = por %p342_p2, %p341_p1  ;;  %p38_p4 = scmp.ge.s32.totalorder %s6539_s28, 2 }
  0x17   : > { %p347_p5 = scmp.ne.s32.totalorder %s5331_s18, %s5327_s17  ;;  %p348_p6 = scmp.eq.s32.totalorder %s4318_s26, 5 }
  0x18   : > { %s6507_s30 = scalar_select %p5479_p3, 1, 0 }
  0x19   : > { %p4321_p7 = scmp.ge.s32.totalorder %s5355_s24, 1  ;;  %s6541_s28 = smov (%p38_p4, %s6539_s28), 0 }
  0x1a   : > { %6508 = sst [smem:[#allocation14_spill]] %s6507_s30  ;;  %p5488_p8 = por %p348_p6, %p347_p5 }
  0x1b   : > { %6509 = sst [smem:[#allocation15_spill]] %s6541_s28  ;;  %p451_p9 = scmp.lt.s32.totalorder %s5355_s24, 7 }
  0x1c   : > { %s6510_s12 = scalar_select %p5488_p8, 1, 0 }
  0x1d   : > { %s326_s13 = ssub.s32 %s5351_s23, %s6541_s28  ;;  %s331_s14 = sadd.s32 1, %s5335_s19 }
  0x1e   : > { %6511 = sst [smem:[#allocation16_spill]] %s6510_s12  ;;  %s328_s15 = sor.u32 %s327_s29, %s326_s13 }
  0x1f   : > { %p452_p10 = pnand %p4321_p7, %p451_p9  ;;  %p329_p11 = scmp.eq.s32.totalorder %s328_s15, 0 }
  0x20   : > { %s6483_s25 = sand.u32 (!%p452_p10), 1, %s5331_s18   ;;  %s4323_s26 = sshll.u32 (!%p452_p10), %s5343_s21, 2 }
  0x21   : > { %s5497_s16 = scalar_select %p329_p11, %s5335_s19, %s331_s14  }
  0x22   : > { %455 = sbr.rel (%p452_p10) target bundleno = 3700 (0xe74), region = 64  ;;  %s4322_s27 = sshll.u32 (!%p452_p10), %s6483_s25, 5 }
  0x23   : > { %6512 = sst [smem:[#allocation17_spill]] %s5497_s16  ;;  %p538_p12 = scmp.lt.s32.totalorder (!%p452_p10), %s4323_s26, 7 }
  0x24   : > { %p543_p13 = scmp.lt.s32.totalorder (!%p452_p10), %s5343_s21, 1  ;;  %p547_p0 = scmp.lt.s32.totalorder (!%p452_p10), %s5339_s20, 2 }
  0x25   : > { %s6513_s0 = sld [smem:[#allocation18_spill]] (!%p452_p10)  ;;  %s6514_s1 = sld [smem:[#allocation19_spill]] (!%p452_p10) }
  0x26   : > { %s6515_s3 = sld [smem:[#allocation21_spill]] (!%p452_p10)  ;;  %s6516_s4 = sld [smem:[#allocation22_spill]] (!%p452_p10) }
  0x27   : > { %s6517_s2 = sld [smem:[#allocation20_spill]] (!%p452_p10)  ;;  %s6518_s5 = sld [smem:[#allocation23_spill]] (!%p452_p10) }
  0x28   : > { %p4339_p1 = scmp.ne.s32.totalorder (!%p452_p10), %s5339_s20, 0 }
  0x29   : > { %s6543_s26 = smov (!%p538_p12, %s4323_s26), 7 }
  0x2a   : > { %s544_s29 = scalar_select %p543_p13, %s5343_s21, 1 }
  0x2b   : > { %s4324_s13 = sshll.u32 %s6543_s26, 3 }
  0x2c   : > { %s541_s28 = scalar_lea.vmem %s6513_s0, %s4324_s13  ;;  %s4325_s23 = sshll.u32 %s544_s29, 2 }
  0x2d   : > { %s5512_s19 = scalar_lea.vmem %s6514_s1, %s4325_s23  ;;  %v595_v0 = vld [vmem:[%s541_s28] sm:$0xff] (!%p4339_p1)  ;;  %v596_v1 = vld [vmem:[%s541_s28 + $0x8] sm:$0xff] (!%p4339_p1)  ;;  %v597_v2 = vld [vmem:[%s541_s28 + $0x10] sm:$0xff] (!%p4339_p1) }
  0x2e   : > { %s548_s12 = scalar_select %p547_p0, %s5339_s20, 2 }
  0x2f   : > { %599 = vst [vmem:[#allocation2] sm:$0xff] (!%p4339_p1), %v595_v0  ;;  %600 = vst [vmem:[#allocation2 + $0x8] sm:$0xff] (!%p4339_p1), %v596_v1  ;;  %v598_v3 = vld [vmem:[%s541_s28 + $0x18] sm:$0xff] (!%p4339_p1) }
  0x30   : > { %s4943_s17 = smul.u32 192, %s548_s12  ;;  %s4494_s24 = sshll.u32 %s548_s12, 6  ;;  %601 = vst [vmem:[#allocation2 + $0x10] sm:$0xff] (!%p4339_p1), %v597_v2  ;;  %602 = vst [vmem:[#allocation2 + $0x18] sm:$0xff] (!%p4339_p1), %v598_v3 }
  0x31   : > { %s5518_s30 = scalar_lea.vmem %s6515_s3, %s4494_s24  ;;  %s5523_s21 = scalar_lea.vmem %s6516_s4, %s4494_s24 }
  0x32   : > { %s5528_s14 = scalar_lea.vmem %s6517_s2, %s4943_s17  ;;  %s4496_s22 = sshll.u32 %s548_s12, 4 }
  0x33   : > { %s5533_s15 = scalar_lea.vmem %s6518_s5, %s4496_s22  ;;  %s4497_s0 = sshll.u32 %s548_s12, 7 }
  0x34   : > { %s5538_s1 = scalar_lea.vmem %s6468_s6, %s4497_s0  ;;  %s5543_s26 = scalar_lea.vmem %s6469_s7, %s4497_s0 }
  0x35   : > { %s4944_s13 = smul.u32 3, %s548_s12  ;;  %s4337_s17 = sshll.u32 %s548_s12, 3 }
  0x36   : > { %s5548_s3 = scalar_lea.vmem %s6471_s9, %s4337_s17  ;;  %s4338_s22 = sshll.u32 %s548_s12, 1 }
  0x37   : > { %s5553_s4 = scalar_lea.vmem %s6470_s8, %s4944_s13  ;;  %s5558_s5 = scalar_lea.vmem %s6472_s10, %s4338_s22 }
  0x38   : > { %s5560_s0 = scalar_lea.vmem [#allocation3], %s4322_s27  ;;  %594 = sbr.rel (%p4339_p1) target bundleno = 63 (0x3f), region = 68 }
  0x3f PF: > { %v5057_v4 = vld [vmem:[%s5528_s14 + $0x4] ss:$12 sps:$4 sm:$0xff]   ;;  %v5059_v5 = vld [vmem:[%s5528_s14] ss:$12 sps:$4 sm:$0xff]   ;;  %v6490_v6 = vmov 0   ;;  %v606_v31 = vld [vmem:[#allocation2 + $0x18] sm:$0xff]  ;;  %v643_v36 = vlaneseq }
  0x40   : > { %818 = vmatprep.mubr.bf16.mxu0 %v6490_v6  ;;  %786 = vmatprep.subr.bf16.mxu0 %v5057_v4  ;;  %v5060_v7 = vld [vmem:[%s5528_s14 + $0x1c] ss:$12 sps:$4 sm:$0xff]   ;;  %v5062_v8 = vld [vmem:[%s5528_s14 + $0x18] ss:$12 sps:$4 sm:$0xff]   ;;  %v5063_v9 = vld [vmem:[%s5528_s14 + $0x34] ss:$12 sps:$4 sm:$0xff]  }
  0x41   : > { %787 = vmatpush1.bf16.msra.mxu0 %v5059_v5  ;;  %v5065_v10 = vld [vmem:[%s5528_s14 + $0x30] ss:$12 sps:$4 sm:$0xff]   ;;  %v5066_v11 = vld [vmem:[%s5528_s14 + $0x4c] ss:$12 sps:$4 sm:$0xff]   ;;  %v603_v12 = vld [vmem:[#allocation2] sm:$0xff]  ;;  %v5358_v35 = vmov 0.0  }
  0x42   : > { %788 = vmatprep.subr.bf16.mxu0 %v5060_v7  ;;  %v5068_v13 = vld [vmem:[%s5528_s14 + $0x48] ss:$12 sps:$4 sm:$0xff]   ;;  %v5069_v14 = vld [vmem:[%s5528_s14 + $0x64] ss:$12 sps:$4 sm:$0xff]   ;;  %v5082_v18 = vld [vmem:[%s5528_s14 + $0x20] ss:$12 sps:$4 sm:$0xff]  }
  0x43   : > { %v604_v15 = vld [vmem:[#allocation2 + $0x8] sm:$0xff]  ;;  %v5083_v21 = vld [vmem:[%s5528_s14 + $0x38] ss:$12 sps:$4 sm:$0xff]   ;;  %v5075_v23 = vld [vmem:[%s5528_s14 + $0x94] ss:$12 sps:$4 sm:$0xff]   ;;  %vm5359_vm0 = vmmov 0  }
  0x44   : > { %v607_v16 = vpack.c.bf16 %v604_v15, %v603_v12  ;;  %v5081_v17 = vld [vmem:[%s5528_s14 + $0x8] ss:$12 sps:$4 sm:$0xff]   ;;  %v5071_v19 = vld [vmem:[%s5528_s14 + $0x60] ss:$12 sps:$4 sm:$0xff]   ;;  %v5074_v22 = vld [vmem:[%s5528_s14 + $0x78] ss:$12 sps:$4 sm:$0xff]  }
  0x45   : > { %789 = vmatpush1.bf16.msra.mxu0 %v5062_v8  ;;  %4651 = vmatprep.subr.bf16.mxu1 %v5081_v17  ;;  %v5072_v20 = vld [vmem:[%s5528_s14 + $0x7c] ss:$12 sps:$4 sm:$0xff]   ;;  %v5078_v26 = vld [vmem:[%s5528_s14 + $0xac] ss:$12 sps:$4 sm:$0xff]   ;;  %v605_v30 = vld [vmem:[#allocation2 + $0x10] sm:$0xff]  ;;  %v5595_v37 = vshrl.u32 %v643_v36, 7 }
  0x46   : > { %790 = vmatprep.subr.bf16.mxu0 %v5063_v9  ;;  %4667 = vmatprep.mubr.bf16.mxu1 %v607_v16  ;;  %v5084_v24 = vld [vmem:[%s5528_s14 + $0x50] ss:$12 sps:$4 sm:$0xff]   ;;  %v5085_v27 = vld [vmem:[%s5528_s14 + $0x68] ss:$12 sps:$4 sm:$0xff]   ;;  %v5086_v29 = vld [vmem:[%s5528_s14 + $0x80] ss:$12 sps:$4 sm:$0xff]   ;;  %v608_v32 = vpack.c.bf16 %v606_v31, %v605_v30 }
  0x47   : > { %4652 = vmatpush3.bf16.msra.mxu1 %v5081_v17  ;;  %v5077_v25 = vld [vmem:[%s5528_s14 + $0x90] ss:$12 sps:$4 sm:$0xff]   ;;  %v5080_v28 = vld [vmem:[%s5528_s14 + $0xa8] ss:$12 sps:$4 sm:$0xff]   ;;  %v5087_v33 = vld [vmem:[%s5528_s14 + $0x98] ss:$12 sps:$4 sm:$0xff]  }
  0x48   : > { %4653 = vmatprep.subr.bf16.mxu1 %v5082_v18  ;;  %v5088_v34 = vld [vmem:[%s5528_s14 + $0xb0] ss:$12 sps:$4 sm:$0xff]   ;;  %v5598_v38 = vsub.s32 1, %v5595_v37  ;;  %v641_v39 = vld [vmem:[%s5553_s4] sm:$0x7]  ;;  %v5602_v40 = vsub.s32 0, %v5595_v37 }
  0x49   : > { %791 = vmatpush1.bf16.msra.mxu0 %v5065_v10  ;;  %vm960_vm1 = vcmask 261120   ;;  %v5089_v1 = vld [vmem:[%s5523_s21] sm:$0xff]   ;;  %v5090_v9 = vld [vmem:[%s5523_s21 + $0x8] sm:$0xff]   ;;  %v6489_v12 = vsub.s32 2, %v5595_v37  ;;  %vm1320_vm2 = vcmask 1043456   ;;  %vm1216_vm3 = vcmask 64512  }
  0x4a   : > { %792 = vmatprep.subr.bf16.mxu0 %v5066_v11  ;;  %v650_v41 = vrot.slane %v641_v39, %v5598_v38  ;;  %v646_v42 = vrot.slane %v641_v39, %v5602_v40  ;;  %s5361_s2 = smov 96   ;;  %s5362_s4 = smov 64   ;;  %vm3484_vm4 = vcmask 523264   ;;  %vm3489_vm5 = vcmask 785408  }
  0x4b   : > { %4654 = vmatpush3.bf16.msra.mxu1 %v5082_v18  ;;  %s5364_s13 = smov [#allocation3]  }
  0x4c   : > { %4655 = vmatprep.subr.bf16.mxu1 %v5083_v21  ;;  %s5265_s17 = sshll.u32 %s5364_s13, 4  ;;  %s5266_s17 = int_to_ptr.vmem [resolvable:$false] %s5265_s17 }
  0x4d   : > { %793 = vmatpush1.bf16.msra.mxu0 %v5068_v13  ;;  %v654_v13 = vrot.slane %v641_v39, %v6489_v12  ;;  %s5267_s29 = scalar_lea.vmem %s5266_s17, 1024 }
  0x4e   : > { %794 = vmatprep.subr.bf16.mxu0 %v5069_v14 }
  0x4f   : > { %4656 = vmatpush3.bf16.msra.mxu1 %v5083_v21 }
  0x50   : > { %4657 = vmatprep.subr.bf16.mxu1 %v5084_v24 }
  0x51   : > { %795 = vmatpush1.bf16.msra.mxu0 %v5071_v19 }
  0x52   : > { %796 = vmatprep.subr.bf16.mxu0 %v5072_v20 }
  0x53   : > { %4658 = vmatpush3.bf16.msra.mxu1 %v5084_v24  ;;  %v5360_v24 = vmov 1966171168  }
  0x54   : > { %4659 = vmatprep.subr.bf16.mxu1 %v5085_v27 }
  0x55   : > { %797 = vmatpush1.bf16.msra.mxu0 %v5074_v22 }
  0x56   : > { %798 = vmatprep.subr.bf16.mxu0 %v5075_v23 }
  0x57   : > { %4660 = vmatpush3.bf16.msra.mxu1 %v5085_v27 }
  0x58   : > { %4661 = vmatprep.subr.bf16.mxu1 %v5086_v29 }
  0x59   : > { %799 = vmatpush1.bf16.msra.mxu0 %v5077_v25  ;;  %v899_v25 = vunpack.c.l.s4 %v5360_v24 }
  0x5a   : > { %800 = vmatprep.subr.bf16.mxu0 %v5078_v26 }
  0x5b   : > { %4662 = vmatpush3.bf16.msra.mxu1 %v5086_v29  ;;  %v900_v26 = vunpack.c.0.s8 %v899_v25 }
  0x5c   : > { %4663 = vmatprep.subr.bf16.mxu1 %v5087_v33 }
  0x5d   : > { %801 = vmatpush1.bf16.msra.mxu0 %v5080_v28  ;;  %v903_v27 = vsub.s32 %v900_v26, %v5595_v37  ;;  %v4364_v28 = vld.sshfl [vmem:[%s5512_s19] sm:$0x33 pattern:$0x75316420]  ;;  %s5363_s19 = smov 32  }
  0x5e   : > { %4671 = vmatprep.subr.bf16.mxu0 %v5358_v35  ;;  %v897_v31 = vcombine.high %v4364_v28, %v4364_v28  ;;  %v1313_v26 = vld [vmem:[%s5533_s15] sm:$0xf] }
  0x5f   : > { %4664 = vmatpush3.bf16.msra.mxu1 %v5087_v33  ;;  %v904_v29 = vrot.slane %v4364_v28, %v903_v27 }
  0x60   : > { %819 = vmatmul.mubr.bf16.vlgmr.msra.gmra.mrb[0].mxu0 %v607_v16  ;;  %4665 = vmatprep.subr.bf16.mxu1 %v5088_v34  ;;  %v911_v36 = vrot.slane %v897_v31, %v903_v27  ;;  %v1322_v27 = vsel %vm1320_vm2, %v1313_v26, 0 }
  0x61   : > { %828 = vmatprep.mubr.bf16.mxu0 %v6490_v6  ;;  %v5674_v30 = vrot.slane %v904_v29, %v5602_v40  ;;  %v912_v39 = vcombine.high %v904_v29, %v904_v29 }
  0x63   : > { %4666 = vmatpush3.bf16.msra.mxu1 %v5088_v34 }
  0x64   : > { %4683 = vmatprep.subr.bf16.mxu1 %v5358_v35 }
  0x66   : > { %4668 = vmatmul.mubr.bf16.vlgmr.msra.gmra.mrb[0].mxu1 %v608_v32 }
  0x67   : > { %4685 = vmatprep.mubr.msk.bf16.mxu1 %vm5359_vm0, %v5358_v35 }
  0x68   : > { %829 = vmatmul.mubr.bf16.gmra.mrb[4].mxu0 %v608_v32 }
  0x69   : > { %4673 = vmatprep.mubr.msk.bf16.mxu0 %vm5359_vm0, %v5358_v35 }
 0x133   : > { %v820_v43 = vpop.f32.mrb[0].mxu0 }
 0x134   : > { %v822_v44 = vpop.f32.mrb[1].mxu0  ;;  %v821_v47 = vadd.f32 %v820_v43, %v646_v42 }
 0x135   : > { %v823_v45 = vadd.f32 %v822_v44, %v650_v41  ;;  %v824_v46 = vpop.f32.mrb[2].mxu0  ;;  %v5682_v44 = vrot.slane %v911_v36, %v5602_v40 }
 0x136   : > { %v825_v48 = vadd.f32 %v824_v46, %v646_v42  ;;  %v826_v49 = vpop.f32.mrb[3].mxu0  ;;  %v5615_v62 = vpack.c.bf16 %v821_v47, %v821_v47 }
 0x137   : > { %v5606_v50 = vpack.c.bf16 %v823_v45, %v823_v45  ;;  %v827_v52 = vadd.f32 %v826_v49, %v650_v41  ;;  %v5685_v45 = vrot.slane %v912_v39, %v5602_v40 }
 0x138   : > { %v5608_v51 = vpack.c.bf16 %v825_v48, %v821_v47  ;;  %v5633_v7 = vpack.c.bf16 %v825_v48, %v825_v48 }
 0x139   : > { %v965_v53 = vsel %vm960_vm1, %v5606_v50, 0  ;;  %v5613_v56 = vpack.c.bf16 %v827_v52, %v827_v52  ;;  %v4669_v14 = vpop.f32.mrb[0].mxu1 }
 0x13a   : > { %4672 = vmatpush3.bf16.xpose.msra.mxu0 %v965_v53  ;;  %v5660_v15 = vadd.f32 %v4669_v14, %v654_v13  ;;  %v873_v16 = vpop.f32.mrb[1].mxu1 }
 0x13b   : > { %v830_v54 = vpop.f32.mrb[4].mxu0  ;;  %4677 = vmatprep.subr.bf16.mxu0 %v5358_v35  ;;  %v1011_v3 = vsel %vm960_vm1, %v5613_v56, 0  ;;  %v874_v17 = vadd.f32 %v873_v16, %v654_v13  ;;  %v4670_v18 = vpop.f32.mrb[2].mxu1 }
 0x13c   : > { %v832_v55 = vpop.f32.mrb[5].mxu0  ;;  %v831_v59 = vadd.f32 %v830_v54, %v646_v42  ;;  %v5662_v19 = vadd.f32 %v4670_v18, %v654_v13  ;;  %v876_v21 = vpop.f32.mrb[3].mxu1  ;;  %v913_v54 = vcombine.high %v911_v36, %v911_v36 }
 0x13d   : > { %v833_v57 = vadd.f32 %v832_v55, %v650_v41  ;;  %v834_v58 = vpop.f32.mrb[6].mxu0  ;;  %v5664_v20 = vpack.c.bf16 %v874_v17, %v874_v17  ;;  %v5666_v22 = vadd.f32 %v876_v21, %v654_v13 }
 0x13e   : > { %v835_v60 = vadd.f32 %v834_v58, %v646_v42  ;;  %v836_v61 = vpop.f32.mrb[7].mxu0  ;;  %v5635_v8 = vpack.c.bf16 %v831_v59, %v831_v59 }
 0x13f   : > { %v5617_v63 = vpack.c.bf16 %v833_v57, %v833_v57  ;;  %v837_v2 = vadd.f32 %v836_v61, %v650_v41  ;;  %v1377_v23 = vsel %vm1320_vm2, %v5664_v20, 0 }
 0x140   : > { %v5619_v0 = vpack.c.bf16 %v835_v60, %v831_v59  ;;  %v5648_v11 = vpack.c.bf16 %v835_v60, %v835_v60 }
 0x141   : > { %4674 = vmatmul.mubr.msk.bf16.vlgmr.msra.gmra.mrb[8].mxu0 %vm960_vm1, %v5615_v62  ;;  %v1057_v4 = vsel %vm960_vm1, %v5617_v63, 0  ;;  %v5631_v5 = vpack.c.bf16 %v837_v2, %v837_v2 }
 0x142   : > { %4678 = vmatpush3.bf16.xpose.msra.mxu0 %v1011_v3  ;;  %4684 = vmatpush3.bf16.xpose.msra.mxu1 %v1057_v4 }
 0x143   : > { %4679 = vmatprep.mubr.msk.bf16.mxu0 %vm5359_vm0, %v5358_v35  ;;  %4689 = vmatprep.subr.bf16.mxu0 %v5358_v35  ;;  %v1103_v10 = vsel %vm960_vm1, %v5631_v5, 0 }
 0x144   : > { %4695 = vmatprep.subr.bf16.mxu1 %v5089_v1 }
 0x149   : > { %4680 = vmatmul.mubr.msk.bf16.vlgmr.msra.gmra.mrb[12].mxu0 %vm960_vm1, %v5633_v7  ;;  %4686 = vmatmul.mubr.msk.bf16.vlgmr.msra.gmra.mrb[4].mxu1 %vm960_vm1, %v5635_v8 }
 0x14a   : > { %4690 = vmatpush3.bf16.xpose.msra.mxu0 %v1103_v10  ;;  %4696 = vmatpush3.bf16.msra.mxu1 %v5089_v1  ;;  %v5698_v1 = vrot.slane %v913_v54, %v5602_v40 }
 0x14b   : > { %4699 = vmatprep.mubr.msk.bf16.mxu1 %vm960_vm1, %v5608_v51  ;;  %4697 = vmatprep.subr.bf16.mxu1 %v5090_v9 }
 0x14c   : > { %4691 = vmatprep.mubr.msk.bf16.mxu0 %vm5359_vm0, %v5358_v35  ;;  %4939 = vmatprep.subr.msk.bf16.mxu0 %vm1320_vm2, %v1313_v26 }
 0x14e   : > { %4698 = vmatpush3.bf16.msra.mxu1 %v5090_v9 }
 0x14f   : > { %4709 = vmatprep.subr.bf16.mxu1 %v5358_v35 }
 0x151   : > { %4692 = vmatmul.mubr.msk.bf16.vlgmr.msra.gmra.mrb[16].mxu0 %vm960_vm1, %v5648_v11  ;;  %4700 = vmatmul.mubr.msk.bf16.vlgmr.msra.gmra.mrb[8].mxu1 %vm960_vm1, %v5619_v0 }
 0x152   : > { %4711 = vmatprep.mubr.msk.bf16.mxu1 %vm5359_vm0, %v5358_v35  ;;  %4710 = vmatpush3.bf16.msra.mxu1 %v1377_v23 }
 0x153   : > { %4721 = vmatprep.subr.bf16.mxu1 %v5358_v35  ;;  %4704 = vmatpush3.bf16.msra.mxu0 %v1322_v27 }
 0x154   : > { %4715 = vmatprep.subr.bf16.mxu0 %v5358_v35 }
 0x214   : > { %v1001_v32 = vpop.f32.mrb[8].mxu0 }
 0x215   : > { %v5677_v33 = vadd.f32 %v1001_v32, %v5674_v30  ;;  %v4675_v34 = vpop.f32.mrb[9].mxu0 }
 0x216   : > { %v1004_v41 = vpop.f32.mrb[10].mxu0 }
 0x217   : > { %v4676_v42 = vpop.f32.mrb[11].mxu0  ;;  %v1217_v43 = vsel %vm1216_vm3, %v5677_v33, -inf }
 0x218   : > { %1218 = vmax.xlane.f32.xlu0 %v1217_v43 }
 0x21c   : > { %v1047_v46 = vpop.f32.mrb[12].mxu0  ;;  %v1093_v47 = vpop.f32.mrb[4].mxu1 }
 0x21d   : > { %v5688_v48 = vadd.f32 %v1047_v46, %v5682_v44  ;;  %v5691_v49 = vadd.f32 %v1093_v47, %v5685_v45  ;;  %v4681_v52 = vpop.f32.mrb[13].mxu0  ;;  %v4687_v53 = vpop.f32.mrb[5].mxu1 }
 0x21e   : > { %v1050_v55 = vpop.f32.mrb[14].mxu0  ;;  %v1096_v57 = vpop.f32.mrb[6].mxu1 }
 0x21f   : > { %v4682_v58 = vpop.f32.mrb[15].mxu0  ;;  %v4688_v59 = vpop.f32.mrb[7].mxu1  ;;  %v1223_v60 = vsel %vm1216_vm3, %v5691_v49, -inf  ;;  %v1220_v61 = vsel %vm1216_vm3, %v5688_v48, -inf }
 0x220   : > { %1224 = vmax.xlane.f32.xlu0 %v1223_v60  ;;  %1221 = vmax.xlane.f32.xlu1 %v1220_v61 }
 0x224   : > { %v1139_v2 = vpop.f32.mrb[16].mxu0  ;;  %v4701_v3 = vpop.f32.mrb[8].mxu1 }
 0x225   : > { %v5701_v4 = vadd.f32 %v1139_v2, %v5698_v1  ;;  %v4693_v9 = vpop.f32.mrb[17].mxu0  ;;  %v1201_v10 = vpop.f32.mrb[9].mxu1  ;;  %v1235_v23 = vsel %vm1216_vm3, %v4701_v3, -inf }
 0x226   : > { %v1142_v13 = vpop.f32.mrb[18].mxu0  ;;  %v4702_v14 = vpop.f32.mrb[10].mxu1  ;;  %v1229_v16 = vsel %vm1216_vm3, %v1201_v10, -inf }
 0x227   : > { %v4694_v17 = vpop.f32.mrb[19].mxu0  ;;  %1230 = vmax.xlane.f32.xlu0 %v1229_v16  ;;  %v1204_v18 = vpop.f32.mrb[11].mxu1  ;;  %v1226_v21 = vsel %vm1216_vm3, %v5701_v4, -inf  ;;  %v1238_v25 = vsel %vm1216_vm3, %v4702_v14, -inf  ;;  %v5738_v13 = vpack.c.bf16 %v5660_v15, %v5660_v15 }
 0x228   : > { %1227 = vmax.xlane.f32.xlu1 %v1226_v21  ;;  %v1232_v24 = vsel %vm1216_vm3, %v1204_v18, -inf }
 0x22b   : > { %1236 = vmax.xlane.f32.xlu0 %v1235_v23 }
 0x22c   : > { %1233 = vmax.xlane.f32.xlu1 %v1232_v24 }
 0x230   : > { %1239 = vmax.xlane.f32.xlu1 %v1238_v25  ;;  %v5763_v25 = vpack.c.bf16 %v5666_v22, %v5666_v22 }
 0x232   : > { %v1423_v22 = vsel %vm1320_vm2, %v5763_v25, 0 }
 0x241   : > { %1567 = vrot.lane.b32.xlu0 %v5606_v50, %s5361_s2  ;;  %1565 = vrot.lane.b32.xlu1 %v5615_v62, %s5361_s2 }
 0x245   : > { %1665 = vrot.lane.b32.xlu0 %v5635_v8, %s5361_s2  ;;  %1667 = vrot.lane.b32.xlu1 %v5617_v63, %s5361_s2 }
 0x249   : > { %1717 = vrot.lane.b32.xlu0 %v5631_v5, %s5361_s2  ;;  %1617 = vrot.lane.b32.xlu1 %v5613_v56, %s5361_s2 }
 0x24d   : > { %1772 = vrot.lane.b32.xlu0 %v5619_v0, %s5361_s2  ;;  %1615 = vrot.lane.b32.xlu1 %v5633_v7, %s5361_s2 }
 0x251   : > { %1770 = vrot.lane.b32.xlu1 %v5608_v51, %s5361_s2 }
 0x255   : > { %1715 = vrot.lane.b32.xlu1 %v5648_v11, %s5361_s2 }
 0x2a5   : > { %v1219_v28 = vpop.xlane.xlu0 %1218 }
 0x2ad   : > { %v1225_v29 = vpop.xlane.xlu0 %1224  ;;  %v1222_v31 = vpop.xlane.xlu1 %1221 }
 0x2b4   : > { %v1231_v32 = vpop.xlane.xlu0 %1230 }
 0x2b5   : > { %v1241_v34 = vmax.f32 %v1219_v28, %v1231_v32  ;;  %v1228_v36 = vpop.xlane.xlu1 %1227 }
 0x2b7   : > { %v1245_v39 = vsub.f32 %v5677_v33, %v1241_v34  ;;  %v1257_v41 = vsub.f32 %v1201_v10, %v1241_v34 }
 0x2b8   : > { %v1237_v42 = vpop.xlane.xlu0 %1236 }
 0x2b9   : > { %v1249_v43 = vmul.f32 1.442695, %v1245_v39  ;;  %v1243_v46 = vmax.f32 %v1225_v29, %v1237_v42  ;;  %v1234_v47 = vpop.xlane.xlu1 %1233  ;;  %v1261_v54 = vmul.f32 1.442695, %v1257_v41  ;;  %v5091_v42 = vld [vmem:[%s5523_s21 + $0x10] sm:$0xff]  }
 0x2ba   : > { %v1242_v52 = vmax.f32 %v1222_v31, %v1234_v47 }
 0x2bb   : > { %5145 = vpow2.f32 %v1249_v43  ;;  %v1247_v53 = vsub.f32 %v5691_v49, %v1243_v46  ;;  %v1259_v55 = vsub.f32 %v4701_v3, %v1243_v46 }
 0x2bc   : > { %v1258_v57 = vsub.f32 %v1204_v18, %v1242_v52  ;;  %5147 = vpow2.f32 %v1261_v54  ;;  %v1246_v10 = vsub.f32 %v5688_v48, %v1242_v52  ;;  %v1568_v26 = vpop.permute.xlu0 %1567 }
 0x2bd   : > { %v1253_v58 = vmul.f32 1.442695, %v1247_v53  ;;  %v1240_v59 = vpop.xlane.xlu1 %1239  ;;  %v1265_v2 = vmul.f32 1.442695, %v1259_v55  ;;  %v1573_v32 = vsel %vm960_vm1, %v1568_v26, 0  ;;  %v5092_v53 = vld [vmem:[%s5523_s21 + $0x18] sm:$0xff]  }
 0x2be   : > { %v1263_v60 = vmul.f32 1.442695, %v1258_v57  ;;  %v1244_v61 = vmax.f32 %v1228_v36, %v1240_v59  ;;  %v1251_v16 = vmul.f32 1.442695, %v1246_v10  ;;  %v5787_v36 = vpack.c.bf16 %v5662_v19, %v5662_v19 }
 0x2bf   : > { %5149 = vpow2.f32 %v1253_v58 }
 0x2c0   : > { %v1260_v9 = vsub.f32 %v4702_v14, %v1244_v61  ;;  %5151 = vpow2.f32 %v1263_v60  ;;  %v1469_v14 = vsel %vm1320_vm2, %v5738_v13, 0  ;;  %v1248_v18 = vsub.f32 %v5701_v4, %v1244_v61  ;;  %v1666_v19 = vpop.permute.xlu0 %1665 }
 0x2c1   : > { %5153 = vpow2.f32 %v1265_v2  ;;  %v1566_v15 = vpop.permute.xlu1 %1565  ;;  %v1515_v46 = vsel %vm1320_vm2, %v5787_v36, 0 }
 0x2c2   : > { %v1267_v33 = vmul.f32 1.442695, %v1260_v9  ;;  %v1255_v29 = vmul.f32 1.442695, %v1248_v18 }
 0x2c4   : > { %5155 = vpow2.f32 %v1267_v33  ;;  %v1718_v55 = vpop.permute.xlu0 %1717 }
 0x2c5   : > { %v5740_v49 = vpop.eup %5145  ;;  %5157 = vpow2.f32 %v1251_v16  ;;  %v1668_v4 = vpop.permute.xlu1 %1667  ;;  %v1723_v60 = vsel %vm960_vm1, %v1718_v55, 0 }
 0x2c6   : > { %v1297_v3 = vpack.c.bf16 %v5740_v49, %v5740_v49  ;;  %v5749_v48 = vpop.eup %5147  ;;  %5159 = vpow2.f32 %v1255_v29  ;;  %v1673_v43 = vsel %vm960_vm1, %v1668_v4, 0 }
 0x2c8   : > { %4712 = vmatmul.mubr.msk.bf16.vlgmr.msra.gmra.mrb[12].mxu1 %vm1216_vm3, %v1297_v3  ;;  %v1773_v59 = vpop.permute.xlu0 %1772 }
 0x2c9   : > { %4722 = vmatpush3.bf16.msra.mxu1 %v1469_v14  ;;  %4723 = vmatprep.mubr.msk.bf16.mxu1 %vm5359_vm0, %v5358_v35  ;;  %v5752_v17 = vpop.eup %5149  ;;  %v1618_v39 = vpop.permute.xlu1 %1617 }
 0x2ca   : > { %4733 = vmatprep.subr.bf16.mxu1 %v5358_v35  ;;  %v5755_v21 = vpop.eup %5151  ;;  %v1299_v27 = vpack.c.bf16 %v5752_v17, %v5752_v17  ;;  %v1623_v58 = vsel %vm960_vm1, %v1618_v39, 0 }
 0x2cb   : > { %v1311_v23 = vpack.c.bf16 %v5755_v21, %v5749_v48  ;;  %v5759_v24 = vpop.eup %5153 }
 0x2cd   : > { %4705 = vmatprep.mubr.msk.bf16.mxu0 %vm1216_vm3, %v1311_v23  ;;  %v1616_v47 = vpop.permute.xlu1 %1615 }
 0x2ce   : > { %v5767_v28 = vpop.eup %5155 }
 0x2cf   : > { %v1312_v31 = vpack.c.bf16 %v5767_v28, %v5759_v24  ;;  %v5783_v34 = vpop.eup %5157 }
 0x2d0   : > { %4724 = vmatmul.mubr.msk.bf16.vlgmr.msra.gmra.mrb[16].mxu1 %vm1216_vm3, %v1299_v27  ;;  %v1298_v41 = vpack.c.bf16 %v5783_v34, %v5783_v34  ;;  %v5801_v52 = vpop.eup %5159 }
 0x2d1   : > { %4735 = vmatprep.mubr.msk.bf16.mxu1 %vm5359_vm0, %v5358_v35  ;;  %4706 = vmatmul.mubr.msk.bf16.vlgmr.msra.gmra.mrb[20].mxu0 %vm1216_vm3, %v1312_v31  ;;  %v1300_v54 = vpack.c.bf16 %v5801_v52, %v5801_v52  ;;  %v1771_v57 = vpop.permute.xlu1 %1770 }
 0x2d2   : > { %4734 = vmatpush3.bf16.xpose.msra.mxu1 %v1573_v32  ;;  %4716 = vmatpush3.bf16.msra.mxu0 %v1423_v22 }
 0x2d3   : > { %4717 = vmatprep.mubr.msk.bf16.mxu0 %vm5359_vm0, %v5358_v35  ;;  %4727 = vmatprep.subr.bf16.mxu0 %v5358_v35 }
 0x2d4   : > { %4745 = vmatprep.subr.bf16.mxu1 %v5358_v35 }
 0x2d5   : > { %v1716_v61 = vpop.permute.xlu1 %1715 }
 0x2d9   : > { %4736 = vmatmul.mubr.msk.bf16.vlgmr.msra.gmra.mrb[20].mxu1 %vm960_vm1, %v1566_v15  ;;  %4718 = vmatmul.mubr.msk.bf16.vlgmr.msra.gmra.mrb[24].mxu0 %vm1216_vm3, %v1298_v41 }
 0x2da   : > { %4746 = vmatpush3.bf16.xpose.msra.mxu1 %v1673_v43  ;;  %4728 = vmatpush3.bf16.msra.mxu0 %v1515_v46 }
 0x2db   : > { %4747 = vmatprep.mubr.msk.bf16.mxu1 %vm5359_vm0, %v5358_v35  ;;  %4729 = vmatprep.mubr.msk.bf16.mxu0 %vm5359_vm0, %v5358_v35 }
 0x2dc   : > { %4757 = vmatprep.subr.bf16.mxu1 %v5091_v42  ;;  %4739 = vmatprep.subr.bf16.mxu0 %v5358_v35 }
 0x2e1   : > { %4748 = vmatmul.mubr.msk.bf16.vlgmr.msra.gmra.mrb[24].mxu1 %vm960_vm1, %v1666_v19  ;;  %4730 = vmatmul.mubr.msk.bf16.vlgmr.msra.gmra.mrb[28].mxu0 %vm1216_vm3, %v1300_v54 }
 0x2e2   : > { %4758 = vmatpush3.bf16.msra.mxu1 %v5091_v42  ;;  %4761 = vmatprep.mubr.msk.bf16.mxu1 %vm960_vm1, %v1771_v57 }
 0x2e3   : > { %4759 = vmatprep.subr.bf16.mxu1 %v5092_v53  ;;  %4740 = vmatpush3.bf16.xpose.msra.mxu0 %v1623_v58 }
 0x2e4   : > { %4741 = vmatprep.mubr.msk.bf16.mxu0 %vm5359_vm0, %v5358_v35  ;;  %4751 = vmatprep.subr.bf16.mxu0 %v5358_v35 }
 0x2e6   : > { %4760 = vmatpush3.bf16.msra.mxu1 %v5092_v53 }
 0x2e7   : > { %4771 = vmatprep.subr.bf16.mxu1 %v5358_v35 }
 0x2e9   : > { %4762 = vmatmul.mubr.msk.bf16.vlgmr.msra.gmra.mrb[28].mxu1 %vm960_vm1, %v1773_v59 }
 0x2ea   : > { %4773 = vmatprep.mubr.msk.bf16.mxu1 %vm5359_vm0, %v5358_v35  ;;  %4742 = vmatmul.mubr.msk.bf16.vlgmr.msra.gmra.mrb[32].mxu0 %vm960_vm1, %v1616_v47 }
 0x2eb   : > { %4752 = vmatpush3.bf16.xpose.msra.mxu0 %v1723_v60  ;;  %4753 = vmatprep.mubr.msk.bf16.mxu0 %vm5359_vm0, %v5358_v35 }
 0x2f2   : > { %4754 = vmatmul.mubr.msk.bf16.vlgmr.msra.gmra.mrb[36].mxu0 %vm960_vm1, %v1716_v61 }
 0x39b   : > { %v1413_v2 = vpop.f32.mrb[12].mxu1 }
 0x39c   : > { %v4713_v9 = vpop.f32.mrb[13].mxu1 }
 0x39d   : > { %v1416_v33 = vpop.f32.mrb[14].mxu1 }
 0x39e   : > { %v4714_v10 = vpop.f32.mrb[15].mxu1 }
 0x3a3   : > { %v1505_v3 = vpop.f32.mrb[16].mxu1 }
 0x3a4   : > { %v4725_v16 = vpop.f32.mrb[17].mxu1  ;;  %v4707_v14 = vpop.f32.mrb[20].mxu0 }
 0x3a5   : > { %v1508_v15 = vpop.f32.mrb[18].mxu1  ;;  %v5823_v18 = vadd.f32 %v4707_v14, %v1505_v3  ;;  %v1358_v23 = vpop.f32.mrb[21].mxu0 }
 0x3a6   : > { %v4726_v26 = vpop.f32.mrb[19].mxu1  ;;  %v5825_v27 = vadd.f32 %v1413_v2, %v1358_v23  ;;  %v4708_v29 = vpop.f32.mrb[22].mxu0 }
 0x3a7   : > { %v1361_v4 = vpop.f32.mrb[23].mxu0 }
 0x3ac   : > { %v1609_v31 = vpop.f32.mrb[20].mxu1  ;;  %v1459_v22 = vpop.f32.mrb[24].mxu0 }
 0x3ad   : > { %v5828_v32 = vadd.f32 %v1609_v31, %v5674_v30  ;;  %v4737_v39 = vpop.f32.mrb[21].mxu1  ;;  %v5830_v41 = vadd.f32 %v1459_v22, %v1361_v4  ;;  %v4719_v42 = vpop.f32.mrb[25].mxu0 }
 0x3ae   : > { %v1612_v43 = vpop.f32.mrb[22].mxu1  ;;  %v1462_v46 = vpop.f32.mrb[26].mxu0 }
 0x3af   : > { %v4738_v19 = vpop.f32.mrb[23].mxu1  ;;  %v1841_v47 = vsel %vm1216_vm3, %v5828_v32, -inf  ;;  %v4720_v53 = vpop.f32.mrb[27].mxu0 }
 0x3b0   : > { %1842 = vmax.xlane.f32.xlu0 %v1841_v47 }
 0x3b4   : > { %v1709_v54 = vpop.f32.mrb[24].mxu1  ;;  %v1551_v57 = vpop.f32.mrb[28].mxu0 }
 0x3b5   : > { %v5835_v55 = vadd.f32 %v1709_v54, %v5685_v45  ;;  %v4749_v58 = vpop.f32.mrb[25].mxu1  ;;  %v5837_v59 = vadd.f32 %v4708_v29, %v1551_v57  ;;  %v4731_v60 = vpop.f32.mrb[29].mxu0 }
 0x3b6   : > { %v1712_v61 = vpop.f32.mrb[26].mxu1  ;;  %v1554_v2 = vpop.f32.mrb[30].mxu0  ;;  %v4403_v60 = vld [vmem:[%s5533_s15 + $0x4] sm:$0xf] }
 0x3b7   : > { %v4750_v9 = vpop.f32.mrb[27].mxu1  ;;  %v1847_v33 = vsel %vm1216_vm3, %v5835_v55, -inf  ;;  %v4732_v10 = vpop.f32.mrb[31].mxu0  ;;  %4940 = vmatprep.subr.msk.bf16.mxu0 %vm1320_vm2, %v4403_v60  ;;  %v1936_v61 = vsel %vm1320_vm2, %v4403_v60, 0 }
 0x3b8   : > { %1848 = vmax.xlane.f32.xlu0 %v1847_v33  ;;  %4766 = vmatpush3.bf16.msra.mxu0 %v1936_v61 }
 0x3b9   : > { %4777 = vmatprep.subr.bf16.mxu0 %v5358_v35 }
 0x3bc   : > { %v5841_v3 = vpop.f32.mrb[28].mxu1 }
 0x3bd   : > { %v1826_v16 = vpop.f32.mrb[29].mxu1  ;;  %v1659_v14 = vpop.f32.mrb[32].mxu0  ;;  %v1859_v43 = vsel %vm1216_vm3, %v5841_v3, -inf }
 0x3be   : > { %v5843_v15 = vpop.f32.mrb[30].mxu1  ;;  %v1853_v23 = vsel %vm1216_vm3, %v1826_v16, -inf  ;;  %v5847_v26 = vadd.f32 %v1659_v14, %v5682_v44  ;;  %v4743_v29 = vpop.f32.mrb[33].mxu0 }
 0x3bf   : > { %1854 = vmax.xlane.f32.xlu1 %v1853_v23  ;;  %v1829_v4 = vpop.f32.mrb[31].mxu1  ;;  %v1662_v31 = vpop.f32.mrb[34].mxu0  ;;  %v1862_v42 = vsel %vm1216_vm3, %v5843_v15, -inf }
 0x3c0   : > { %v4744_v22 = vpop.f32.mrb[35].mxu0  ;;  %v1844_v39 = vsel %vm1216_vm3, %v5847_v26, -inf  ;;  %v1856_v54 = vsel %vm1216_vm3, %v1829_v4, -inf }
 0x3c1   : > { %1845 = vmax.xlane.f32.xlu0 %v1844_v39 }
 0x3c3   : > { %1863 = vmax.xlane.f32.xlu1 %v1862_v42 }
 0x3c5   : > { %1860 = vmax.xlane.f32.xlu0 %v1859_v43  ;;  %v1759_v46 = vpop.f32.mrb[36].mxu0 }
 0x3c6   : > { %v4755_v19 = vpop.f32.mrb[37].mxu0  ;;  %v5869_v57 = vadd.f32 %v1759_v46, %v5698_v1 }
 0x3c7   : > { %v1762_v47 = vpop.f32.mrb[38].mxu0 }
 0x3c8   : > { %v4756_v53 = vpop.f32.mrb[39].mxu0  ;;  %v1850_v58 = vsel %vm1216_vm3, %v5869_v57, -inf }
 0x3c9   : > { %1857 = vmax.xlane.f32.xlu0 %v1856_v54 }
 0x3d4   : > { %2083 = vrot.lane.b32.xlu1 %v5738_v13, %s5361_s2 }
 0x3df   : > { %1987 = vrot.lane.b32.xlu0 %v5664_v20, %s5361_s2 }
 0x3e3   : > { %2131 = vrot.lane.b32.xlu0 %v5787_v36, %s5361_s2 }
 0x3e7   : > { %2289 = vrot.lane.b32.xlu0 %v5617_v63, %s5362_s4 }
 0x3eb   : > { %2287 = vrot.lane.b32.xlu0 %v5635_v8, %s5362_s4 }
 0x3ef   : > { %2339 = vrot.lane.b32.xlu0 %v5631_v5, %s5362_s4 }
 0x3f3   : > { %2394 = vrot.lane.b32.xlu0 %v5619_v0, %s5362_s4 }
 0x3f8   : > { %1851 = vmax.xlane.f32.xlu1 %v1850_v58 }
 0x409   : > { %2035 = vrot.lane.b32.xlu1 %v5763_v25, %s5361_s2 }
 0x40d   : > { %2189 = vrot.lane.b32.xlu1 %v5606_v50, %s5362_s4 }
 0x411   : > { %2187 = vrot.lane.b32.xlu1 %v5615_v62, %s5362_s4 }
 0x415   : > { %2239 = vrot.lane.b32.xlu1 %v5613_v56, %s5362_s4 }
 0x419   : > { %2237 = vrot.lane.b32.xlu1 %v5633_v7, %s5362_s4 }
 0x41d   : > { %2392 = vrot.lane.b32.xlu1 %v5608_v51, %s5362_s4 }
 0x421   : > { %2337 = vrot.lane.b32.xlu1 %v5648_v11, %s5362_s4 }
 0x43d   : > { %v1843_v2 = vpop.xlane.xlu0 %1842 }
 0x445   : > { %v1849_v9 = vpop.xlane.xlu0 %1848 }
 0x44c   : > { %v1855_v33 = vpop.xlane.xlu1 %1854 }
 0x44d   : > { %v1865_v10 = vmax.f32 %v1843_v2, %v1855_v33 }
 0x44e   : > { %v1846_v23 = vpop.xlane.xlu0 %1845 }
 0x44f   : > { %v1869_v14 = vsub.f32 %v5828_v32, %v1865_v10  ;;  %v1881_v39 = vsub.f32 %v1826_v16, %v1865_v10 }
 0x450   : > { %v1864_v43 = vpop.xlane.xlu1 %1863 }
 0x451   : > { %v1873_v29 = vmul.f32 1.442695, %v1869_v14  ;;  %v1885_v53 = vmul.f32 1.442695, %v1881_v39 }
 0x452   : > { %v1861_v31 = vpop.xlane.xlu0 %1860 }
 0x453   : > { %5161 = vpow2.f32 %v1873_v29  ;;  %v1867_v22 = vmax.f32 %v1849_v9, %v1861_v31 }
 0x454   : > { %v2084_v2 = vpop.permute.xlu1 %2083 }
 0x455   : > { %v1871_v42 = vsub.f32 %v5835_v55, %v1867_v22  ;;  %v2089_v16 = vsel %vm1320_vm2, %v2084_v2, 0 }
 0x456   : > { %v1858_v46 = vpop.xlane.xlu0 %1857 }
 0x457   : > { %v1877_v19 = vmul.f32 1.442695, %v1871_v42  ;;  %v1866_v47 = vmax.f32 %v1846_v23, %v1858_v46  ;;  %v1883_v23 = vsub.f32 %v5841_v3, %v1867_v22 }
 0x459   : > { %5163 = vpow2.f32 %v1877_v19  ;;  %v1882_v54 = vsub.f32 %v1829_v4, %v1866_v47  ;;  %v1889_v39 = vmul.f32 1.442695, %v1883_v23 }
 0x45a   : > { %v1988_v58 = vpop.permute.xlu0 %1987  ;;  %5165 = vpow2.f32 %v1885_v53  ;;  %v1870_v53 = vsub.f32 %v5847_v26, %v1866_v47 }
 0x45b   : > { %v1887_v60 = vmul.f32 1.442695, %v1882_v54  ;;  %v1993_v61 = vsel %vm1320_vm2, %v1988_v58, 0 }
 0x45c   : > { %4772 = vmatpush3.bf16.msra.mxu1 %v1993_v61  ;;  %v1875_v61 = vmul.f32 1.442695, %v1870_v53 }
 0x45d   : > { %v5896_v32 = vpop.eup %5161  ;;  %4783 = vmatprep.subr.bf16.mxu1 %v5358_v35  ;;  %5167 = vpow2.f32 %v1887_v60 }
 0x45e   : > { %v1921_v55 = vpack.c.bf16 %v5896_v32, %v5896_v32  ;;  %5169 = vpow2.f32 %v1889_v39  ;;  %v2132_v54 = vpop.permute.xlu0 %2131 }
 0x460   : > { %4774 = vmatmul.mubr.msk.bf16.vlgmr.msra.gmra.mrb[32].mxu1 %vm1216_vm3, %v1921_v55 }
 0x461   : > { %4784 = vmatpush3.bf16.msra.mxu1 %v2089_v16  ;;  %4785 = vmatprep.mubr.msk.bf16.mxu1 %vm5359_vm0, %v5358_v35 }
 0x462   : > { %4795 = vmatprep.subr.bf16.mxu1 %v5358_v35  ;;  %v2290_v22 = vpop.permute.xlu0 %2289 }
 0x463   : > { %v5906_v4 = vpop.eup %5163  ;;  %v2295_v26 = vsel %vm960_vm1, %v2290_v22, 0 }
 0x464   : > { %v1923_v9 = vpack.c.bf16 %v5906_v4, %v5906_v4  ;;  %v5910_v33 = vpop.eup %5165 }
 0x467   : > { %v5913_v10 = vpop.eup %5167 }
 0x468   : > { %4786 = vmatmul.mubr.msk.bf16.vlgmr.msra.gmra.mrb[36].mxu1 %vm1216_vm3, %v1923_v9  ;;  %v1925_v14 = vpack.c.bf16 %v5913_v10, %v5910_v33  ;;  %v5927_v55 = vpop.eup %5169 }
 0x469   : > { %4797 = vmatprep.mubr.msk.bf16.mxu1 %vm5359_vm0, %v5358_v35 }
 0x46a   : > { %4767 = vmatprep.mubr.msk.bf16.mxu0 %vm1216_vm3, %v1925_v14 }
 0x485   : > { %v1852_v29 = vpop.xlane.xlu1 %1851 }
 0x486   : > { %v1868_v31 = vmax.f32 %v1852_v29, %v1864_v43  ;;  %v5093_v43 = vld [vmem:[%s5523_s21 + $0x20] sm:$0xff]   ;;  %v5094_v29 = vld [vmem:[%s5523_s21 + $0x28] sm:$0xff]  }
 0x488   : > { %v1884_v42 = vsub.f32 %v5843_v15, %v1868_v31  ;;  %v1872_v15 = vsub.f32 %v5869_v57, %v1868_v31  ;;  %v2288_v57 = vpop.permute.xlu0 %2287 }
 0x489   : > { %v2036_v46 = vpop.permute.xlu1 %2035 }
 0x48a   : > { %v1891_v19 = vmul.f32 1.442695, %v1884_v42  ;;  %v1879_v16 = vmul.f32 1.442695, %v1872_v15  ;;  %v2041_v23 = vsel %vm1320_vm2, %v2036_v46, 0 }
 0x48c   : > { %5171 = vpow2.f32 %v1891_v19  ;;  %v2340_v42 = vpop.permute.xlu0 %2339  ;;  %v2137_v19 = vsel %vm1320_vm2, %v2132_v54, 0 }
 0x48d   : > { %v2190_v58 = vpop.permute.xlu1 %2189  ;;  %5173 = vpow2.f32 %v1875_v61  ;;  %v2345_v61 = vsel %vm960_vm1, %v2340_v42, 0 }
 0x48e   : > { %v2195_v60 = vsel %vm960_vm1, %v2190_v58, 0  ;;  %5175 = vpow2.f32 %v1879_v16 }
 0x48f   : > { %4796 = vmatpush3.bf16.xpose.msra.mxu1 %v2195_v60 }
 0x490   : > { %4807 = vmatprep.subr.bf16.mxu1 %v5358_v35  ;;  %v2395_v58 = vpop.permute.xlu0 %2394 }
 0x491   : > { %v2188_v3 = vpop.permute.xlu1 %2187 }
 0x495   : > { %v2240_v2 = vpop.permute.xlu1 %2239 }
 0x496   : > { %4798 = vmatmul.mubr.msk.bf16.vlgmr.msra.gmra.mrb[40].mxu1 %vm960_vm1, %v2188_v3  ;;  %v5931_v47 = vpop.eup %5171  ;;  %v2245_v60 = vsel %vm960_vm1, %v2240_v2, 0 }
 0x497   : > { %4808 = vmatpush3.bf16.xpose.msra.mxu1 %v2295_v26  ;;  %4809 = vmatprep.mubr.msk.bf16.mxu1 %vm5359_vm0, %v5358_v35  ;;  %v1926_v9 = vpack.c.bf16 %v5931_v47, %v5927_v55  ;;  %v5943_v31 = vpop.eup %5173 }
 0x498   : > { %4819 = vmatprep.subr.bf16.mxu1 %v5093_v43  ;;  %v1922_v46 = vpack.c.bf16 %v5943_v31, %v5943_v31  ;;  %v5954_v53 = vpop.eup %5175 }
 0x499   : > { %v2238_v14 = vpop.permute.xlu1 %2237  ;;  %4768 = vmatmul.mubr.msk.bf16.vlgmr.msra.gmra.mrb[40].mxu0 %vm1216_vm3, %v1926_v9  ;;  %v1924_v54 = vpack.c.bf16 %v5954_v53, %v5954_v53 }
 0x49a   : > { %4778 = vmatpush3.bf16.msra.mxu0 %v2041_v23  ;;  %4779 = vmatprep.mubr.msk.bf16.mxu0 %vm5359_vm0, %v5358_v35 }
 0x49b   : > { %4789 = vmatprep.subr.bf16.mxu0 %v5358_v35 }
 0x49d   : > { %v2393_v39 = vpop.permute.xlu1 %2392 }
 0x49e   : > { %4810 = vmatmul.mubr.msk.bf16.vlgmr.msra.gmra.mrb[44].mxu1 %vm960_vm1, %v2288_v57 }
 0x49f   : > { %4820 = vmatpush3.bf16.msra.mxu1 %v5093_v43  ;;  %4823 = vmatprep.mubr.msk.bf16.mxu1 %vm960_vm1, %v2393_v39 }
 0x4a0   : > { %4821 = vmatprep.subr.bf16.mxu1 %v5094_v29 }
 0x4a1   : > { %4780 = vmatmul.mubr.msk.bf16.vlgmr.msra.gmra.mrb[44].mxu0 %vm1216_vm3, %v1922_v46  ;;  %v2338_v3 = vpop.permute.xlu1 %2337 }
 0x4a2   : > { %4790 = vmatpush3.bf16.msra.mxu0 %v2137_v19  ;;  %4791 = vmatprep.mubr.msk.bf16.mxu0 %vm5359_vm0, %v5358_v35 }
 0x4a3   : > { %4822 = vmatpush3.bf16.msra.mxu1 %v5094_v29  ;;  %4801 = vmatprep.subr.bf16.mxu0 %v5358_v35 }
 0x4a4   : > { %4833 = vmatprep.subr.bf16.mxu1 %v5358_v35 }
 0x4a6   : > { %4824 = vmatmul.mubr.msk.bf16.vlgmr.msra.gmra.mrb[48].mxu1 %vm960_vm1, %v2395_v58 }
 0x4a7   : > { %4835 = vmatprep.mubr.msk.bf16.mxu1 %vm5359_vm0, %v5358_v35 }
 0x4a9   : > { %4792 = vmatmul.mubr.msk.bf16.vlgmr.msra.gmra.mrb[48].mxu0 %vm1216_vm3, %v1924_v54 }
 0x4aa   : > { %4803 = vmatprep.mubr.msk.bf16.mxu0 %vm5359_vm0, %v5358_v35 }
 0x4ab   : > { %4802 = vmatpush3.bf16.xpose.msra.mxu0 %v2245_v60 }
 0x4ac   : > { %4813 = vmatprep.subr.bf16.mxu0 %v5358_v35 }
 0x4b2   : > { %4804 = vmatmul.mubr.msk.bf16.vlgmr.msra.gmra.mrb[52].mxu0 %vm960_vm1, %v2238_v14 }
 0x4b3   : > { %4814 = vmatpush3.bf16.xpose.msra.mxu0 %v2345_v61  ;;  %4815 = vmatprep.mubr.msk.bf16.mxu0 %vm5359_vm0, %v5358_v35 }
 0x4ba   : > { %4816 = vmatmul.mubr.msk.bf16.vlgmr.msra.gmra.mrb[56].mxu0 %vm960_vm1, %v2338_v3 }
 0x533   : > { %v2029_v22 = vpop.f32.mrb[32].mxu1 }
 0x534   : > { %v4775_v15 = vpop.f32.mrb[33].mxu1 }
 0x535   : > { %v2032_v43 = vpop.f32.mrb[34].mxu1 }
 0x536   : > { %v4776_v2 = vpop.f32.mrb[35].mxu1 }
 0x53b   : > { %v2125_v26 = vpop.f32.mrb[36].mxu1 }
 0x53c   : > { %v4787_v16 = vpop.f32.mrb[37].mxu1 }
 0x53d   : > { %v2128_v9 = vpop.f32.mrb[38].mxu1 }
 0x53e   : > { %v4788_v57 = vpop.f32.mrb[39].mxu1 }
 0x569   : > { %v2231_v23 = vpop.f32.mrb[40].mxu1 }
 0x56a   : > { %v5973_v29 = vadd.f32 %v2231_v23, %v5674_v30  ;;  %v4799_v14 = vpop.f32.mrb[41].mxu1 }
 0x56b   : > { %v2234_v39 = vpop.f32.mrb[42].mxu1 }
 0x56c   : > { %v4800_v42 = vpop.f32.mrb[43].mxu1  ;;  %v2463_v46 = vsel %vm1216_vm3, %v5973_v29, -inf  ;;  %v4769_v19 = vpop.f32.mrb[40].mxu0 }
 0x56d   : > { %2464 = vmax.xlane.f32.xlu0 %v2463_v46  ;;  %v5977_v58 = vadd.f32 %v4769_v19, %v2125_v26  ;;  %v1972_v54 = vpop.f32.mrb[41].mxu0 }
 0x56e   : > { %v5979_v60 = vadd.f32 %v2029_v22, %v1972_v54  ;;  %v4770_v61 = vpop.f32.mrb[42].mxu0 }
 0x56f   : > { %v1975_v3 = vpop.f32.mrb[43].mxu0 }
 0x571   : > { %v2331_v15 = vpop.f32.mrb[44].mxu1 }
 0x572   : > { %v5982_v43 = vadd.f32 %v2331_v15, %v5685_v45  ;;  %v4811_v2 = vpop.f32.mrb[45].mxu1 }
 0x573   : > { %v2334_v16 = vpop.f32.mrb[46].mxu1 }
 0x574   : > { %v4812_v9 = vpop.f32.mrb[47].mxu1  ;;  %v2469_v57 = vsel %vm1216_vm3, %v5982_v43, -inf  ;;  %v2077_v23 = vpop.f32.mrb[44].mxu0 }
 0x575   : > { %2470 = vmax.xlane.f32.xlu0 %v2469_v57  ;;  %v5986_v14 = vadd.f32 %v2077_v23, %v1975_v3  ;;  %v4781_v26 = vpop.f32.mrb[45].mxu0 }
 0x576   : > { %v2080_v39 = vpop.f32.mrb[46].mxu0 }
 0x577   : > { %v4782_v22 = vpop.f32.mrb[47].mxu0 }
 0x579   : > { %v5988_v42 = vpop.f32.mrb[48].mxu1 }
 0x57a   : > { %v5990_v46 = vpop.f32.mrb[49].mxu1 }
 0x57b   : > { %v5992_v19 = vpop.f32.mrb[50].mxu1  ;;  %v2475_v54 = vsel %vm1216_vm3, %v5990_v46, -inf }
 0x57c   : > { %2476 = vmax.xlane.f32.xlu1 %v2475_v54  ;;  %v5996_v15 = vpop.f32.mrb[51].mxu1  ;;  %v2173_v2 = vpop.f32.mrb[48].mxu0  ;;  %v2484_v57 = vsel %vm1216_vm3, %v5992_v19, -inf }
 0x57d   : > { %v5998_v16 = vadd.f32 %v4770_v61, %v2173_v2  ;;  %v4793_v3 = vpop.f32.mrb[49].mxu0  ;;  %v2481_v61 = vsel %vm1216_vm3, %v5988_v42, -inf }
 0x57e   : > { %v2176_v9 = vpop.f32.mrb[50].mxu0 }
 0x57f   : > { %v4794_v23 = vpop.f32.mrb[51].mxu0 }
 0x580   : > { %2485 = vmax.xlane.f32.xlu1 %v2484_v57  ;;  %v2478_v57 = vsel %vm1216_vm3, %v5996_v15, -inf }
 0x585   : > { %v2281_v26 = vpop.f32.mrb[52].mxu0 }
 0x586   : > { %v6003_v39 = vadd.f32 %v2281_v26, %v5682_v44  ;;  %v4805_v22 = vpop.f32.mrb[53].mxu0 }
 0x587   : > { %v2284_v12 = vpop.f32.mrb[54].mxu0 }
 0x588   : > { %v4806_v6 = vpop.f32.mrb[55].mxu0  ;;  %v2466_v54 = vsel %vm1216_vm3, %v6003_v39, -inf }
 0x589   : > { %2467 = vmax.xlane.f32.xlu0 %v2466_v54 }
 0x58d   : > { %2482 = vmax.xlane.f32.xlu0 %v2481_v61  ;;  %v2381_v2 = vpop.f32.mrb[56].mxu0 }
 0x58e   : > { %v4817_v3 = vpop.f32.mrb[57].mxu0  ;;  %v6018_v6 = vadd.f32 %v2381_v2, %v5698_v1 }
 0x58f   : > { %v2384_v9 = vpop.f32.mrb[58].mxu0 }
 0x590   : > { %v4818_v23 = vpop.f32.mrb[59].mxu0  ;;  %v2472_v12 = vsel %vm1216_vm3, %v6018_v6, -inf }
 0x591   : > { %2705 = vrot.lane.b32.xlu1 %v5738_v13, %s5362_s4  ;;  %2479 = vmax.xlane.f32.xlu0 %v2478_v57 }
 0x5a7   : > { %2609 = vrot.lane.b32.xlu0 %v5664_v20, %s5362_s4 }
 0x5ab   : > { %2753 = vrot.lane.b32.xlu0 %v5787_v36, %s5362_s4 }
 0x5af   : > { %2911 = vrot.lane.b32.xlu0 %v5617_v63, %s5363_s19  ;;  %v4422_v63 = vld [vmem:[%s5533_s15 + $0x8] sm:$0xf] }
 0x5b0   : > { %4941 = vmatprep.subr.msk.bf16.mxu0 %vm1320_vm2, %v4422_v63 }
 0x5b3   : > { %2909 = vrot.lane.b32.xlu0 %v5635_v8, %s5363_s19  ;;  %v2558_v8 = vsel %vm1320_vm2, %v4422_v63, 0 }
 0x5b4   : > { %4828 = vmatpush3.bf16.msra.mxu0 %v2558_v8 }
 0x5b5   : > { %2473 = vmax.xlane.f32.xlu1 %v2472_v12  ;;  %4839 = vmatprep.subr.bf16.mxu0 %v5358_v35 }
 0x5b7   : > { %2961 = vrot.lane.b32.xlu0 %v5631_v5, %s5363_s19 }
 0x5bb   : > { %3016 = vrot.lane.b32.xlu0 %v5619_v0, %s5363_s19 }
 0x5c6   : > { %2657 = vrot.lane.b32.xlu1 %v5763_v25, %s5362_s4 }
 0x5ca   : > { %2811 = vrot.lane.b32.xlu1 %v5606_v50, %s5363_s19 }
 0x5ce   : > { %2809 = vrot.lane.b32.xlu1 %v5615_v62, %s5363_s19 }
 0x5d2   : > { %2861 = vrot.lane.b32.xlu1 %v5613_v56, %s5363_s19 }
 0x5d6   : > { %2859 = vrot.lane.b32.xlu1 %v5633_v7, %s5363_s19 }
 0x5da   : > { %3014 = vrot.lane.b32.xlu1 %v5608_v51, %s5363_s19 }
 0x5de   : > { %2959 = vrot.lane.b32.xlu1 %v5648_v11, %s5363_s19 }
 0x5fa   : > { %v2465_v62 = vpop.xlane.xlu0 %2464 }
 0x602   : > { %v2471_v26 = vpop.xlane.xlu0 %2470 }
 0x609   : > { %v2477_v50 = vpop.xlane.xlu1 %2476 }
 0x60a   : > { %v2487_v0 = vmax.f32 %v2465_v62, %v2477_v50 }
 0x60c   : > { %v2491_v5 = vsub.f32 %v5973_v29, %v2487_v0  ;;  %v2503_v2 = vsub.f32 %v5990_v46, %v2487_v0 }
 0x60d   : > { %v2486_v3 = vpop.xlane.xlu1 %2485 }
 0x60e   : > { %v2495_v22 = vmul.f32 1.442695, %v2491_v5  ;;  %v2507_v11 = vmul.f32 1.442695, %v2503_v2 }
 0x610   : > { %5177 = vpow2.f32 %v2495_v22 }
 0x611   : > { %v2706_v50 = vpop.permute.xlu1 %2705 }
 0x612   : > { %v2711_v46 = vsel %vm1320_vm2, %v2706_v50, 0 }
 0x616   : > { %v2468_v54 = vpop.xlane.xlu0 %2467 }
 0x61a   : > { %v2483_v61 = vpop.xlane.xlu0 %2482  ;;  %v6052_v12 = vpop.eup %5177 }
 0x61b   : > { %v2489_v56 = vmax.f32 %v2471_v26, %v2483_v61 }
 0x61d   : > { %v2493_v7 = vsub.f32 %v5982_v43, %v2489_v56  ;;  %v2543_v43 = vpack.c.bf16 %v6052_v12, %v6052_v12  ;;  %v2505_v22 = vsub.f32 %v5988_v42, %v2489_v56 }
 0x61e   : > { %v2480_v51 = vpop.xlane.xlu0 %2479 }
 0x61f   : > { %v2499_v9 = vmul.f32 1.442695, %v2493_v7  ;;  %v2488_v23 = vmax.f32 %v2468_v54, %v2480_v51  ;;  %v2511_v2 = vmul.f32 1.442695, %v2505_v22 }
 0x621   : > { %5179 = vpow2.f32 %v2499_v9  ;;  %v2504_v57 = vsub.f32 %v5996_v15, %v2488_v23 }
 0x622   : > { %v2610_v29 = vpop.permute.xlu0 %2609  ;;  %5181 = vpow2.f32 %v2507_v11  ;;  %v2492_v11 = vsub.f32 %v6003_v39, %v2488_v23 }
 0x623   : > { %v2509_v63 = vmul.f32 1.442695, %v2504_v57  ;;  %v2615_v8 = vsel %vm1320_vm2, %v2610_v29, 0 }
 0x624   : > { %4834 = vmatpush3.bf16.msra.mxu1 %v2615_v8  ;;  %v2497_v8 = vmul.f32 1.442695, %v2492_v11 }
 0x625   : > { %4845 = vmatprep.subr.bf16.mxu1 %v5358_v35  ;;  %5183 = vpow2.f32 %v2509_v63 }
 0x626   : > { %5185 = vpow2.f32 %v2511_v2  ;;  %v2754_v57 = vpop.permute.xlu0 %2753 }
 0x627   : > { %4836 = vmatmul.mubr.msk.bf16.vlgmr.msra.gmra.mrb[52].mxu1 %vm1216_vm3, %v2543_v43 }
 0x628   : > { %4846 = vmatpush3.bf16.msra.mxu1 %v2711_v46  ;;  %4847 = vmatprep.mubr.msk.bf16.mxu1 %vm5359_vm0, %v5358_v35 }
 0x629   : > { %4857 = vmatprep.subr.bf16.mxu1 %v5358_v35 }
 0x62a   : > { %v2912_v56 = vpop.permute.xlu0 %2911 }
 0x62b   : > { %v6063_v15 = vpop.eup %5179  ;;  %v2917_v39 = vsel %vm960_vm1, %v2912_v56, 0 }
 0x62c   : > { %v2545_v62 = vpack.c.bf16 %v6063_v15, %v6063_v15  ;;  %v6067_v0 = vpop.eup %5181 }
 0x62f   : > { %4848 = vmatmul.mubr.msk.bf16.vlgmr.msra.gmra.mrb[56].mxu1 %vm1216_vm3, %v2545_v62  ;;  %v6070_v5 = vpop.eup %5183 }
 0x630   : > { %4859 = vmatprep.mubr.msk.bf16.mxu1 %vm5359_vm0, %v5358_v35  ;;  %v2547_v26 = vpack.c.bf16 %v6070_v5, %v6067_v0  ;;  %v6084_v43 = vpop.eup %5185 }
 0x632   : > { %4829 = vmatprep.mubr.msk.bf16.mxu0 %vm1216_vm3, %v2547_v26 }
 0x642   : > { %v2474_v54 = vpop.xlane.xlu1 %2473 }
 0x643   : > { %v2490_v61 = vmax.f32 %v2474_v54, %v2486_v3  ;;  %v5095_v3 = vld [vmem:[%s5523_s21 + $0x30] sm:$0xff]   ;;  %v5096_v54 = vld [vmem:[%s5523_s21 + $0x38] sm:$0xff]   ;;  %s6522_s21 = sld [smem:[#allocation7_spill]] }
 0x645   : > { %v2506_v7 = vsub.f32 %v5992_v19, %v2490_v61  ;;  %v2494_v19 = vsub.f32 %v6018_v6, %v2490_v61  ;;  %v2910_v6 = vpop.permute.xlu0 %2909 }
 0x646   : > { %v2658_v51 = vpop.permute.xlu1 %2657 }
 0x647   : > { %v2513_v9 = vmul.f32 1.442695, %v2506_v7  ;;  %v2501_v46 = vmul.f32 1.442695, %v2494_v19  ;;  %v2663_v22 = vsel %vm1320_vm2, %v2658_v51, 0 }
 0x649   : > { %5187 = vpow2.f32 %v2513_v9  ;;  %v2962_v7 = vpop.permute.xlu0 %2961  ;;  %v2759_v9 = vsel %vm1320_vm2, %v2754_v57, 0 }
 0x64a   : > { %v2812_v29 = vpop.permute.xlu1 %2811  ;;  %5189 = vpow2.f32 %v2497_v8  ;;  %v2967_v8 = vsel %vm960_vm1, %v2962_v7, 0 }
 0x64b   : > { %v2817_v63 = vsel %vm960_vm1, %v2812_v29, 0  ;;  %5191 = vpow2.f32 %v2501_v46 }
 0x64c   : > { %4858 = vmatpush3.bf16.xpose.msra.mxu1 %v2817_v63 }
 0x64d   : > { %4869 = vmatprep.subr.bf16.mxu1 %v5358_v35  ;;  %v3017_v29 = vpop.permute.xlu0 %3016 }
 0x64e   : > { %v2810_v42 = vpop.permute.xlu1 %2809 }
 0x652   : > { %v2862_v50 = vpop.permute.xlu1 %2861 }
 0x653   : > { %4860 = vmatmul.mubr.msk.bf16.vlgmr.msra.gmra.mrb[60].mxu1 %vm960_vm1, %v2810_v42  ;;  %v6088_v23 = vpop.eup %5187  ;;  %v2867_v63 = vsel %vm960_vm1, %v2862_v50, 0 }
 0x654   : > { %4870 = vmatpush3.bf16.xpose.msra.mxu1 %v2917_v39  ;;  %4871 = vmatprep.mubr.msk.bf16.mxu1 %vm5359_vm0, %v5358_v35  ;;  %v2548_v62 = vpack.c.bf16 %v6088_v23, %v6084_v43  ;;  %v6100_v61 = vpop.eup %5189 }
 0x655   : > { %4881 = vmatprep.subr.bf16.mxu1 %v5095_v3  ;;  %v2544_v51 = vpack.c.bf16 %v6100_v61, %v6100_v61  ;;  %v6111_v11 = vpop.eup %5191 }
 0x656   : > { %v2860_v26 = vpop.permute.xlu1 %2859  ;;  %4830 = vmatmul.mubr.msk.bf16.vlgmr.msra.gmra.mrb[60].mxu0 %vm1216_vm3, %v2548_v62  ;;  %v2546_v57 = vpack.c.bf16 %v6111_v11, %v6111_v11 }
 0x657   : > { %4840 = vmatpush3.bf16.msra.mxu0 %v2663_v22  ;;  %4841 = vmatprep.mubr.msk.bf16.mxu0 %vm5359_vm0, %v5358_v35 }
 0x658   : > { %4851 = vmatprep.subr.bf16.mxu0 %v5358_v35 }
 0x65a   : > { %v3015_v2 = vpop.permute.xlu1 %3014 }
 0x65b   : > { %4872 = vmatmul.mubr.msk.bf16.vlgmr.msra.gmra.mrb[64].mxu1 %vm960_vm1, %v2910_v6 }
 0x65c   : > { %4882 = vmatpush3.bf16.msra.mxu1 %v5095_v3  ;;  %4885 = vmatprep.mubr.msk.bf16.mxu1 %vm960_vm1, %v3015_v2 }
 0x65d   : > { %4883 = vmatprep.subr.bf16.mxu1 %v5096_v54 }
 0x65e   : > { %4842 = vmatmul.mubr.msk.bf16.vlgmr.msra.gmra.mrb[64].mxu0 %vm1216_vm3, %v2544_v51  ;;  %v2960_v42 = vpop.permute.xlu1 %2959 }
 0x65f   : > { %4852 = vmatpush3.bf16.msra.mxu0 %v2759_v9  ;;  %4853 = vmatprep.mubr.msk.bf16.mxu0 %vm5359_vm0, %v5358_v35 }
 0x660   : > { %4884 = vmatpush3.bf16.msra.mxu1 %v5096_v54  ;;  %4863 = vmatprep.subr.bf16.mxu0 %v5358_v35 }
 0x661   : > { %4895 = vmatprep.subr.bf16.mxu1 %v5358_v35 }
 0x663   : > { %4886 = vmatmul.mubr.msk.bf16.vlgmr.msra.gmra.mrb[68].mxu1 %vm960_vm1, %v3017_v29 }
 0x664   : > { %4897 = vmatprep.mubr.msk.bf16.mxu1 %vm5359_vm0, %v5358_v35 }
 0x666   : > { %4854 = vmatmul.mubr.msk.bf16.vlgmr.msra.gmra.mrb[68].mxu0 %vm1216_vm3, %v2546_v57 }
 0x667   : > { %4865 = vmatprep.mubr.msk.bf16.mxu0 %vm5359_vm0, %v5358_v35 }
 0x668   : > { %4864 = vmatpush3.bf16.xpose.msra.mxu0 %v2867_v63 }
 0x669   : > { %4875 = vmatprep.subr.bf16.mxu0 %v5358_v35 }
 0x66f   : > { %4866 = vmatmul.mubr.msk.bf16.vlgmr.msra.gmra.mrb[72].mxu0 %vm960_vm1, %v2860_v26 }
 0x670   : > { %4876 = vmatpush3.bf16.xpose.msra.mxu0 %v2967_v8  ;;  %4877 = vmatprep.mubr.msk.bf16.mxu0 %vm5359_vm0, %v5358_v35 }
 0x677   : > { %4878 = vmatmul.mubr.msk.bf16.vlgmr.msra.gmra.mrb[76].mxu0 %vm960_vm1, %v2960_v42 }
 0x6fa   : > { %v2651_v56 = vpop.f32.mrb[52].mxu1 }
 0x6fb   : > { %v4837_v19 = vpop.f32.mrb[53].mxu1 }
 0x6fc   : > { %v2654_v3 = vpop.f32.mrb[54].mxu1 }
 0x6fd   : > { %v4838_v50 = vpop.f32.mrb[55].mxu1 }
 0x702   : > { %v2747_v39 = vpop.f32.mrb[56].mxu1 }
 0x703   : > { %v4849_v46 = vpop.f32.mrb[57].mxu1 }
 0x704   : > { %v2750_v62 = vpop.f32.mrb[58].mxu1 }
 0x705   : > { %v4850_v6 = vpop.f32.mrb[59].mxu1 }
 0x726   : > { %v2853_v22 = vpop.f32.mrb[60].mxu1 }
 0x727   : > { %v6130_v54 = vadd.f32 %v2853_v22, %v5674_v30  ;;  %v4861_v26 = vpop.f32.mrb[61].mxu1 }
 0x728   : > { %v2856_v2 = vpop.f32.mrb[62].mxu1 }
 0x729   : > { %v4862_v7 = vpop.f32.mrb[63].mxu1  ;;  %v3085_v51 = vsel %vm1216_vm3, %v6130_v54, -inf  ;;  %v4831_v9 = vpop.f32.mrb[60].mxu0 }
 0x72a   : > { %3086 = vmax.xlane.f32.xlu0 %v3085_v51  ;;  %v6134_v29 = vadd.f32 %v4831_v9, %v2747_v39  ;;  %v2594_v57 = vpop.f32.mrb[61].mxu0 }
 0x72b   : > { %v6136_v63 = vadd.f32 %v2651_v56, %v2594_v57  ;;  %v4832_v8 = vpop.f32.mrb[62].mxu0 }
 0x72c   : > { %v2597_v42 = vpop.f32.mrb[63].mxu0 }
 0x72e   : > { %v2953_v19 = vpop.f32.mrb[64].mxu1 }
 0x72f   : > { %v6139_v3 = vadd.f32 %v2953_v19, %v5685_v45  ;;  %v4873_v30 = vpop.f32.mrb[65].mxu1 }
 0x730   : > { %v2956_v50 = vpop.f32.mrb[66].mxu1 }
 0x731   : > { %v4874_v46 = vpop.f32.mrb[67].mxu1  ;;  %v3091_v62 = vsel %vm1216_vm3, %v6139_v3, -inf  ;;  %v2699_v6 = vpop.f32.mrb[64].mxu0 }
 0x732   : > { %3092 = vmax.xlane.f32.xlu0 %v3091_v62  ;;  %v6143_v22 = vadd.f32 %v2699_v6, %v2597_v42  ;;  %v4843_v39 = vpop.f32.mrb[65].mxu0 }
 0x733   : > { %v2702_v26 = vpop.f32.mrb[66].mxu0 }
 0x734   : > { %v4844_v56 = vpop.f32.mrb[67].mxu0 }
 0x736   : > { %v6145_v2 = vpop.f32.mrb[68].mxu1 }
 0x737   : > { %v6147_v7 = vpop.f32.mrb[69].mxu1  ;;  %v3103_v62 = vsel %vm1216_vm3, %v6145_v2, -inf }
 0x738   : > { %v6149_v51 = vpop.f32.mrb[70].mxu1  ;;  %v3097_v45 = vsel %vm1216_vm3, %v6147_v7, -inf }
 0x739   : > { %3098 = vmax.xlane.f32.xlu0 %v3097_v45  ;;  %v6153_v9 = vpop.f32.mrb[71].mxu1  ;;  %v2795_v57 = vpop.f32.mrb[68].mxu0 }
 0x73a   : > { %v6155_v19 = vadd.f32 %v4832_v8, %v2795_v57  ;;  %v4855_v42 = vpop.f32.mrb[69].mxu0  ;;  %v3100_v50 = vsel %vm1216_vm3, %v6153_v9, -inf }
 0x73b   : > { %v2798_v30 = vpop.f32.mrb[70].mxu0 }
 0x73c   : > { %v4856_v46 = vpop.f32.mrb[71].mxu0 }
 0x73d   : > { %3101 = vmax.xlane.f32.xlu0 %v3100_v50 }
 0x741   : > { %3104 = vmax.xlane.f32.xlu0 %v3103_v62 }
 0x742   : > { %v2903_v6 = vpop.f32.mrb[72].mxu0 }
 0x743   : > { %v6162_v39 = vadd.f32 %v2903_v6, %v5682_v44  ;;  %v4867_v26 = vpop.f32.mrb[73].mxu0  ;;  %v3106_v44 = vsel %vm1216_vm3, %v6149_v51, -inf }
 0x744   : > { %v2906_v56 = vpop.f32.mrb[74].mxu0  ;;  %v1911_v26 = vsel %vm1216_vm3, %v5927_v55, 0.0  ;;  %v1902_v55 = vsel %vm1216_vm3, %v5954_v53, 0.0  ;;  %v2524_v53 = vsel %vm1216_vm3, %v6111_v11, 0.0 }
 0x745   : > { %v4868_v45 = vpop.f32.mrb[75].mxu0  ;;  %v3088_v8 = vsel %vm1216_vm3, %v6162_v39, -inf }
 0x746   : > { %3089 = vmax.xlane.f32.xlu1 %v3088_v8 }
 0x74a   : > { %v3003_v57 = vpop.f32.mrb[76].mxu0 }
 0x74b   : > { %v6167_v42 = vadd.f32 %v3003_v57, %v5698_v1  ;;  %v4879_v30 = vpop.f32.mrb[77].mxu0  ;;  %v4441_v1 = vld [vmem:[%s5533_s15 + $0xc] sm:$0xf]  ;;  %s6524_s15 = sld [smem:[#allocation24_spill]] }
 0x74c   : > { %v3006_v50 = vpop.f32.mrb[78].mxu0  ;;  %4942 = vmatprep.subr.msk.bf16.mxu0 %vm1320_vm2, %v4441_v1  ;;  %v3180_v6 = vsel %vm1320_vm2, %v4441_v1, 0 }
 0x74d   : > { %v4880_v46 = vpop.f32.mrb[79].mxu0  ;;  %v3094_v62 = vsel %vm1216_vm3, %v6167_v42, -inf  ;;  %4890 = vmatpush3.bf16.msra.mxu0 %v3180_v6 }
 0x74e   : > { %3095 = vmax.xlane.f32.xlu1 %v3094_v62  ;;  %4901 = vmatprep.subr.bf16.mxu0 %v5358_v35 }
 0x752   : > { %3107 = vmax.xlane.f32.xlu1 %v3106_v44 }
 0x757   : > { %3231 = vrot.lane.b32.xlu0 %v5664_v20, %s5363_s19  ;;  %v1893_v20 = vsel %vm1216_vm3, %v5896_v32, 0.0  ;;  %v2515_v32 = vsel %vm1216_vm3, %v6052_v12, 0.0  ;;  %v2533_v12 = vsel %vm1216_vm3, %v6084_v43, 0.0  ;;  %v2536_v43 = vsel %vm1216_vm3, %v6088_v23, 0.0 }
 0x763   : > { %3279 = vrot.lane.b32.xlu1 %v5763_v25, %s5363_s19  ;;  %v1905_v25 = vsel %vm1216_vm3, %v5910_v33, 0.0  ;;  %v2527_v33 = vsel %vm1216_vm3, %v6067_v0, 0.0  ;;  %v1914_v0 = vsel %vm1216_vm3, %v5931_v47, 0.0 }
 0x767   : > { %3327 = vrot.lane.b32.xlu1 %v5738_v13, %s5363_s19  ;;  %v1908_v13 = vsel %vm1216_vm3, %v5913_v10, 0.0  ;;  %v1896_v10 = vsel %vm1216_vm3, %v5943_v31, 0.0  ;;  %v2518_v31 = vsel %vm1216_vm3, %v6100_v61, 0.0 }
 0x76b   : > { %3375 = vrot.lane.b32.xlu1 %v5787_v36, %s5363_s19  ;;  %v1899_v36 = vsel %vm1216_vm3, %v5906_v4, 0.0  ;;  %v2521_v4 = vsel %vm1216_vm3, %v6063_v15, 0.0  ;;  %v2530_v15 = vsel %vm1216_vm3, %v6070_v5, 0.0 }
 0x776   : > { %1894 = vadd.xlane.f32.xlu0 %v1893_v20 }
 0x77a   : > { %1906 = vadd.xlane.f32.xlu0 %v1905_v25 }
 0x77e   : > { %1909 = vadd.xlane.f32.xlu0 %v1908_v13 }
 0x782   : > { %1900 = vadd.xlane.f32.xlu0 %v1899_v36 }
 0x786   : > { %1912 = vadd.xlane.f32.xlu0 %v1911_v26 }
 0x78a   : > { %2516 = vadd.xlane.f32.xlu0 %v2515_v32 }
 0x78e   : > { %2528 = vadd.xlane.f32.xlu0 %v2527_v33 }
 0x78f   : > { %1897 = vadd.xlane.f32.xlu1 %v1896_v10 }
 0x792   : > { %2522 = vadd.xlane.f32.xlu0 %v2521_v4 }
 0x793   : > { %1903 = vadd.xlane.f32.xlu1 %v1902_v55 }
 0x796   : > { %2534 = vadd.xlane.f32.xlu0 %v2533_v12 }
 0x797   : > { %1915 = vadd.xlane.f32.xlu1 %v1914_v0 }
 0x79b   : > { %2519 = vadd.xlane.f32.xlu1 %v2518_v31 }
 0x79f   : > { %2531 = vadd.xlane.f32.xlu1 %v2530_v15 }
 0x7a3   : > { %2525 = vadd.xlane.f32.xlu1 %v2524_v53 }
 0x7a7   : > { %2537 = vadd.xlane.f32.xlu1 %v2536_v43 }
 0x7b7   : > { %v3087_v56 = vpop.xlane.xlu0 %3086 }
 0x7bf   : > { %v3093_v45 = vpop.xlane.xlu0 %3092 }
 0x7c6   : > { %v3099_v47 = vpop.xlane.xlu0 %3098 }
 0x7c7   : > { %v3109_v8 = vmax.f32 %v3087_v56, %v3099_v47 }
 0x7c9   : > { %v3113_v57 = vsub.f32 %v6130_v54, %v3109_v8  ;;  %v3125_v11 = vsub.f32 %v6147_v7, %v3109_v8 }
 0x7ca   : > { %v3102_v61 = vpop.xlane.xlu0 %3101 }
 0x7cb   : > { %v3117_v30 = vmul.f32 1.442695, %v3113_v57  ;;  %v3129_v54 = vmul.f32 1.442695, %v3125_v11 }
 0x7cd   : > { %5193 = vpow2.f32 %v3117_v30 }
 0x7ce   : > { %v3105_v50 = vpop.xlane.xlu0 %3104 }
 0x7cf   : > { %v3111_v5 = vmax.f32 %v3093_v45, %v3105_v50 }
 0x7d1   : > { %v3115_v46 = vsub.f32 %v6139_v3, %v3111_v5  ;;  %v3127_v25 = vsub.f32 %v6145_v2, %v3111_v5  ;;  %v1269_v5 = vsel %vm1216_vm3, %v5740_v49, 0.0  ;;  %v1275_v49 = vsel %vm1216_vm3, %v5752_v17, 0.0 }
 0x7d2   : > { %v3232_v62 = vpop.permute.xlu0 %3231  ;;  %v1278_v17 = vsel %vm1216_vm3, %v5801_v52, 0.0 }
 0x7d3   : > { %v3121_v44 = vmul.f32 1.442695, %v3115_v46  ;;  %v3237_v23 = vsel %vm1320_vm2, %v3232_v62, 0  ;;  %v3090_v1 = vpop.xlane.xlu1 %3089  ;;  %v3133_v32 = vmul.f32 1.442695, %v3127_v25  ;;  %v1287_v25 = vsel %vm1216_vm3, %v5759_v24, 0.0 }
 0x7d4   : > { %4896 = vmatpush3.bf16.msra.mxu1 %v3237_v23  ;;  %v3110_v6 = vmax.f32 %v3090_v1, %v3102_v61  ;;  %v1281_v23 = vsel %vm1216_vm3, %v5749_v48, 0.0  ;;  %v1272_v48 = vsel %vm1216_vm3, %v5783_v34, 0.0  ;;  %v1290_v24 = vsel %vm1216_vm3, %v5767_v28, 0.0 }
 0x7d5   : > { %5195 = vpow2.f32 %v3121_v44  ;;  %4907 = vmatprep.subr.bf16.mxu1 %v5358_v35 }
 0x7d6   : > { %v3114_v13 = vsub.f32 %v6162_v39, %v3110_v6  ;;  %v3126_v3 = vsub.f32 %v6153_v9, %v3110_v6  ;;  %5197 = vpow2.f32 %v3129_v54 }
 0x7d7   : > { %v5194_v20 = vpop.eup %5193 }
 0x7d8   : > { %v3165_v36 = vpack.c.bf16 %v5194_v20, %v5194_v20  ;;  %v3119_v7 = vmul.f32 1.442695, %v3114_v13  ;;  %v3131_v26 = vmul.f32 1.442695, %v3126_v3  ;;  %v3137_v31 = vsel %vm1216_vm3, %v5194_v20, 0.0 }
 0x7d9   : > { %v1284_v3 = vsel %vm1216_vm3, %v5755_v21, 0.0 }
 0x7da   : > { %4898 = vmatmul.mubr.msk.bf16.vlgmr.msra.gmra.mrb[72].mxu1 %vm1216_vm3, %v3165_v36  ;;  %5199 = vpow2.f32 %v3119_v7  ;;  %v6519_v7 = vmov 0  }
 0x7db   : > { %4909 = vmatprep.mubr.msk.bf16.mxu1 %vm5359_vm0, %v5358_v35  ;;  %5201 = vpow2.f32 %v3131_v26  ;;  %v3096_v33 = vpop.xlane.xlu1 %3095 }
 0x7dc   : > { %5203 = vpow2.f32 %v3133_v32 }
 0x7df   : > { %v5196_v10 = vpop.eup %5195  ;;  %v3108_v2 = vpop.xlane.xlu1 %3107 }
 0x7e0   : > { %v3143_v39 = vsel %vm1216_vm3, %v5196_v10, 0.0  ;;  %v3112_v4 = vmax.f32 %v3096_v33, %v3108_v2  ;;  %v5198_v12 = vpop.eup %5197  ;;  %v3167_v30 = vpack.c.bf16 %v5196_v10, %v5196_v10 }
 0x7e1   : > { %3144 = vadd.xlane.f32.xlu0 %v3143_v39 }
 0x7e2   : > { %v3116_v9 = vsub.f32 %v6167_v42, %v3112_v4  ;;  %v3128_v55 = vsub.f32 %v6149_v51, %v3112_v4  ;;  %v3149_v42 = vsel %vm1216_vm3, %v5198_v12, 0.0 }
 0x7e3   : > { %v3280_v0 = vpop.permute.xlu1 %3279 }
 0x7e4   : > { %v5200_v15 = vpop.eup %5199  ;;  %v3123_v53 = vmul.f32 1.442695, %v3116_v9  ;;  %v3135_v43 = vmul.f32 1.442695, %v3128_v55  ;;  %v3285_v1 = vsel %vm1320_vm2, %v3280_v0, 0 }
 0x7e5   : > { %3138 = vadd.xlane.f32.xlu0 %v3137_v31  ;;  %v5202_v56 = vpop.eup %5201  ;;  %v3140_v45 = vsel %vm1216_vm3, %v5200_v15, 0.0  ;;  %v3166_v20 = vpack.c.bf16 %v5200_v15, %v5200_v15 }
 0x7e6   : > { %5205 = vpow2.f32 %v3123_v53  ;;  %3141 = vadd.xlane.f32.xlu1 %v3140_v45  ;;  %v3169_v47 = vpack.c.bf16 %v5202_v56, %v5198_v12  ;;  %v5204_v57 = vpop.eup %5203  ;;  %v3152_v61 = vsel %vm1216_vm3, %v5202_v56, 0.0 }
 0x7e7   : > { %5207 = vpow2.f32 %v3135_v43  ;;  %v3328_v8 = vpop.permute.xlu1 %3327  ;;  %v3155_v50 = vsel %vm1216_vm3, %v5204_v57, 0.0 }
 0x7e8   : > { %4891 = vmatprep.mubr.msk.bf16.mxu0 %vm1216_vm3, %v3169_v47  ;;  %v3333_v51 = vsel %vm1320_vm2, %v3328_v8, 0 }
 0x7e9   : > { %3150 = vadd.xlane.f32.xlu0 %v3149_v42  ;;  %4908 = vmatpush3.bf16.msra.mxu1 %v3333_v51 }
 0x7ea   : > { %3153 = vadd.xlane.f32.xlu1 %v3152_v61 }
 0x7eb   : > { %v3376_v54 = vpop.permute.xlu1 %3375 }
 0x7ec   : > { %4910 = vmatmul.mubr.msk.bf16.vlgmr.msra.gmra.mrb[76].mxu1 %vm1216_vm3, %v3167_v30  ;;  %v3381_v13 = vsel %vm1320_vm2, %v3376_v54, 0 }
 0x7ed   : > { %3156 = vadd.xlane.f32.xlu0 %v3155_v50 }
 0x7f0   : > { %v5206_v46 = vpop.eup %5205 }
 0x7f1   : > { %1270 = vadd.xlane.f32.xlu0 %v1269_v5  ;;  %v5208_v11 = vpop.eup %5207  ;;  %v3146_v62 = vsel %vm1216_vm3, %v5206_v46, 0.0  ;;  %v3168_v34 = vpack.c.bf16 %v5206_v46, %v5206_v46 }
 0x7f2   : > { %3147 = vadd.xlane.f32.xlu1 %v3146_v62  ;;  %v3170_v44 = vpack.c.bf16 %v5208_v11, %v5204_v57  ;;  %v3158_v6 = vsel %vm1216_vm3, %v5208_v11, 0.0 }
 0x7f4   : > { %4892 = vmatmul.mubr.msk.bf16.vlgmr.msra.gmra.mrb[80].mxu0 %vm1216_vm3, %v3170_v44 }
 0x7f5   : > { %1282 = vadd.xlane.f32.xlu0 %v1281_v23  ;;  %4902 = vmatpush3.bf16.msra.mxu0 %v3285_v1 }
 0x7f6   : > { %4903 = vmatprep.mubr.msk.bf16.mxu0 %vm5359_vm0, %v5358_v35  ;;  %3159 = vadd.xlane.f32.xlu1 %v3158_v6 }
 0x7f7   : > { %4913 = vmatprep.subr.bf16.mxu0 %v5358_v35 }
 0x7f9   : > { %1276 = vadd.xlane.f32.xlu0 %v1275_v49 }
 0x7fa   : > { %1273 = vadd.xlane.f32.xlu1 %v1272_v48  ;;  %v5097_v48 = vld [vmem:[%s5518_s30] sm:$0xff]  }
 0x7fb   : > { %4919 = vmatprep.subr.bf16.mxu1 %v5097_v48 }
 0x7fc   : > { %4904 = vmatmul.mubr.msk.bf16.vlgmr.msra.gmra.mrb[84].mxu0 %vm1216_vm3, %v3166_v20  ;;  %v5098_v20 = vld [vmem:[%s5518_s30 + $0x8] sm:$0xff]   ;;  %4920 = vmatpush3.bf16.msra.mxu1 %v5097_v48 }
 0x7fd   : > { %1288 = vadd.xlane.f32.xlu0 %v1287_v25  ;;  %4914 = vmatpush3.bf16.msra.mxu0 %v3381_v13  ;;  %v5101_v25 = vld [vmem:[%s5518_s30 + $0x20] sm:$0xff]  }
 0x7fe   : > { %4915 = vmatprep.mubr.msk.bf16.mxu0 %vm5359_vm0, %v5358_v35  ;;  %1285 = vadd.xlane.f32.xlu1 %v1284_v3 }
 0x7ff   : > { %4921 = vmatprep.subr.bf16.mxu1 %v5098_v20 }
 0x800   : > { %4922 = vmatpush3.bf16.msra.mxu1 %v5098_v20 }
 0x802   : > { %1279 = vadd.xlane.f32.xlu1 %v1278_v17 }
 0x803   : > { %v1895_v36 = vpop.xlane.xlu0 %1894 }
 0x804   : > { %4916 = vmatmul.mubr.msk.bf16.vlgmr.msra.gmra.mrb[88].mxu0 %vm1216_vm3, %v3168_v34 }
 0x805   : > { %3820 = vmatprep.mubr.bf16.mxu0 %v6519_v7 }
 0x806   : > { %1291 = vadd.xlane.f32.xlu1 %v1290_v24 }
 0x807   : > { %v1907_v26 = vpop.xlane.xlu0 %1906 }
 0x808   : > { %v1917_v35 = vadd.f32 %v1907_v26, %v1895_v36 }
 0x80a   : > { %5209 = vrcp.f32 %v1917_v35 }
 0x80b   : > { %v1910_v21 = vpop.xlane.xlu0 %1909 }
 0x80f   : > { %v1901_v32 = vpop.xlane.xlu0 %1900 }
 0x813   : > { %v1913_v33 = vpop.xlane.xlu0 %1912 }
 0x814   : > { %v1919_v4 = vadd.f32 %v1913_v33, %v1901_v32  ;;  %v5210_v28 = vpop.eup %5209 }
 0x815   : > { %v2183_v43 = vmul.f32 %v5210_v28, %v5979_v60 }
 0x817   : > { %v2517_v10 = vpop.xlane.xlu0 %2516 }
 0x81b   : > { %v2529_v9 = vpop.xlane.xlu0 %2528 }
 0x81c   : > { %v1898_v2 = vpop.xlane.xlu1 %1897  ;;  %v2539_v53 = vadd.f32 %v2529_v9, %v2517_v10 }
 0x81d   : > { %v1918_v52 = vadd.f32 %v1910_v21, %v1898_v2 }
 0x81f   : > { %5211 = vrcp.f32 %v1918_v52  ;;  %v2523_v0 = vpop.xlane.xlu0 %2522 }
 0x820   : > { %v1904_v39 = vpop.xlane.xlu1 %1903  ;;  %5213 = vrcp.f32 %v1919_v4 }
 0x823   : > { %v2535_v42 = vpop.xlane.xlu0 %2534 }
 0x824   : > { %v1916_v55 = vpop.xlane.xlu1 %1915  ;;  %v2541_v30 = vadd.f32 %v2535_v42, %v2523_v0 }
 0x825   : > { %v1920_v12 = vadd.f32 %v1916_v55, %v1904_v39 }
 0x827   : > { %5215 = vrcp.f32 %v1920_v12 }
 0x828   : > { %v2520_v31 = vpop.xlane.xlu1 %2519  ;;  %5217 = vrcp.f32 %v2539_v53 }
 0x829   : > { %v5212_v15 = vpop.eup %5211 }
 0x82a   : > { %v2184_v56 = vmul.f32 %v5212_v15, %v5986_v14  ;;  %v5214_v57 = vpop.eup %5213  ;;  %v5103_v15 = vld [vmem:[%s5518_s30 + $0x30] sm:$0xff]  }
 0x82b   : > { %v2185_v50 = vmul.f32 %v5214_v57, %v5977_v58 }
 0x82c   : > { %v2532_v45 = vpop.xlane.xlu1 %2531  ;;  %v5027_v47 = vpack.i.bf16 %v2184_v56, %v2183_v43 }
 0x82d   : > { %v2540_v8 = vadd.f32 %v2532_v45, %v2520_v31  ;;  %v5102_v31 = vld [vmem:[%s5518_s30 + $0x28] sm:$0xff]  }
 0x82e   : > { %5028 = vrot.lane.b32.xlu0 %v5027_v47, %s5363_s19 }
 0x82f   : > { %5219 = vrcp.f32 %v2540_v8 }
 0x830   : > { %v2526_v51 = vpop.xlane.xlu1 %2525  ;;  %5221 = vrcp.f32 %v2541_v30 }
 0x831   : > { %v5216_v61 = vpop.eup %5215 }
 0x832   : > { %v2186_v5 = vmul.f32 %v5216_v61, %v5998_v16  ;;  %v5218_v11 = vpop.eup %5217  ;;  %v5104_v61 = vld [vmem:[%s5518_s30 + $0x38] sm:$0xff]  }
 0x833   : > { %v2805_v44 = vmul.f32 %v5218_v11, %v6136_v63  ;;  %v5099_v63 = vld [vmem:[%s5518_s30 + $0x10] sm:$0xff]  }
 0x834   : > { %v2538_v46 = vpop.xlane.xlu1 %2537  ;;  %v5032_v60 = vpack.i.bf16 %v2186_v5, %v2185_v50  ;;  %4923 = vmatprep.subr.bf16.mxu1 %v5099_v63 }
 0x835   : > { %v2542_v14 = vadd.f32 %v2538_v46, %v2526_v51  ;;  %4924 = vmatpush3.bf16.msra.mxu1 %v5099_v63 }
 0x836   : > { %5033 = vrot.lane.b32.xlu1 %v5032_v60, %s5363_s19 }
 0x837   : > { %5223 = vrcp.f32 %v2542_v14 }
 0x839   : > { %v5220_v62 = vpop.eup %5219 }
 0x83a   : > { %v2806_v23 = vmul.f32 %v5220_v62, %v6143_v22  ;;  %v5222_v58 = vpop.eup %5221  ;;  %v5100_v22 = vld [vmem:[%s5518_s30 + $0x18] sm:$0xff]   ;;  %s4122_s30 = sshll.u32 %s5560_s0, 4  ;;  %s6404_s30 = int_to_ptr.vmem [resolvable:$true] %s4122_s30 }
 0x83b   : > { %v2807_v6 = vmul.f32 %v5222_v58, %v6134_v29  ;;  %4925 = vmatprep.subr.bf16.mxu1 %v5100_v22  ;;  %p5268_p6 = scmp.lt.s32.totalorder %s6404_s30, %s5266_s17 }
 0x83c   : > { %v5037_v1 = vpack.i.bf16 %v2806_v23, %v2805_v44  ;;  %4926 = vmatpush3.bf16.msra.mxu1 %v5100_v22 }
 0x83d   : > { %4927 = vmatprep.subr.bf16.mxu1 %v5101_v25 }
 0x83e   : > { %5038 = vrot.lane.b32.xlu1 %v5037_v1, %s5362_s4 }
 0x840   : > { %4928 = vmatpush3.bf16.msra.mxu1 %v5101_v25 }
 0x841   : > { %v5224_v16 = vpop.eup %5223  ;;  %4929 = vmatprep.subr.bf16.mxu1 %v5102_v31 }
 0x842   : > { %v2808_v49 = vmul.f32 %v5224_v16, %v6155_v19 }
 0x844   : > { %v5042_v54 = vpack.i.bf16 %v2808_v49, %v2807_v6  ;;  %4930 = vmatpush3.bf16.msra.mxu1 %v5102_v31 }
 0x845   : > { %4931 = vmatprep.subr.bf16.mxu1 %v5103_v15 }
 0x846   : > { %5043 = vrot.lane.b32.xlu1 %v5042_v54, %s5362_s4 }
 0x848   : > { %4932 = vmatpush3.bf16.msra.mxu1 %v5103_v15 }
 0x849   : > { %4933 = vmatprep.subr.bf16.mxu1 %v5104_v61 }
 0x84c   : > { %4934 = vmatpush3.bf16.msra.mxu1 %v5104_v61 }
 0x86e   : > { %v3145_v17 = vpop.xlane.xlu0 %3144 }
 0x872   : > { %v3139_v36 = vpop.xlane.xlu0 %3138 }
 0x873   : > { %v3142_v34 = vpop.xlane.xlu1 %3141 }
 0x876   : > { %v3151_v26 = vpop.xlane.xlu0 %3150 }
 0x877   : > { %v3154_v24 = vpop.xlane.xlu1 %3153  ;;  %v3161_v35 = vadd.f32 %v3151_v26, %v3139_v36 }
 0x878   : > { %v3162_v52 = vadd.f32 %v3154_v24, %v3142_v34 }
 0x879   : > { %5225 = vrcp.f32 %v3161_v35 }
 0x87a   : > { %5227 = vrcp.f32 %v3162_v52  ;;  %v3157_v39 = vpop.xlane.xlu0 %3156 }
 0x87b   : > { %v3163_v53 = vadd.f32 %v3157_v39, %v3145_v17 }
 0x87d   : > { %5229 = vrcp.f32 %v3163_v53 }
 0x87e   : > { %v1271_v49 = vpop.xlane.xlu0 %1270 }
 0x87f   : > { %v3148_v10 = vpop.xlane.xlu1 %3147 }
 0x882   : > { %v1283_v48 = vpop.xlane.xlu0 %1282 }
 0x883   : > { %v3160_v9 = vpop.xlane.xlu1 %3159  ;;  %v5226_v47 = vpop.eup %5225  ;;  %v1293_v22 = vadd.f32 %v1283_v48, %v1271_v49  ;;  %v5257_v49 = vld [vmem:[#allocation2] sm:$0xff] }
 0x884   : > { %v3164_v56 = vadd.f32 %v3160_v9, %v3148_v10  ;;  %v5228_v57 = vpop.eup %5227 }
 0x886   : > { %5231 = vrcp.f32 %v3164_v56  ;;  %v1277_v63 = vpop.xlane.xlu0 %1276 }
 0x887   : > { %v5230_v14 = vpop.eup %5229  ;;  %v1274_v54 = vpop.xlane.xlu1 %1273  ;;  %5233 = vrcp.f32 %v1293_v22  ;;  %v5259_v22 = vld [vmem:[#allocation2 + $0x10] sm:$0xff] }
 0x88b   : > { %v1286_v20 = vpop.xlane.xlu1 %1285 }
 0x88f   : > { %v1280_v25 = vpop.xlane.xlu1 %1279 }
 0x890   : > { %v5232_v44 = vpop.eup %5231 }
 0x891   : > { %v5234_v24 = vpop.eup %5233 }
 0x8ad   : > { %v3273_v29 = vpop.f32.mrb[72].mxu1 }
 0x8ae   : > { %v4899_v19 = vpop.f32.mrb[73].mxu1 }
 0x8af   : > { %v3276_v13 = vpop.f32.mrb[74].mxu1  ;;  %v1289_v19 = vpop.xlane.xlu0 %1288 }
 0x8b0   : > { %v4900_v3 = vpop.f32.mrb[75].mxu1  ;;  %v1292_v13 = vpop.xlane.xlu1 %1291 }
 0x8b1   : > { %v1295_v3 = vadd.f32 %v1289_v19, %v1277_v63  ;;  %v1296_v17 = vadd.f32 %v1292_v13, %v1280_v25  ;;  %v5260_v19 = vld [vmem:[#allocation2 + $0x18] sm:$0xff] }
 0x8b3   : > { %v5029_v36 = vpop.permute.xlu0 %5028 }
 0x8b4   : > { %v5034_v34 = vpop.permute.xlu1 %5033 }
 0x8b5   : > { %v5036_v56 = vunpack.i.h.bf16 %v5034_v34 }
 0x8b8   : > { %v5039_v26 = vpop.permute.xlu1 %5038 }
 0x8b9   : > { %v5041_v35 = vunpack.i.h.bf16 %v5039_v26  ;;  %v5040_v10 = vunpack.i.l.bf16 %v5039_v26 }
 0x8bc   : > { %v5044_v15 = vpop.permute.xlu1 %5043 }
 0x8bf   : > { %v3369_v21 = vpop.f32.mrb[76].mxu1 }
 0x8c0   : > { %v4911_v32 = vpop.f32.mrb[77].mxu1 }
 0x8c1   : > { %v3372_v33 = vpop.f32.mrb[78].mxu1  ;;  %v5031_v32 = vunpack.i.h.bf16 %v5029_v36 }
 0x8c2   : > { %v4912_v2 = vpop.f32.mrb[79].mxu1  ;;  %v5030_v33 = vunpack.i.l.bf16 %v5029_v36  ;;  %v5108_v36 = vld [vmem:[%s5538_s1 + $0x10] ss:$8 sps:$4 sm:$0xff]  }
 0x8c3   : > { %v1561_v2 = vmul.f32 %v5234_v24, %v5825_v27 }
 0x8c7   : > { %v4893_v4 = vpop.f32.mrb[80].mxu0 }
 0x8c8   : > { %v3370_v55 = vadd.f32 %v4893_v4, %v3369_v21  ;;  %v3216_v12 = vpop.f32.mrb[81].mxu0  ;;  %v3480_v4 = vsel %vm960_vm1, %v1561_v2, %v5030_v33 }
 0x8c9   : > { %v3274_v28 = vadd.f32 %v3273_v29, %v3216_v12  ;;  %v4894_v0 = vpop.f32.mrb[82].mxu0  ;;  %v1294_v29 = vadd.f32 %v1286_v20, %v1274_v54  ;;  %v5258_v20 = vld [vmem:[#allocation2 + $0x8] sm:$0xff] }
 0x8ca   : > { %v3219_v43 = vpop.f32.mrb[83].mxu0  ;;  %v3429_v1 = vmul.f32 %v5230_v14, %v3370_v55 }
 0x8cb   : > { %v3427_v30 = vmul.f32 %v5226_v47, %v3274_v28  ;;  %5235 = vrcp.f32 %v1294_v29  ;;  %v5046_v47 = vunpack.i.h.bf16 %v5044_v15 }
 0x8cc   : > { %5237 = vrcp.f32 %v1295_v3  ;;  %v5105_v3 = vld [vmem:[%s5538_s1] ss:$8 sps:$4 sm:$0xff]  }
 0x8cd   : > { %5239 = vrcp.f32 %v1296_v17  ;;  %v5107_v17 = vld [vmem:[%s5538_s1 + $0x4] ss:$8 sps:$4 sm:$0xff]  }
 0x8ce   : > { %3788 = vmatprep.subr.bf16.mxu0 %v5107_v17 }
 0x8cf   : > { %v3321_v45 = vpop.f32.mrb[84].mxu0  ;;  %3789 = vmatpush1.bf16.msra.mxu0 %v5105_v3  ;;  %v6520_v3 = vsub.s32 2, %v5595_v37 }
 0x8d0   : > { %v3322_v8 = vadd.f32 %v3321_v45, %v3219_v43  ;;  %v4905_v42 = vpop.f32.mrb[85].mxu0  ;;  %v5035_v45 = vunpack.i.l.bf16 %v5034_v34  ;;  %v5110_v34 = vld [vmem:[%s5538_s1 + $0x14] ss:$8 sps:$4 sm:$0xff]  }
 0x8d1   : > { %v3324_v51 = vpop.f32.mrb[86].mxu0  ;;  %3790 = vmatprep.subr.bf16.mxu0 %v5110_v34 }
 0x8d2   : > { %v3428_v50 = vmul.f32 %v5228_v57, %v3322_v8  ;;  %v4906_v5 = vpop.f32.mrb[87].mxu0  ;;  %v5045_v8 = vunpack.i.l.bf16 %v5044_v15  ;;  %v5111_v15 = vld [vmem:[%s5538_s1 + $0x20] ss:$8 sps:$4 sm:$0xff]  }
 0x8d3   : > { %3791 = vmatpush1.bf16.msra.mxu0 %v5108_v36 }
 0x8d4   : > { %v5047_v46 = vpack.i.bf16 %v3428_v50, %v3427_v30 }
 0x8d5   : > { %v5236_v21 = vpop.eup %5235 }
 0x8d6   : > { %5048 = vrot.lane.b32.xlu0 %v5047_v46, %s5361_s2  ;;  %v1562_v52 = vmul.f32 %v5236_v21, %v5830_v41  ;;  %v5238_v31 = vpop.eup %5237 }
 0x8d7   : > { %v3417_v60 = vpop.f32.mrb[88].mxu0  ;;  %v5240_v41 = vpop.eup %5239  ;;  %v1563_v42 = vmul.f32 %v5238_v31, %v5823_v18  ;;  %v6307_v18 = vld [vmem:[%s5548_s3] sm:$0x3f] }
 0x8d8   : > { %v3418_v11 = vadd.f32 %v4894_v0, %v3417_v60  ;;  %v4917_v62 = vpop.f32.mrb[89].mxu0  ;;  %v3481_v9 = vsel %vm960_vm1, %v1562_v52, %v5031_v32  ;;  %v3485_v0 = vsel %vm3484_vm4, %v3480_v4, %v5040_v10  ;;  %v1564_v57 = vmul.f32 %v5240_v41, %v5837_v59  ;;  %v5113_v31 = vld [vmem:[%s5538_s1 + $0x24] ss:$8 sps:$4 sm:$0xff]  }
 0x8d9   : > { %v3420_v23 = vpop.f32.mrb[90].mxu0  ;;  %v3486_v28 = vsel %vm3484_vm4, %v3481_v9, %v5041_v35  ;;  %v3482_v30 = vsel %vm960_vm1, %v1563_v42, %v5035_v45  ;;  %v3515_v59 = vrot.slane %v6307_v18, %v5602_v40  ;;  %3792 = vmatprep.subr.bf16.mxu0 %v5113_v31  ;;  %v5119_v41 = vld [vmem:[%s5538_s1 + $0x44] ss:$8 sps:$4 sm:$0xff]   ;;  %v5120_v45 = vld [vmem:[%s5538_s1 + $0x50] ss:$8 sps:$4 sm:$0xff]   ;;  %v3673_v17 = vrot.slane %v6307_v18, %v6520_v3 }
 0x8da   : > { %v3430_v58 = vmul.f32 %v5232_v44, %v3418_v11  ;;  %v4918_v16 = vpop.f32.mrb[91].mxu0  ;;  %v3483_v61 = vsel %vm960_vm1, %v1564_v57, %v5036_v56  ;;  %v3487_v46 = vsel %vm3484_vm4, %v3482_v30, %v5045_v8  ;;  %3793 = vmatpush1.bf16.msra.mxu0 %v5111_v15  ;;  %v5122_v56 = vld [vmem:[%s5538_s1 + $0x54] ss:$8 sps:$4 sm:$0xff]   ;;  %v5123_v8 = vld [vmem:[%s5538_s1 + $0x60] ss:$8 sps:$4 sm:$0xff]  }
 0x8db   : > { %v3488_v60 = vsel %vm3484_vm4, %v3483_v61, %v5046_v47  ;;  %v5125_v47 = vld [vmem:[%s5538_s1 + $0x64] ss:$8 sps:$4 sm:$0xff]   ;;  %v5128_v42 = vld [vmem:[%s5538_s1 + $0x74] ss:$8 sps:$4 sm:$0xff]   ;;  %v5126_v57 = vld [vmem:[%s5538_s1 + $0x70] ss:$8 sps:$4 sm:$0xff]  }
 0x8dc   : > { %v5052_v6 = vpack.i.bf16 %v3430_v58, %v3429_v1  ;;  %v5130_v61 = vld [vmem:[%s5543_s26] sm:$0xff]   ;;  %v5131_v30 = vld [vmem:[%s5543_s26 + $0x48] sm:$0xff]   ;;  %v5142_v31 = vld [vmem:[%s5543_s26 + $0x30] sm:$0xff]  }
 0x8dd   : > { %v5144_v15 = vld [vmem:[%s5543_s26 + $0x38] sm:$0xff]  }
 0x8de   : > { %5053 = vrot.lane.b32.xlu1 %v5052_v6, %s5361_s2 }
 0x948   : > { %v5049_v39 = vpop.permute.xlu0 %5048 }
 0x949   : > { %v5051_v55 = vunpack.i.h.bf16 %v5049_v39  ;;  %v5050_v12 = vunpack.i.l.bf16 %v5049_v39 }
 0x94b   : > { %v3490_v53 = vsel %vm3489_vm5, %v3485_v0, %v5050_v12  ;;  %v3491_v27 = vsel %vm3489_vm5, %v3486_v28, %v5051_v55 }
 0x94c   : > { %v3494_v43 = vpack.c.bf16 %v3491_v27, %v3490_v53  ;;  %v5116_v53 = vld [vmem:[%s5538_s1 + $0x34] ss:$8 sps:$4 sm:$0xff]   ;;  %v5114_v27 = vld [vmem:[%s5538_s1 + $0x30] ss:$8 sps:$4 sm:$0xff]  }
 0x94d   : > { %3794 = vmatprep.subr.bf16.mxu0 %v5116_v53  ;;  %v3696_v53 = vld [vmem:[%s5558_s5] sm:$0x3] }
 0x94e   : > { %4935 = vmatprep.mubr.bf16.mxu1 %v3494_v43  ;;  %3795 = vmatpush1.bf16.msra.mxu0 %v5114_v27  ;;  %v5117_v43 = vld [vmem:[%s5538_s1 + $0x40] ss:$8 sps:$4 sm:$0xff]   ;;  %v3705_v27 = vrot.slane %v3696_v53, %v5598_v38  ;;  %s6521_s1 = sld [smem:[#allocation9_spill]] }
 0x94f   : > { %3796 = vmatprep.subr.bf16.mxu0 %v5119_v41 }
 0x950   : > { %v5054_v51 = vpop.permute.xlu1 %5053 }
 0x951   : > { %v5056_v50 = vunpack.i.h.bf16 %v5054_v51  ;;  %v5055_v5 = vunpack.i.l.bf16 %v5054_v51  ;;  %v5129_v51 = vld [vmem:[%s5543_s26 + $0x40] sm:$0xff]  }
 0x952   : > { %3797 = vmatpush1.bf16.msra.mxu0 %v5117_v43  ;;  %4623 = vmatprep.subr.bf16.mxu1 %v5129_v51 }
 0x953   : > { %v3492_v14 = vsel %vm3489_vm5, %v3487_v46, %v5055_v5  ;;  %v3493_v11 = vsel %vm3489_vm5, %v3488_v60, %v5056_v50  ;;  %3798 = vmatprep.subr.bf16.mxu0 %v5122_v56  ;;  %v5132_v50 = vld [vmem:[%s5543_s26 + $0x8] sm:$0xff]   ;;  %v5133_v5 = vld [vmem:[%s5543_s26 + $0x50] sm:$0xff]   ;;  %v5135_v60 = vld [vmem:[%s5543_s26 + $0x58] sm:$0xff]  }
 0x954   : > { %v3495_v62 = vpack.c.bf16 %v3493_v11, %v3492_v14  ;;  %v5134_v46 = vld [vmem:[%s5543_s26 + $0x10] sm:$0xff]   ;;  %v5136_v14 = vld [vmem:[%s5543_s26 + $0x18] sm:$0xff]   ;;  %v5137_v11 = vld [vmem:[%s5543_s26 + $0x60] sm:$0xff]   ;;  %s4945_s3 = smul.u32 12, %s6521_s1 }
 0x956   : > { %4936 = vmatmul.mubr.bf16.vlgmr.msra.gmra.mrb[80].mxu1 %v3495_v62  ;;  %3799 = vmatpush1.bf16.msra.mxu0 %v5120_v45  ;;  %v5138_v62 = vld [vmem:[%s5543_s26 + $0x20] sm:$0xff]   ;;  %s4119_s5 = sadd.s32 %s5339_s20, %s4945_s3  ;;  %s6525_s20 = sand.u32 1, %s6522_s21  }
 0x957   : > { %3800 = vmatprep.subr.bf16.mxu0 %v5125_v47  ;;  %4624 = vmatpush3.bf16.msra.mxu1 %v5130_v61  ;;  %s4491_s27 = sshll.u32 %s4119_s5, 7  ;;  %s6410_s24 = scalar_lea.sflag [#allocation4], %s6525_s20 }
 0x958   : > { %4625 = vmatprep.subr.bf16.mxu1 %v5131_v30  ;;  %s6402_s18 = scalar_lea.hbm %s6524_s15, %s4491_s27 }
 0x95a   : > { %3801 = vmatpush1.bf16.msra.mxu0 %v5123_v8 }
 0x95b   : > { %3802 = vmatprep.subr.bf16.mxu0 %v5128_v42  ;;  %4626 = vmatpush3.bf16.msra.mxu1 %v5132_v50 }
 0x95c   : > { %4627 = vmatprep.subr.bf16.mxu1 %v5133_v5 }
 0x95e   : > { %3803 = vmatpush1.bf16.msra.mxu0 %v5126_v57 }
 0x95f   : > { %4628 = vmatpush3.bf16.msra.mxu1 %v5134_v46 }
 0x960   : > { %4629 = vmatprep.subr.bf16.mxu1 %v5135_v60 }
 0x963   : > { %4630 = vmatpush3.bf16.msra.mxu1 %v5136_v14 }
 0x964   : > { %4631 = vmatprep.subr.bf16.mxu1 %v5137_v11 }
 0x967   : > { %4632 = vmatpush3.bf16.msra.mxu1 %v5138_v62 }
 0xa29   : > { %v4937_v44 = vpop.f32.mrb[80].mxu1 }
 0xa2a   : > { %v3598_v23 = vpop.f32.mrb[81].mxu1  ;;  %v3607_v6 = vadd.f32 %v4937_v44, %v3515_v59 }
 0xa2b   : > { %v3599_v1 = vadd.f32 %v3598_v23, %v3515_v59  ;;  %v4938_v58 = vpop.f32.mrb[82].mxu1 }
 0xa2c   : > { %v3601_v16 = vpop.f32.mrb[83].mxu1  ;;  %v3615_v25 = vadd.f32 %v5259_v22, %v3607_v6  ;;  %v3610_v29 = vadd.f32 %v4938_v58, %v3515_v59 }
 0xa2d   : > { %v3613_v54 = vadd.f32 %v5257_v49, %v3599_v1  ;;  %v3602_v48 = vadd.f32 %v3601_v16, %v3515_v59  ;;  %v5139_v59 = vld [vmem:[%s5543_s26 + $0x68] sm:$0xff]  }
 0xa2e   : > { %v3616_v13 = vadd.f32 %v5260_v19, %v3610_v29  ;;  %4633 = vmatprep.subr.bf16.mxu1 %v5139_v59 }
 0xa2f   : > { %v3614_v63 = vadd.f32 %v5258_v20, %v3602_v48  ;;  %3617 = vadd.xlane.f32.xlu0 %v3613_v54 }
 0xa31   : > { %3619 = vadd.xlane.f32.xlu1 %v3614_v63 }
 0xa33   : > { %3621 = vadd.xlane.f32.xlu0 %v3615_v25 }
 0xa37   : > { %3623 = vadd.xlane.f32.xlu0 %v3616_v13 }
 0xabc   : > { %v3618_v24 = vpop.xlane.xlu0 %3617 }
 0xabd   : > { %v3626_v26 = vmul.f32 0.0078125, %v3618_v24 }
 0xabe   : > { %v3620_v21 = vpop.xlane.xlu1 %3619 }
 0xabf   : > { %v6315_v32 = vsub.f32 %v3613_v54, %v3626_v26  ;;  %v3627_v33 = vmul.f32 0.0078125, %v3620_v21 }
 0xac0   : > { %v3622_v35 = vpop.xlane.xlu0 %3621 }
 0xac1   : > { %v6317_v10 = vsub.f32 %v3614_v63, %v3627_v33  ;;  %v3628_v2 = vmul.f32 0.0078125, %v3622_v35  ;;  %v3634_v52 = vmul.f32 %v6315_v32, %v6315_v32 }
 0xac3   : > { %v6321_v39 = vsub.f32 %v3615_v25, %v3628_v2  ;;  %3638 = vadd.xlane.f32.xlu0 %v3634_v52  ;;  %v3635_v4 = vmul.f32 %v6317_v10, %v6317_v10  ;;  %v3665_v25 = vrot.slane %v6307_v18, %v5598_v38 }
 0xac4   : > { %v3624_v9 = vpop.xlane.xlu0 %3623 }
 0xac5   : > { %v3629_v55 = vmul.f32 0.0078125, %v3624_v9  ;;  %3640 = vadd.xlane.f32.xlu1 %v3635_v4  ;;  %v3636_v12 = vmul.f32 %v6321_v39, %v6321_v39 }
 0xac7   : > { %v6327_v28 = vsub.f32 %v3616_v13, %v3629_v55  ;;  %3642 = vadd.xlane.f32.xlu0 %v3636_v12  ;;  %v5140_v12 = vld [vmem:[%s5543_s26 + $0x28] sm:$0xff]  }
 0xac8   : > { %4634 = vmatpush3.bf16.msra.mxu1 %v5140_v12 }
 0xac9   : > { %v3637_v0 = vmul.f32 %v6327_v28, %v6327_v28 }
 0xacb   : > { %3644 = vadd.xlane.f32.xlu1 %v3637_v0  ;;  %v5141_v0 = vld [vmem:[%s5543_s26 + $0x70] sm:$0xff]  }
 0xacc   : > { %4635 = vmatprep.subr.bf16.mxu1 %v5141_v0 }
 0xacd   : > { %4636 = vmatpush3.bf16.msra.mxu1 %v5142_v31 }
 0xb50   : > { %v3639_v44 = vpop.xlane.xlu0 %3638 }
 0xb51   : > { %v3646_v23 = vmul.f32 0.0078125, %v3639_v44 }
 0xb52   : > { %v3641_v1 = vpop.xlane.xlu1 %3640 }
 0xb53   : > { %v3650_v58 = vadd.f32 1e-05, %v3646_v23  ;;  %v3647_v16 = vmul.f32 0.0078125, %v3641_v1 }
 0xb54   : > { %v3643_v6 = vpop.xlane.xlu0 %3642 }
 0xb55   : > { %5241 = vrsqrt.f32 %v3650_v58  ;;  %v3651_v49 = vadd.f32 1e-05, %v3647_v16  ;;  %v3648_v54 = vmul.f32 0.0078125, %v3643_v6 }
 0xb57   : > { %5243 = vrsqrt.f32 %v3651_v49  ;;  %v3652_v48 = vadd.f32 1e-05, %v3648_v54  ;;  %v3887_v54 = vsub.s32 3, %v5595_v37 }
 0xb58   : > { %v3645_v20 = vpop.xlane.xlu1 %3644 }
 0xb59   : > { %5245 = vrsqrt.f32 %v3652_v48  ;;  %v3649_v63 = vmul.f32 0.0078125, %v3645_v20  ;;  %v3888_v20 = vrot.slane %v6307_v18, %v3887_v54 }
 0xb5b   : > { %v3653_v22 = vadd.f32 1e-05, %v3649_v63 }
 0xb5d   : > { %5247 = vrsqrt.f32 %v3653_v22 }
 0xb5f   : > { %v5242_v29 = vpop.eup %5241 }
 0xb60   : > { %v3658_v19 = vmul.f32 %v5242_v29, %v6315_v32 }
 0xb61   : > { %v5244_v13 = vpop.eup %5243 }
 0xb62   : > { %v3659_v34 = vmul.f32 %v5244_v13, %v6317_v10  ;;  %v3666_v36 = vmul.f32 %v3665_v25, %v3658_v19 }
 0xb63   : > { %v5246_v24 = vpop.eup %5245 }
 0xb64   : > { %v3667_v26 = vmul.f32 %v3665_v25, %v3659_v34  ;;  %v6361_v21 = vadd.f32 %v3673_v17, %v3666_v36  ;;  %v3660_v35 = vmul.f32 %v5246_v24, %v6321_v39 }
 0xb66   : > { %v6363_v33 = vadd.f32 %v3673_v17, %v3667_v26  ;;  %v3668_v10 = vmul.f32 %v3665_v25, %v3660_v35 }
 0xb67   : > { %v5248_v32 = vpop.eup %5247 }
 0xb68   : > { %v3678_v2 = vpack.c.bf16 %v6363_v33, %v6361_v21  ;;  %v3661_v52 = vmul.f32 %v5248_v32, %v6327_v28  ;;  %v6372_v55 = vadd.f32 %v3673_v17, %v3668_v10  ;;  %v5143_v28 = vld [vmem:[%s5543_s26 + $0x78] sm:$0xff]   ;;  %s5261_s26 = scalar_lea.vmem %s6404_s30, 512 }
 0xb69   : > { %4637 = vmatprep.subr.bf16.mxu1 %v5143_v28  ;;  %p5262_p2 = scmp.ne.s32.totalorder %s6404_s30, %s5261_s26  ;;  %p5269_p7 = scmp.lt.s32.totalorder %s5267_s29, %s5261_s26 }
 0xb6a   : > { %3821 = vmatmul.mubr.bf16.vlgmr.msra.gmra.mrb[92].mxu0 %v3678_v2  ;;  %v3669_v4 = vmul.f32 %v3665_v25, %v3661_v52  ;;  %4638 = vmatpush3.bf16.msra.mxu1 %v5144_v15 }
 0xb6b   : > { %3830 = vmatprep.mubr.bf16.mxu0 %v6519_v7  ;;  %v3701_v7 = vrot.slane %v3696_v53, %v5602_v40  ;;  %p5263_p4 = pnand %p5262_p2, %p5479_p3  ;;  %p5270_p9 = por %p5269_p7, %p5268_p6 }
 0xb6c   : > { %v6370_v9 = vadd.f32 %v3673_v17, %v3669_v4 }
 0xb6d   : > { %p5264_p5 = pneg %p5263_p4 }
 0xb6e   : > { %v3679_v39 = vpack.c.bf16 %v6370_v9, %v6372_v55 }
 0xb6f   : > { %p5271_p10 = pnand %p5270_p9, %p5264_p5 }
 0xb72   : > { %3831 = vmatmul.mubr.bf16.gmra.mrb[96].mxu0 %v3679_v39 }
 0xc3d   : > { %v3822_v41 = vpop.f32.mrb[92].mxu0 }
 0xc3e   : > { %v3823_v43 = vadd.f32 %v3822_v41, %v3701_v7  ;;  %v3824_v56 = vpop.f32.mrb[93].mxu0 }
 0xc3f   : > { %v3825_v45 = vadd.f32 %v3824_v56, %v3705_v27  ;;  %v3826_v47 = vpop.f32.mrb[94].mxu0 }
 0xc40   : > { %v3827_v8 = vadd.f32 %v3826_v47, %v3701_v7  ;;  %v3828_v42 = vpop.f32.mrb[95].mxu0  ;;  %v3841_v51 = vmax.f32 %v3823_v43, 0.0 }
 0xc41   : > { %v3829_v57 = vadd.f32 %v3828_v42, %v3705_v27  ;;  %v3842_v30 = vmax.f32 %v3825_v45, 0.0 }
 0xc42   : > { %v3843_v61 = vmax.f32 %v3827_v8, 0.0 }
 0xc43   : > { %v3844_v50 = vmax.f32 %v3829_v57, 0.0 }
 0xc44   : > { %v3849_v5 = vpack.c.bf16 %v3843_v61, %v3841_v51 }
 0xc45   : > { %v3850_v46 = vpack.c.bf16 %v3844_v50, %v3842_v30  ;;  %v3832_v60 = vpop.f32.mrb[96].mxu0 }
 0xc46   : > { %v3833_v14 = vadd.f32 %v3832_v60, %v3701_v7  ;;  %v3834_v11 = vpop.f32.mrb[97].mxu0 }
 0xc47   : > { %v3835_v40 = vadd.f32 %v3834_v11, %v3705_v27  ;;  %v3836_v62 = vpop.f32.mrb[98].mxu0  ;;  %4017 = vmatprep.mubr.bf16.mxu1 %v3850_v46  ;;  %v4092_v11 = vsub.s32 5, %v5595_v37 }
 0xc48   : > { %v3837_v38 = vadd.f32 %v3836_v62, %v3701_v7  ;;  %v3838_v59 = vpop.f32.mrb[99].mxu0  ;;  %4018 = vmatmul.mubr.bf16.vlgmr.msra.gmra.mrb[84].mxu1 %v3849_v5  ;;  %v3845_v23 = vmax.f32 %v3833_v14, 0.0  ;;  %v4084_v5 = vsub.s32 4, %v5595_v37 }
 0xc49   : > { %v3839_v44 = vadd.f32 %v3838_v59, %v3705_v27  ;;  %v3846_v58 = vmax.f32 %v3835_v40, 0.0  ;;  %v4093_v59 = vrot.slane %v6307_v18, %v4092_v11 }
 0xc4a   : > { %v3847_v1 = vmax.f32 %v3837_v38, 0.0  ;;  %v4085_v62 = vrot.slane %v6307_v18, %v4084_v5 }
 0xc4b   : > { %v3848_v16 = vmax.f32 %v3839_v44, 0.0 }
 0xc4c   : > { %v3851_v6 = vpack.c.bf16 %v3847_v1, %v3845_v23 }
 0xc4d   : > { %v3852_v49 = vpack.c.bf16 %v3848_v16, %v3846_v58 }
 0xc4f   : > { %4025 = vmatprep.mubr.bf16.mxu1 %v3852_v49 }
 0xc50   : > { %4026 = vmatmul.mubr.bf16.gmra.mrb[88].mxu1 %v3851_v6 }
 0xd1b   : > { %v4639_v48 = vpop.f32.mrb[84].mxu1 }
 0xd1c   : > { %v4640_v63 = vpop.f32.mrb[85].mxu1 }
 0xd1d   : > { %v4641_v22 = vadd.f32 %v4640_v63, %v4639_v48  ;;  %v4642_v25 = vpop.f32.mrb[86].mxu1 }
 0xd1e   : > { %v4643_v29 = vpop.f32.mrb[87].mxu1 }
 0xd1f   : > { %v4020_v19 = vadd.f32 %v4641_v22, %v3888_v20  ;;  %v4644_v13 = vadd.f32 %v4643_v29, %v4642_v25 }
 0xd21   : > { %v4023_v3 = vadd.f32 %v4644_v13, %v3888_v20  ;;  %v4034_v17 = vadd.f32 %v4020_v19, %v6361_v21 }
 0xd23   : > { %4038 = vadd.xlane.f32.xlu0 %v4034_v17  ;;  %v4645_v34 = vpop.f32.mrb[88].mxu1  ;;  %v4035_v36 = vadd.f32 %v4023_v3, %v6363_v33 }
 0xd24   : > { %v4646_v24 = vpop.f32.mrb[89].mxu1 }
 0xd25   : > { %v4647_v26 = vadd.f32 %v4646_v24, %v4645_v34  ;;  %4040 = vadd.xlane.f32.xlu1 %v4035_v36  ;;  %v4648_v35 = vpop.f32.mrb[90].mxu1 }
 0xd26   : > { %v4649_v32 = vpop.f32.mrb[91].mxu1 }
 0xd27   : > { %v4028_v2 = vadd.f32 %v4647_v26, %v3888_v20  ;;  %v4650_v52 = vadd.f32 %v4649_v32, %v4648_v35 }
 0xd29   : > { %v4031_v10 = vadd.f32 %v4650_v52, %v3888_v20  ;;  %v4036_v4 = vadd.f32 %v4028_v2, %v6372_v55 }
 0xd2b   : > { %4042 = vadd.xlane.f32.xlu0 %v4036_v4  ;;  %v4037_v39 = vadd.f32 %v4031_v10, %v6370_v9 }
 0xd2d   : > { %4044 = vadd.xlane.f32.xlu1 %v4037_v39 }
 0xdb0   : > { %v4039_v12 = vpop.xlane.xlu0 %4038 }
 0xdb1   : > { %v4046_v21 = vmul.f32 0.0078125, %v4039_v12 }
 0xdb2   : > { %v4041_v0 = vpop.xlane.xlu1 %4040 }
 0xdb3   : > { %v4050_v31 = vsub.f32 %v4034_v17, %v4046_v21  ;;  %v4047_v28 = vmul.f32 0.0078125, %v4041_v0 }
 0xdb5   : > { %v4051_v33 = vsub.f32 %v4035_v36, %v4047_v28  ;;  %v4054_v15 = vmul.f32 %v4050_v31, %v4050_v31 }
 0xdb7   : > { %4058 = vadd.xlane.f32.xlu0 %v4054_v15  ;;  %v4055_v53 = vmul.f32 %v4051_v33, %v4051_v33 }
 0xdb8   : > { %v4043_v7 = vpop.xlane.xlu0 %4042 }
 0xdb9   : > { %v4048_v27 = vmul.f32 0.0078125, %v4043_v7  ;;  %4060 = vadd.xlane.f32.xlu1 %v4055_v53 }
 0xdba   : > { %v4045_v41 = vpop.xlane.xlu1 %4044 }
 0xdbb   : > { %v4052_v43 = vsub.f32 %v4036_v4, %v4048_v27  ;;  %v4049_v56 = vmul.f32 0.0078125, %v4045_v41 }
 0xdbd   : > { %v4053_v55 = vsub.f32 %v4037_v39, %v4049_v56  ;;  %v4056_v45 = vmul.f32 %v4052_v43, %v4052_v43 }
 0xdbf   : > { %4062 = vadd.xlane.f32.xlu0 %v4056_v45  ;;  %v4057_v9 = vmul.f32 %v4053_v55, %v4053_v55 }
 0xdc1   : > { %4064 = vadd.xlane.f32.xlu1 %v4057_v9 }
 0xe44   : > { %v4059_v47 = vpop.xlane.xlu0 %4058 }
 0xe45   : > { %v4066_v8 = vmul.f32 0.0078125, %v4059_v47 }
 0xe46   : > { %v4061_v42 = vpop.xlane.xlu1 %4060 }
 0xe47   : > { %v4070_v57 = vadd.f32 1e-05, %v4066_v8  ;;  %v4067_v51 = vmul.f32 0.0078125, %v4061_v42 }
 0xe49   : > { %5249 = vrsqrt.f32 %v4070_v57  ;;  %v4071_v61 = vadd.f32 1e-05, %v4067_v51 }
 0xe4b   : > { %5251 = vrsqrt.f32 %v4071_v61 }
 0xe4c   : > { %v4063_v30 = vpop.xlane.xlu0 %4062 }
 0xe4d   : > { %v4068_v50 = vmul.f32 0.0078125, %v4063_v30 }
 0xe4e   : > { %v4065_v46 = vpop.xlane.xlu1 %4064 }
 0xe4f   : > { %v4072_v60 = vadd.f32 1e-05, %v4068_v50  ;;  %v4069_v14 = vmul.f32 0.0078125, %v4065_v46 }
 0xe51   : > { %5253 = vrsqrt.f32 %v4072_v60  ;;  %v4073_v40 = vadd.f32 1e-05, %v4069_v14 }
 0xe53   : > { %v5250_v38 = vpop.eup %5249  ;;  %5255 = vrsqrt.f32 %v4073_v40 }
 0xe54   : > { %v4078_v44 = vmul.f32 %v5250_v38, %v4050_v31 }
 0xe55   : > { %v5252_v23 = vpop.eup %5251 }
 0xe56   : > { %v4086_v1 = vmul.f32 %v4085_v62, %v4078_v44  ;;  %v4079_v58 = vmul.f32 %v5252_v23, %v4051_v33 }
 0xe58   : > { %v4094_v16 = vadd.f32 %v4093_v59, %v4086_v1  ;;  %v4087_v6 = vmul.f32 %v4085_v62, %v4079_v58 }
 0xe5a   : > { %4098 = vst [vmem:[#allocation2] sm:$0xff] %v4094_v16  ;;  %4102 = vst [vmem:[%s5560_s0] sm:$0xff] %v4094_v16  ;;  %v4095_v37 = vadd.f32 %v4093_v59, %v4087_v6 }
 0xe5b   : > { %v5254_v49 = vpop.eup %5253 }
 0xe5c   : > { %4099 = vst [vmem:[#allocation2 + $0x8] sm:$0xff] %v4095_v37  ;;  %4103 = vst [vmem:[%s5560_s0 + $0x8] sm:$0xff] %v4095_v37  ;;  %v4080_v54 = vmul.f32 %v5254_v49, %v4052_v43 }
 0xe5d   : > { %v5256_v18 = vpop.eup %5255 }
 0xe5e   : > { %v4088_v48 = vmul.f32 %v4085_v62, %v4080_v54  ;;  %v4081_v20 = vmul.f32 %v5256_v18, %v4053_v55 }
 0xe60   : > { %v4096_v63 = vadd.f32 %v4093_v59, %v4088_v48  ;;  %v4089_v22 = vmul.f32 %v4085_v62, %v4081_v20 }
 0xe62   : > { %4100 = vst [vmem:[#allocation2 + $0x10] sm:$0xff] %v4096_v63  ;;  %4104 = vst [vmem:[%s5560_s0 + $0x10] sm:$0xff] %v4096_v63  ;;  %v4097_v25 = vadd.f32 %v4093_v59, %v4089_v22 }
 0xe64   : > { %4101 = vst [vmem:[#allocation2 + $0x18] sm:$0xff] %v4097_v25  ;;  %4105 = vst [vmem:[%s5560_s0 + $0x18] sm:$0xff] %v4097_v25 }
 0xe65   : > { %5274 = shalt.err (!%p5271_p10)
}
 0xe66   : > { %s5275_s22 = scalar_lea.hbm %s6402_s18, 512  ;;  %s5279_s11 = scalar_lea.hbm %s6524_s15, 3072 }
 0xe67   : > { %p5276_p11 = scmp.ne.s32.totalorder %s6402_s18, %s5275_s22  ;;  %p5280_p0 = scmp.lt.u32.totalorder %s6402_s18, %s6524_s15 }
 0xe68   : > { %p5281_p1 = scmp.lt.u32.totalorder %s5279_s11, %s5275_s22  ;;  %p5283_p4 = scmp.lt.u32.totalorder %s5275_s22, %s6402_s18 }
 0xe69   : > { %p5277_p12 = pnand %p5276_p11, %p5479_p3 }
 0xe6a   : > { %p5282_p2 = por %p5281_p1, %p5280_p0 }
 0xe6b   : > { %p5278_p13 = pneg %p5277_p12 }
 0xe6c   : > { %p5284_p5 = por %p5283_p4, %p5282_p2 }
 0xe6e   : > { %p5285_p6 = pnand %p5284_p5, %p5278_p13 }
 0xe70   : > { %5288 = shalt.err (!%p5285_p6)
}
 0xe71   : > { %s5365_s2 = smov 128   ;;  %s5366_s4 = smov 384  }
 0xe72   : > { %s5367_s19 = smov 8  }
 0xe73   : > { %4946 = dma.vmem_to_hbm [thread:$0]  (%p5479_p3), %s6404_s30, 512, %s6402_s18, %s6410_s24, %s5365_s2, %s5366_s4, %s5367_s19  }
 0xe74 PF: > { %s6526_s1 = sld [smem:[#allocation12_spill]]  ;;  %s6527_s3 = sld [smem:[#allocation6_spill]] }
 0xe7a   : > { %p4952_p7 = scmp.ge.s32.totalorder %s6526_s1, 2  ;;  %s4137_s21 = sand.u32 1, %s6527_s3  }
 0xe7b   : > { %s4138_s27 = scalar_lea.sflag [#allocation4], %s4137_s21 }
 0xe7c   : > { %p4949_p9 = pnand %p4952_p7, %p5488_p8 }
 0xe7e   : > { %5322 = dma.done.wait (!%p4949_p9), %s4138_s27, 512  }
 0xe7f   : > { %5324 = vsyncadd (!%p4949_p9), %s4138_s27, 4294966784  ;;  %s24_s24 = sadd.s32 1, %s6526_s1   ;;  %s6529_s17 = sld [smem:[#allocation7_spill]] }
 0xe80   : > { %p21_p10 = scmp.ge.s32.totalorder %s24_s24, 8   ;;  %s6530_s18 = sld [smem:[#allocation8_spill]] }
 0xe81   : > { %s6531_s19 = sld [smem:[#allocation17_spill]]  ;;  %s6532_s20 = sld [smem:[#allocation10_spill]] }
 0xe82   : > { %s6533_s21 = sld [smem:[#allocation11_spill]]  ;;  %s6534_s22 = sld [smem:[#allocation13_spill]] }
 0xe83   : > { %s6535_s23 = sld [smem:[#allocation15_spill]]  ;;  %23 = sbr.rel (!%p21_p10) target bundleno = 13 (0xd), region = 139 }
 0xe8a   :  { %4143 = vsyncpa [#allocation4], 1 }
 0xe8b   :  { %4145 = vsyncpa [#allocation4 + $0x1], 1 }

</bundles_post_ra>
